<compile_context>
chip_gen: v6e
topology: v6e:2x2x1
jax: 0.10.0
libtpu: 0.0.40
codegen_flags: <defaults>
</compile_context>

<pallas_src>
import functools

import jax
import jax.numpy as jnp
from jax import lax
from jax.experimental import pallas as pl
from jax.experimental.pallas import tpu as pltpu

_INV_SQRT2 = 0.7071067811865476


def _round_up(x, m):
    return ((x + m - 1) // m) * m


def _cdiv(a, b):
    return (a + b - 1) // b


def _vmem_capacity_bytes():
    # Trace-time hardware query; fall back to the smallest per-core VMEM
    # (v7x: 64 MiB) if the query is unavailable.
    try:
        return int(pltpu.get_tpu_info().vmem_capacity_bytes)
    except Exception:
        return 64 << 20


def _gelu_exact(x):
    # torch.nn.GELU() default: 0.5 * x * (1 + erf(x / sqrt(2))).
    return 0.5 * x * (1.0 + lax.erf(x * _INV_SQRT2))


def _pick_th(H, th_max):
    """Largest multiple of 128 dividing H, capped at th_max (lane-dense)."""
    best = 0
    for cand in range(128, min(th_max, H) + 1, 128):
        if H % cand == 0:
            best = cand
    return best if best else H


def _mlp_resident_kernel(x_ref, wup_ref, bup_ref, wdown_ref, bdown_ref, o_ref,
                         *, act_dtype):
    # Weights are fully VMEM-resident (fetched once, single-buffered); the
    # only grid axis walks row tiles, so there is no cross-step accumulator.
    h = jnp.dot(x_ref[...], wup_ref[...], preferred_element_type=jnp.float32)
    h = h.astype(act_dtype) + bup_ref[...].astype(act_dtype)
    h = _gelu_exact(h)
    y = jnp.dot(h.astype(wdown_ref.dtype), wdown_ref[...],
                preferred_element_type=jnp.float32)
    o_ref[...] = (y + bdown_ref[...].astype(jnp.float32)).astype(o_ref.dtype)


def _mlp_tiled_kernel(x_ref, wup_ref, bup_ref, wdown_ref, bdown_ref, o_ref,
                      acc_ref, *, act_dtype):
    # Fallback when the weights do not fit in VMEM: the hidden dim is tiled
    # on the innermost ("arbitrary") grid axis and partial down-projections
    # are accumulated in an f32 scratch tile.
    h_idx = pl.program_id(1)

    h = jnp.dot(x_ref[...], wup_ref[...], preferred_element_type=jnp.float32)
    h = h.astype(act_dtype) + bup_ref[...].astype(act_dtype)
    h = _gelu_exact(h)
    contrib = jnp.dot(h.astype(wdown_ref.dtype), wdown_ref[...],
                      preferred_element_type=jnp.float32)

    @pl.when(h_idx == 0)
    def _():
        # Overwrite on the first chunk (no zero-fill pass) and fold bdown in.
        acc_ref[...] = contrib + bdown_ref[...].astype(jnp.float32)

    @pl.when(h_idx > 0)
    def _():
        acc_ref[...] += contrib

    @pl.when(h_idx == pl.num_programs(1) - 1)
    def _():
        o_ref[...] = acc_ref[...].astype(o_ref.dtype)


def mlp_pallas(x, wup, bup, wdown, bdown, *, tm=None, th=None,
               gelu_dtype=None):
    """y = GELU(x @ wup + bup) @ wdown + bdown.

    x: [M, D]; wup: [D, H] (= torch wup.weight.T); bup: [H];
    wdown: [H, D] (= torch wdown.weight.T); bdown: [D].  Returns [M, D].
    """
    M, D = x.shape
    Dw, H = wup.shape
    assert Dw == D and wdown.shape == (H, D)
    assert bup.shape == (H,) and bdown.shape == (D,)

    x_bytes = jnp.dtype(x.dtype).itemsize
    w_bytes = jnp.dtype(wup.dtype).itemsize
    o_bytes = x_bytes
    # GELU/bias precision. f32 is exact and always supported; bf16 workloads
    # on v6e/v7x may pass gelu_dtype=jnp.bfloat16 to use the bf16 VPU.
    act_dtype = jnp.dtype(gelu_dtype if gelu_dtype is not None else jnp.float32)
    act_bytes = act_dtype.itemsize

    vmem_cap = _vmem_capacity_bytes()
    # Leave explicit headroom for compiler-internal scratch / spills
    # (important on v7x's 64 MiB per-core VMEM).
    vmem_budget = max(vmem_cap - (8 << 20), 32 << 20)

    # ---- row tiling: minimize padding waste, keep >=2 tiles for megacore ----
    tm_target = tm if tm is not None else (512 if vmem_cap > (96 << 20) else 256)
    M8 = _round_up(max(M, 1), 8)
    n_row = _cdiv(M8, tm_target)
    if n_row == 1 and M8 >= 256:
        n_row = 2  # both v7x TensorCores get a row tile
    tm_eff = _round_up(_cdiv(M8, n_row), 8)
    M_pad = tm_eff * n_row
    if M_pad != M:
        x = jnp.pad(x, ((0, M_pad - M), (0, 0)))

    bup2 = bup.reshape(1, H)
    bdown2 = bdown.reshape(1, D)

    weight_bytes = (D * H + H * D + H + D) * w_bytes
    io_bytes = M_pad * D * (x_bytes + o_bytes)
    flops = 4 * M_pad * D * H           # two matmuls, 2*M*N*K each
    transcendentals = M_pad * H         # one erf per hidden activation

    # ---- weights-resident fast path VMEM requirement ----
    resident_need = (weight_bytes                               # Buffered(1) weights
                     + 2 * tm_eff * D * (x_bytes + o_bytes)     # x/out double-buffered
                     + tm_eff * H * (4 + act_bytes + w_bytes)   # hidden intermediates
                     + (4 << 20))                               # headroom

    def _resident_call():
        once = dict(pipeline_mode=pl.Buffered(1))   # fetch once, single buffer
        kernel = functools.partial(_mlp_resident_kernel, act_dtype=act_dtype)
        cost = pl.CostEstimate(
            flops=flops, transcendentals=transcendentals,
            bytes_accessed=io_bytes + weight_bytes)
        return pl.pallas_call(
            kernel,
            out_shape=jax.ShapeDtypeStruct((M_pad, D), x.dtype),
            grid_spec=pltpu.PrefetchScalarGridSpec(
                num_scalar_prefetch=0,
                grid=(n_row,),
                in_specs=[
                    pl.BlockSpec((tm_eff, D), lambda i: (i, 0)),       # x rows
                    pl.BlockSpec((D, H), lambda i: (0, 0), **once),    # wup
                    pl.BlockSpec((1, H), lambda i: (0, 0), **once),    # bup
                    pl.BlockSpec((H, D), lambda i: (0, 0), **once),    # wdown
                    pl.BlockSpec((1, D), lambda i: (0, 0), **once),    # bdown
                ],
                out_specs=pl.BlockSpec((tm_eff, D), lambda i: (i, 0)),
            ),
            compiler_params=pltpu.CompilerParams(
                dimension_semantics=("parallel",),
                vmem_limit_bytes=int(min(max(resident_need, 32 << 20),
                                         vmem_budget))),
            cost_estimate=cost,
        )(x, wup, bup2, wdown, bdown2)

    def _tiled_call():
        th_max = th if th is not None else (2048 if vmem_cap > (96 << 20) else 1024)
        t_h = _pick_th(H, th_max)
        n_h = H // t_h
        tiled_need = (2 * (tm_eff * D * x_bytes
                           + (D * t_h + t_h * D + t_h + D) * w_bytes
                           + tm_eff * D * o_bytes)
                      + tm_eff * D * 4
                      + tm_eff * t_h * (4 + act_bytes + w_bytes)
                      + (4 << 20))
        kernel = functools.partial(_mlp_tiled_kernel, act_dtype=act_dtype)
        cost = pl.CostEstimate(
            flops=flops, transcendentals=transcendentals,
            # Weights are re-streamed from HBM once per row tile here.
            bytes_accessed=io_bytes + n_row * weight_bytes)
        return pl.pallas_call(
            kernel,
            out_shape=jax.ShapeDtypeStruct((M_pad, D), x.dtype),
            grid_spec=pltpu.PrefetchScalarGridSpec(
                num_scalar_prefetch=0,
                grid=(n_row, n_h),                 # rows (parallel), H (reduction)
                in_specs=[
                    pl.BlockSpec((tm_eff, D), lambda i, h: (i, 0)),   # x rows
                    pl.BlockSpec((D, t_h), lambda i, h: (0, h)),      # wup chunk
                    pl.BlockSpec((1, t_h), lambda i, h: (0, h)),      # bup chunk
                    pl.BlockSpec((t_h, D), lambda i, h: (h, 0)),      # wdown chunk
                    pl.BlockSpec((1, D), lambda i, h: (0, 0)),        # bdown
                ],
                out_specs=pl.BlockSpec((tm_eff, D), lambda i, h: (i, 0)),
                scratch_shapes=[pltpu.VMEM((tm_eff, D), jnp.float32)],
            ),
            compiler_params=pltpu.CompilerParams(
                dimension_semantics=("parallel", "arbitrary"),
                vmem_limit_bytes=int(min(max(tiled_need, 32 << 20),
                                         vmem_budget))),
            cost_estimate=cost,
        )(x, wup, bup2, wdown, bdown2)

    if resident_need <= vmem_budget:
        try:
            out = _resident_call()
        except Exception:
            # If this toolchain rejects Buffered(1)/residency, use the
            # H-tiled schedule instead of failing.
            out = _tiled_call()
    else:
        out = _tiled_call()

    return out[:M]


def mlp_forward(x_btd, wup, bup, wdown, bdown, *, tm=None, th=None,
                gelu_dtype=None):
    """x_btd: [B, S, D] -> [B, S, D], like the torch module on a 3-D input."""
    B, S, D = x_btd.shape
    x2 = x_btd.reshape(B * S, D)
    y2 = mlp_pallas(x2, wup, bup, wdown, bdown, tm=tm, th=th,
                    gelu_dtype=gelu_dtype)
    return y2.reshape(B, S, D)


def mlp_reference(x_btd, wup, bup, wdown, bdown):
    h = jnp.einsum("bsd,dh->bsh", x_btd, wup) + bup
    h = jax.nn.gelu(h, approximate=False)
    return jnp.einsum("bsh,hd->bsd", h, wdown) + bdown


if __name__ == "__main__":
    # Small but lane-dense shapes consistent with the module (D multiple of
    # 128, multiplier=4). The module default is D=768; use D=256 here.
    B, S, D, MULT = 2, 8, 256, 4
    H = MULT * D

    key = jax.random.PRNGKey(0)
    kx, k1, k2, k3, k4 = jax.random.split(key, 5)

    x = jax.random.normal(kx, (B, S, D), dtype=jnp.float32)

    # Deterministic parameter init (uniform, like torch.nn.Linear's default).
    lim_up = 1.0 / (D ** 0.5)
    lim_dn = 1.0 / (H ** 0.5)
    wup = jax.random.uniform(k1, (D, H), jnp.float32, -lim_up, lim_up)    # = torch wup.weight.T
    bup = jax.random.uniform(k2, (H,), jnp.float32, -lim_up, lim_up)
    wdown = jax.random.uniform(k3, (H, D), jnp.float32, -lim_dn, lim_dn)  # = torch wdown.weight.T
    bdown = jax.random.uniform(k4, (D,), jnp.float32, -lim_dn, lim_dn)

    # f32: exact comparison against the reference implementation.
    y = jax.block_until_ready(mlp_forward(x, wup, bup, wdown, bdown))
    y_ref = mlp_reference(x, wup, bup, wdown, bdown)
    assert y.shape == (B, S, D)
    assert jnp.allclose(y, y_ref, atol=2e-5, rtol=2e-5), "f32 mismatch vs reference"

    # bf16: production dtype path (f32 MXU accumulation, f32 GELU), loose check.
    xb = x.astype(jnp.bfloat16)
    yb = jax.block_until_ready(
        mlp_forward(xb, wup.astype(jnp.bfloat16), bup.astype(jnp.bfloat16),
                    wdown.astype(jnp.bfloat16), bdown.astype(jnp.bfloat16)))
    assert yb.shape == (B, S, D)
    assert jnp.allclose(yb.astype(jnp.float32), y_ref, atol=1e-1, rtol=1e-1), \
        "bf16 mismatch vs reference"

    print("KERNEL_OK")
</pallas_src>

<mosaic_0001>
module attributes {stable_mosaic.version = 11 : i64} {
  func.func @_mlp_resident_kernel(%arg0: i32, %arg1: memref<16x256xf32, #tpu.memory_space<vmem>>, %arg2: memref<256x1024xf32, #tpu.memory_space<vmem>>, %arg3: memref<1x1024xf32, #tpu.memory_space<vmem>>, %arg4: memref<1024x256xf32, #tpu.memory_space<vmem>>, %arg5: memref<1x256xf32, #tpu.memory_space<vmem>>, %arg6: memref<16x256xf32, #tpu.memory_space<vmem>>) attributes {dimension_semantics = [#tpu.dimension_semantics<parallel>], iteration_bounds = array<i64: 1>, scalar_prefetch = 0 : i64, scratch_operands = 0 : i64, tpu.core_type = #tpu.core_type<tc>, window_params = [{transform_indices = @transform_0, window_bounds = array<i64: 16, 256>}, {pipeline_mode = #tpu.pipeline_mode<synchronous>, transform_indices = @transform_1, window_bounds = array<i64: 256, 1024>}, {pipeline_mode = #tpu.pipeline_mode<synchronous>, transform_indices = @transform_2, window_bounds = array<i64: 1, 1024>}, {pipeline_mode = #tpu.pipeline_mode<synchronous>, transform_indices = @transform_3, window_bounds = array<i64: 1024, 256>}, {pipeline_mode = #tpu.pipeline_mode<synchronous>, transform_indices = @transform_4, window_bounds = array<i64: 1, 256>}, {transform_indices = @transform_5, window_bounds = array<i64: 16, 256>}]} {
    %c0 = arith.constant 0 : index
    %c0_0 = arith.constant 0 : index
    %0 = vector.load %arg1[%c0, %c0_0] : memref<16x256xf32, #tpu.memory_space<vmem>>, vector<16x256xf32>
    %c0_1 = arith.constant 0 : index
    %c0_2 = arith.constant 0 : index
    %1 = vector.load %arg2[%c0_1, %c0_2] : memref<256x1024xf32, #tpu.memory_space<vmem>>, vector<256x1024xf32>
    %cst = arith.constant dense<0.000000e+00> : vector<16x1024xf32>
    %2 = tpu.matmul %0, %1, %cst {dimension_numbers = #tpu.dot_dimension_numbers<[1], [0], [0], [1], [0, 0, 1, 1], [], []>} : vector<16x256xf32>, vector<256x1024xf32>, vector<16x1024xf32> -> vector<16x1024xf32>
    %c0_3 = arith.constant 0 : index
    %c0_4 = arith.constant 0 : index
    %3 = vector.load %arg3[%c0_3, %c0_4] : memref<1x1024xf32, #tpu.memory_space<vmem>>, vector<1x1024xf32>
    %4 = vector.broadcast %3 : vector<1x1024xf32> to vector<16x1024xf32>
    %5 = arith.addf %2, %4 : vector<16x1024xf32>
    %cst_5 = arith.constant 5.000000e-01 : f32
    %6 = vector.broadcast %cst_5 : f32 to vector<16x1024xf32>
    %7 = arith.mulf %6, %5 : vector<16x1024xf32>
    %cst_6 = arith.constant 0.707106769 : f32
    %8 = vector.broadcast %cst_6 : f32 to vector<16x1024xf32>
    %9 = arith.mulf %5, %8 : vector<16x1024xf32>
    %10 = math.erf %9 : vector<16x1024xf32>
    %cst_7 = arith.constant 1.000000e+00 : f32
    %11 = vector.broadcast %cst_7 : f32 to vector<16x1024xf32>
    %12 = arith.addf %11, %10 : vector<16x1024xf32>
    %13 = arith.mulf %7, %12 : vector<16x1024xf32>
    %c0_8 = arith.constant 0 : index
    %c0_9 = arith.constant 0 : index
    %14 = vector.load %arg4[%c0_8, %c0_9] : memref<1024x256xf32, #tpu.memory_space<vmem>>, vector<1024x256xf32>
    %cst_10 = arith.constant dense<0.000000e+00> : vector<16x256xf32>
    %15 = tpu.matmul %13, %14, %cst_10 {dimension_numbers = #tpu.dot_dimension_numbers<[1], [0], [0], [1], [0, 0, 1, 1], [], []>} : vector<16x1024xf32>, vector<1024x256xf32>, vector<16x256xf32> -> vector<16x256xf32>
    %c0_11 = arith.constant 0 : index
    %c0_12 = arith.constant 0 : index
    %16 = vector.load %arg5[%c0_11, %c0_12] : memref<1x256xf32, #tpu.memory_space<vmem>>, vector<1x256xf32>
    %17 = vector.broadcast %16 : vector<1x256xf32> to vector<16x256xf32>
    %18 = arith.addf %15, %17 : vector<16x256xf32>
    %c0_13 = arith.constant 0 : index
    %c0_14 = arith.constant 0 : index
    %19 = vector.load %arg6[%c0_13, %c0_14] : memref<16x256xf32, #tpu.memory_space<vmem>>, vector<16x256xf32>
    tpu.vector_store %arg6[%c0_13, %c0_14], %18 {strides = array<i32>} : memref<16x256xf32, #tpu.memory_space<vmem>>, vector<16x256xf32>,
    return
  }
  func.func @transform_0(%arg0: i32) -> (i32, i32) {
    %c0_i32 = arith.constant 0 : i32
    %c0_i32_0 = arith.constant 0 : i32
    return %arg0, %c0_i32 : i32, i32
  }
  func.func @transform_1(%arg0: i32) -> (i32, i32) {
    %c0_i32 = arith.constant 0 : i32
    %c0_i32_0 = arith.constant 0 : i32
    %c0_i32_1 = arith.constant 0 : i32
    return %c0_i32, %c0_i32_0 : i32, i32
  }
  func.func @transform_2(%arg0: i32) -> (i32, i32) {
    %c0_i32 = arith.constant 0 : i32
    %c0_i32_0 = arith.constant 0 : i32
    %c0_i32_1 = arith.constant 0 : i32
    return %c0_i32, %c0_i32_0 : i32, i32
  }
  func.func @transform_3(%arg0: i32) -> (i32, i32) {
    %c0_i32 = arith.constant 0 : i32
    %c0_i32_0 = arith.constant 0 : i32
    %c0_i32_1 = arith.constant 0 : i32
    return %c0_i32, %c0_i32_0 : i32, i32
  }
  func.func @transform_4(%arg0: i32) -> (i32, i32) {
    %c0_i32 = arith.constant 0 : i32
    %c0_i32_0 = arith.constant 0 : i32
    %c0_i32_1 = arith.constant 0 : i32
    return %c0_i32, %c0_i32_0 : i32, i32
  }
  func.func @transform_5(%arg0: i32) -> (i32, i32) {
    %c0_i32 = arith.constant 0 : i32
    %c0_i32_0 = arith.constant 0 : i32
    return %arg0, %c0_i32 : i32, i32
  }
}

module attributes {stable_mosaic.version = 11 : i64} {
  func.func @_mlp_tiled_kernel(%arg0: i32, %arg1: i32, %arg2: memref<16x256xf32, #tpu.memory_space<vmem>>, %arg3: memref<256x1024xf32, #tpu.memory_space<vmem>>, %arg4: memref<1x1024xf32, #tpu.memory_space<vmem>>, %arg5: memref<1024x256xf32, #tpu.memory_space<vmem>>, %arg6: memref<1x256xf32, #tpu.memory_space<vmem>>, %arg7: memref<16x256xf32, #tpu.memory_space<vmem>>, %arg8: memref<16x256xf32, #tpu.memory_space<vmem>>) attributes {dimension_semantics = [#tpu.dimension_semantics<parallel>, #tpu.dimension_semantics<arbitrary>], iteration_bounds = array<i64: 1, 1>, scalar_prefetch = 0 : i64, scratch_operands = 1 : i64, tpu.core_type = #tpu.core_type<tc>, window_params = [{transform_indices = @transform_0, window_bounds = array<i64: 16, 256>}, {transform_indices = @transform_1, window_bounds = array<i64: 256, 1024>}, {transform_indices = @transform_2, window_bounds = array<i64: 1, 1024>}, {transform_indices = @transform_3, window_bounds = array<i64: 1024, 256>}, {pipeline_mode = #tpu.pipeline_mode<synchronous>, transform_indices = @transform_4, window_bounds = array<i64: 1, 256>}, {transform_indices = @transform_5, window_bounds = array<i64: 16, 256>}]} {
    %c0 = arith.constant 0 : index
    %c0_0 = arith.constant 0 : index
    %0 = vector.load %arg2[%c0, %c0_0] : memref<16x256xf32, #tpu.memory_space<vmem>>, vector<16x256xf32>
    %c0_1 = arith.constant 0 : index
    %c0_2 = arith.constant 0 : index
    %1 = vector.load %arg3[%c0_1, %c0_2] : memref<256x1024xf32, #tpu.memory_space<vmem>>, vector<256x1024xf32>
    %cst = arith.constant dense<0.000000e+00> : vector<16x1024xf32>
    %2 = tpu.matmul %0, %1, %cst {dimension_numbers = #tpu.dot_dimension_numbers<[1], [0], [0], [1], [0, 0, 1, 1], [], []>} : vector<16x256xf32>, vector<256x1024xf32>, vector<16x1024xf32> -> vector<16x1024xf32>
    %c0_3 = arith.constant 0 : index
    %c0_4 = arith.constant 0 : index
    %3 = vector.load %arg4[%c0_3, %c0_4] : memref<1x1024xf32, #tpu.memory_space<vmem>>, vector<1x1024xf32>
    %4 = vector.broadcast %3 : vector<1x1024xf32> to vector<16x1024xf32>
    %5 = arith.addf %2, %4 : vector<16x1024xf32>
    %cst_5 = arith.constant 5.000000e-01 : f32
    %6 = vector.broadcast %cst_5 : f32 to vector<16x1024xf32>
    %7 = arith.mulf %6, %5 : vector<16x1024xf32>
    %cst_6 = arith.constant 0.707106769 : f32
    %8 = vector.broadcast %cst_6 : f32 to vector<16x1024xf32>
    %9 = arith.mulf %5, %8 : vector<16x1024xf32>
    %10 = math.erf %9 : vector<16x1024xf32>
    %cst_7 = arith.constant 1.000000e+00 : f32
    %11 = vector.broadcast %cst_7 : f32 to vector<16x1024xf32>
    %12 = arith.addf %11, %10 : vector<16x1024xf32>
    %13 = arith.mulf %7, %12 : vector<16x1024xf32>
    %c0_8 = arith.constant 0 : index
    %c0_9 = arith.constant 0 : index
    %14 = vector.load %arg5[%c0_8, %c0_9] : memref<1024x256xf32, #tpu.memory_space<vmem>>, vector<1024x256xf32>
    %cst_10 = arith.constant dense<0.000000e+00> : vector<16x256xf32>
    %15 = tpu.matmul %13, %14, %cst_10 {dimension_numbers = #tpu.dot_dimension_numbers<[1], [0], [0], [1], [0, 0, 1, 1], [], []>} : vector<16x1024xf32>, vector<1024x256xf32>, vector<16x256xf32> -> vector<16x256xf32>
    %c0_i32 = arith.constant 0 : i32
    %16 = arith.cmpi eq, %arg1, %c0_i32 : i32
    %17 = arith.extui %16 : i1 to i32
    %c0_i32_11 = arith.constant 0 : i32
    %18 = arith.cmpi ne, %17, %c0_i32_11 : i32
    scf.if %18 {
      %c0_16 = arith.constant 0 : index
      %c0_17 = arith.constant 0 : index
      %25 = vector.load %arg6[%c0_16, %c0_17] : memref<1x256xf32, #tpu.memory_space<vmem>>, vector<1x256xf32>
      %26 = vector.broadcast %25 : vector<1x256xf32> to vector<16x256xf32>
      %27 = arith.addf %15, %26 : vector<16x256xf32>
      %c0_18 = arith.constant 0 : index
      %c0_19 = arith.constant 0 : index
      %28 = vector.load %arg8[%c0_18, %c0_19] : memref<16x256xf32, #tpu.memory_space<vmem>>, vector<16x256xf32>
      tpu.vector_store %arg8[%c0_18, %c0_19], %27 {strides = array<i32>} : memref<16x256xf32, #tpu.memory_space<vmem>>, vector<16x256xf32>,
    } else {
    }
    %c0_i32_12 = arith.constant 0 : i32
    %19 = arith.cmpi sgt, %arg1, %c0_i32_12 : i32
    %20 = arith.extui %19 : i1 to i32
    %c0_i32_13 = arith.constant 0 : i32
    %21 = arith.cmpi ne, %20, %c0_i32_13 : i32
    scf.if %21 {
      %c0_16 = arith.constant 0 : index
      %c0_17 = arith.constant 0 : index
      %25 = vector.load %arg8[%c0_16, %c0_17] : memref<16x256xf32, #tpu.memory_space<vmem>>, vector<16x256xf32>
      %26 = arith.addf %25, %15 : vector<16x256xf32>
      %c0_18 = arith.constant 0 : index
      %c0_19 = arith.constant 0 : index
      %27 = vector.load %arg8[%c0_18, %c0_19] : memref<16x256xf32, #tpu.memory_space<vmem>>, vector<16x256xf32>
      tpu.vector_store %arg8[%c0_18, %c0_19], %26 {strides = array<i32>} : memref<16x256xf32, #tpu.memory_space<vmem>>, vector<16x256xf32>,
    } else {
    }
    %c0_i32_14 = arith.constant 0 : i32
    %22 = arith.cmpi eq, %arg1, %c0_i32_14 : i32
    %23 = arith.extui %22 : i1 to i32
    %c0_i32_15 = arith.constant 0 : i32
    %24 = arith.cmpi ne, %23, %c0_i32_15 : i32
    scf.if %24 {
      %c0_16 = arith.constant 0 : index
      %c0_17 = arith.constant 0 : index
      %25 = vector.load %arg8[%c0_16, %c0_17] : memref<16x256xf32, #tpu.memory_space<vmem>>, vector<16x256xf32>
      %c0_18 = arith.constant 0 : index
      %c0_19 = arith.constant 0 : index
      %26 = vector.load %arg7[%c0_18, %c0_19] : memref<16x256xf32, #tpu.memory_space<vmem>>, vector<16x256xf32>
      tpu.vector_store %arg7[%c0_18, %c0_19], %25 {strides = array<i32>} : memref<16x256xf32, #tpu.memory_space<vmem>>, vector<16x256xf32>,
    } else {
    }
    return
  }
  func.func @transform_0(%arg0: i32, %arg1: i32) -> (i32, i32) {
    %c0_i32 = arith.constant 0 : i32
    %c0_i32_0 = arith.constant 0 : i32
    return %arg0, %c0_i32 : i32, i32
  }
  func.func @transform_1(%arg0: i32, %arg1: i32) -> (i32, i32) {
    %c0_i32 = arith.constant 0 : i32
    %c0_i32_0 = arith.constant 0 : i32
    return %c0_i32, %arg1 : i32, i32
  }
  func.func @transform_2(%arg0: i32, %arg1: i32) -> (i32, i32) {
    %c0_i32 = arith.constant 0 : i32
    %c0_i32_0 = arith.constant 0 : i32
    return %c0_i32, %arg1 : i32, i32
  }
  func.func @transform_3(%arg0: i32, %arg1: i32) -> (i32, i32) {
    %c0_i32 = arith.constant 0 : i32
    %c0_i32_0 = arith.constant 0 : i32
    return %arg1, %c0_i32 : i32, i32
  }
  func.func @transform_4(%arg0: i32, %arg1: i32) -> (i32, i32) {
    %c0_i32 = arith.constant 0 : i32
    %c0_i32_0 = arith.constant 0 : i32
    %c0_i32_1 = arith.constant 0 : i32
    return %c0_i32, %c0_i32_0 : i32, i32
  }
  func.func @transform_5(%arg0: i32, %arg1: i32) -> (i32, i32) {
    %c0_i32 = arith.constant 0 : i32
    %c0_i32_0 = arith.constant 0 : i32
    return %arg0, %c0_i32 : i32, i32
  }
}

</mosaic_0001>

<bundles_post_ra>
// kernel: tpu_custom_call.1
= control target key start
LH: loop header
LB: loop body
LE: loop exit
PB: predicated region body
PF: predicated region fallthrough
CT: control target
= control target key end

     0   :  { %10 = vsyncpa [#allocation3], 0  ;;  %s1694_s0 = inlined_call_operand.hbm [shape: f32[16,256], index: 0, kind: input, shape index: {}]   ;;  %s1695_s1 = inlined_call_operand.hbm [shape: f32[256,1024], index: 1, kind: input, shape index: {}]   ;;  %s1696_s2 = inlined_call_operand.hbm [shape: f32[1,1024], index: 2, kind: input, shape index: {}]   ;;  %s1697_s3 = inlined_call_operand.hbm [shape: f32[1024,256], index: 3, kind: input, shape index: {}]   ;;  %s1698_s4 = inlined_call_operand.vmem [shape: f32[1,256], index: 4, kind: input, shape index: {}]   ;;  %s1699_s5 = inlined_call_operand.hbm [shape: f32[16,256], index: 5, kind: output, shape index: {}]  }
   0x1   :  { %11 = vsyncpa [#allocation6], 0 }
   0x2   :  { %12 = vsyncpa [#allocation9], 0 }
   0x3   :  { %13 = vsyncpa [#allocation4], 0  ;;  %s1512_s18 = smov [#allocation5]  }
   0x4   :  { %s31_s19 = sshll.u32 %s1512_s18, 4  ;;  %s32_s19 = int_to_ptr.vmem [resolvable:$true] %s31_s19 }
   0x5   :  { %s1412_s20 = scalar_lea.vmem %s32_s19, 32768  ;;  %p1417_p1 = scmp.lt.s32.totalorder %s32_s19, %s32_s19 }
   0x6   :  { %p1413_p0 = scmp.ne.s32.totalorder %s32_s19, %s1412_s20  ;;  %p1418_p2 = scmp.lt.s32.totalorder %s1412_s20, %s1412_s20 }
   0x8   :  { %p1419_p3 = por %p1418_p2, %p1417_p1 }
   0xa   :  { %p1420_p4 = pnand %p1419_p3, %p1413_p0 }
   0xc   :  { %1423 = shalt.err (!%p1420_p4)
}
   0xd   :  { %s1513_s21 = smov 1024   ;;  %s1514_s22 = smov 64  }
   0xe   :  { %37 = dma.hbm_to_vmem [thread:$0]  %s1695_s1, 32768, %s32_s19, [#allocation6], %s1513_s21, %s1513_s21, %s1514_s22  }
   0xf   :  { %s1515_s25 = smov [#allocation2]  }
  0x10   :  { %s19_s26 = sshll.u32 %s1515_s25, 4  ;;  %s20_s26 = int_to_ptr.vmem [resolvable:$true] %s19_s26 }
  0x11   :  { %s1432_s27 = scalar_lea.vmem %s20_s26, 512  ;;  %p1437_p6 = scmp.lt.s32.totalorder %s20_s26, %s20_s26 }
  0x12   :  { %p1433_p5 = scmp.ne.s32.totalorder %s20_s26, %s1432_s27  ;;  %p1438_p7 = scmp.lt.s32.totalorder %s1432_s27, %s1432_s27 }
  0x14   :  { %p1439_p8 = por %p1438_p7, %p1437_p6 }
  0x16   :  { %p1440_p9 = pnand %p1439_p8, %p1433_p5 }
  0x18   :  { %1443 = shalt.err (!%p1440_p9)
}
  0x19   :  { %s1516_s28 = smov 256   ;;  %s1517_s29 = smov 16  }
  0x1a   :  { %25 = dma.hbm_to_vmem [thread:$0]  %s1694_s0, 512, %s20_s26, [#allocation3], %s1516_s28, %s1516_s28, %s1517_s29  }
  0x1b   :  { %s1518_s1 = smov [#allocation7]   ;;  %s1519_s8 = smov [#allocation8]  }
  0x1c   :  { %s44_s7 = sshll.u32 %s1518_s1, 4  ;;  %s53_s9 = sshll.u32 %s1519_s8, 4  ;;  %s45_s7 = int_to_ptr.vmem [resolvable:$true] %s44_s7  ;;  %s54_s9 = int_to_ptr.vmem [resolvable:$true] %s53_s9 }
  0x1d   :  { %s1452_s10 = scalar_lea.vmem %s45_s7, 128  ;;  %p1457_p11 = scmp.lt.s32.totalorder %s45_s7, %s45_s7 }
  0x1e   :  { %p1453_p10 = scmp.ne.s32.totalorder %s45_s7, %s1452_s10  ;;  %p1458_p12 = scmp.lt.s32.totalorder %s1452_s10, %s1452_s10 }
  0x20   :  { %p1459_p13 = por %p1458_p12, %p1457_p11 }
  0x22   :  { %p1460_p0 = pnand %p1459_p13, %p1453_p10 }
  0x24   :  { %1463 = shalt.err (!%p1460_p0)
}
  0x25   :  { %47 = dma.hbm_to_vmem [thread:$0]  %s1696_s2, 128, %s45_s7, [#allocation6]  }
  0x26   :  { %s1472_s13 = scalar_lea.vmem %s54_s9, 32768  ;;  %p1477_p2 = scmp.lt.s32.totalorder %s54_s9, %s54_s9 }
  0x27   :  { %p1473_p1 = scmp.ne.s32.totalorder %s54_s9, %s1472_s13  ;;  %p1478_p3 = scmp.lt.s32.totalorder %s1472_s13, %s1472_s13 }
  0x29   :  { %p1479_p4 = por %p1478_p3, %p1477_p2 }
  0x2b   :  { %p1480_p5 = pnand %p1479_p4, %p1473_p1 }
  0x2d   :  { %1483 = shalt.err (!%p1480_p5)
}
  0x2e   :  { %59 = dma.hbm_to_vmem [thread:$0]  %s1697_s3, 32768, %s54_s9, [#allocation9], %s1516_s28, %s1516_s28, %s1517_s29  }
  0x2f   :  { %1504 = dma.done.wait [#allocation3], 512  }
  0x30   :  { %1505 = vsyncadd [#allocation3], 4294966784 }
  0x31   :  { %1506 = dma.done.wait [#allocation6], 32896  }
  0x32   :  { %1507 = vsyncadd [#allocation6], 4294934400 }
  0x33   :  { %1508 = dma.done.wait [#allocation9], 32768  }
  0x34   :  { %1509 = vsyncadd [#allocation9], 4294934528  ;;  %v199_v0 = vld [vmem:[#allocation5 + $0x3c8] sm:$0xff]  ;;  %v201_v1 = vld [vmem:[#allocation5 + $0x3d8] sm:$0xff] }
  0x35   :  { %v198_v2 = vld [vmem:[#allocation5 + $0x3c0] sm:$0xff]  ;;  %376 = vmatprep.subr.mxu0 %v199_v0  ;;  %453 = vmatprep.subr.mxu1 %v201_v1  ;;  %v200_v3 = vld [vmem:[#allocation5 + $0x3d0] sm:$0xff]  ;;  %v191_v4 = vld [vmem:[#allocation5 + $0x388] sm:$0xff] }
  0x36   :  { %v193_v5 = vld [vmem:[#allocation5 + $0x398] sm:$0xff]  ;;  %377 = vmatpush1.msra.mxu0 %v198_v2  ;;  %454 = vmatpush1.msra.mxu1 %v200_v3  ;;  %v190_v6 = vld [vmem:[#allocation5 + $0x380] sm:$0xff]  ;;  %v192_v7 = vld [vmem:[#allocation5 + $0x390] sm:$0xff] }
  0x37   :  { %v183_v8 = vld [vmem:[#allocation5 + $0x348] sm:$0xff]  ;;  %378 = vmatprep.subr.mxu0 %v191_v4  ;;  %455 = vmatprep.subr.mxu1 %v193_v5  ;;  %v185_v9 = vld [vmem:[#allocation5 + $0x358] sm:$0xff]  ;;  %v182_v10 = vld [vmem:[#allocation5 + $0x340] sm:$0xff] }
  0x38   :  { %v184_v11 = vld [vmem:[#allocation5 + $0x350] sm:$0xff]  ;;  %379 = vmatpush1.msra.mxu0 %v190_v6  ;;  %456 = vmatpush1.msra.mxu1 %v192_v7  ;;  %v175_v12 = vld [vmem:[#allocation5 + $0x308] sm:$0xff]  ;;  %v177_v13 = vld [vmem:[#allocation5 + $0x318] sm:$0xff] }
  0x39   :  { %380 = vmatprep.subr.mxu0 %v183_v8  ;;  %457 = vmatprep.subr.mxu1 %v185_v9  ;;  %v174_v14 = vld [vmem:[#allocation5 + $0x300] sm:$0xff]  ;;  %v176_v15 = vld [vmem:[#allocation5 + $0x310] sm:$0xff]  ;;  %v167_v16 = vld [vmem:[#allocation5 + $0x2c8] sm:$0xff] }
  0x3a   :  { %381 = vmatpush1.msra.mxu0 %v182_v10  ;;  %458 = vmatpush1.msra.mxu1 %v184_v11  ;;  %v169_v17 = vld [vmem:[#allocation5 + $0x2d8] sm:$0xff]  ;;  %v166_v18 = vld [vmem:[#allocation5 + $0x2c0] sm:$0xff]  ;;  %v168_v19 = vld [vmem:[#allocation5 + $0x2d0] sm:$0xff] }
  0x3b   :  { %382 = vmatprep.subr.mxu0 %v175_v12  ;;  %459 = vmatprep.subr.mxu1 %v177_v13  ;;  %v159_v20 = vld [vmem:[#allocation5 + $0x288] sm:$0xff]  ;;  %v161_v21 = vld [vmem:[#allocation5 + $0x298] sm:$0xff]  ;;  %v158_v22 = vld [vmem:[#allocation5 + $0x280] sm:$0xff] }
  0x3c   :  { %383 = vmatpush1.msra.mxu0 %v174_v14  ;;  %460 = vmatpush1.msra.mxu1 %v176_v15  ;;  %v160_v23 = vld [vmem:[#allocation5 + $0x290] sm:$0xff]  ;;  %v151_v24 = vld [vmem:[#allocation5 + $0x248] sm:$0xff]  ;;  %v153_v25 = vld [vmem:[#allocation5 + $0x258] sm:$0xff] }
  0x3d   :  { %384 = vmatprep.subr.mxu0 %v167_v16  ;;  %461 = vmatprep.subr.mxu1 %v169_v17  ;;  %v150_v26 = vld [vmem:[#allocation5 + $0x240] sm:$0xff]  ;;  %v152_v27 = vld [vmem:[#allocation5 + $0x250] sm:$0xff]  ;;  %v143_v28 = vld [vmem:[#allocation5 + $0x208] sm:$0xff] }
  0x3e   :  { %385 = vmatpush1.msra.mxu0 %v166_v18  ;;  %462 = vmatpush1.msra.mxu1 %v168_v19  ;;  %v145_v29 = vld [vmem:[#allocation5 + $0x218] sm:$0xff]  ;;  %v142_v30 = vld [vmem:[#allocation5 + $0x200] sm:$0xff]  ;;  %v144_v31 = vld [vmem:[#allocation5 + $0x210] sm:$0xff] }
  0x3f   :  { %386 = vmatprep.subr.mxu0 %v159_v20  ;;  %463 = vmatprep.subr.mxu1 %v161_v21  ;;  %v135_v32 = vld [vmem:[#allocation5 + $0x1c8] sm:$0xff]  ;;  %v137_v33 = vld [vmem:[#allocation5 + $0x1d8] sm:$0xff]  ;;  %v134_v34 = vld [vmem:[#allocation5 + $0x1c0] sm:$0xff] }
  0x40   :  { %387 = vmatpush1.msra.mxu0 %v158_v22  ;;  %464 = vmatpush1.msra.mxu1 %v160_v23  ;;  %v136_v35 = vld [vmem:[#allocation5 + $0x1d0] sm:$0xff]  ;;  %v127_v36 = vld [vmem:[#allocation5 + $0x188] sm:$0xff]  ;;  %v129_v37 = vld [vmem:[#allocation5 + $0x198] sm:$0xff] }
  0x41   :  { %388 = vmatprep.subr.mxu0 %v151_v24  ;;  %465 = vmatprep.subr.mxu1 %v153_v25  ;;  %v126_v38 = vld [vmem:[#allocation5 + $0x180] sm:$0xff]  ;;  %v128_v39 = vld [vmem:[#allocation5 + $0x190] sm:$0xff]  ;;  %v119_v40 = vld [vmem:[#allocation5 + $0x148] sm:$0xff] }
  0x42   :  { %389 = vmatpush1.msra.mxu0 %v150_v26  ;;  %466 = vmatpush1.msra.mxu1 %v152_v27  ;;  %v121_v41 = vld [vmem:[#allocation5 + $0x158] sm:$0xff]  ;;  %v118_v42 = vld [vmem:[#allocation5 + $0x140] sm:$0xff]  ;;  %v120_v43 = vld [vmem:[#allocation5 + $0x150] sm:$0xff] }
  0x43   :  { %390 = vmatprep.subr.mxu0 %v143_v28  ;;  %467 = vmatprep.subr.mxu1 %v145_v29  ;;  %v111_v44 = vld [vmem:[#allocation5 + $0x108] sm:$0xff]  ;;  %v113_v45 = vld [vmem:[#allocation5 + $0x118] sm:$0xff]  ;;  %v110_v46 = vld [vmem:[#allocation5 + $0x100] sm:$0xff] }
  0x44   :  { %391 = vmatpush1.msra.mxu0 %v142_v30  ;;  %468 = vmatpush1.msra.mxu1 %v144_v31  ;;  %v112_v47 = vld [vmem:[#allocation5 + $0x110] sm:$0xff]  ;;  %v103_v48 = vld [vmem:[#allocation5 + $0xc8] sm:$0xff]  ;;  %v105_v49 = vld [vmem:[#allocation5 + $0xd8] sm:$0xff] }
  0x45   :  { %392 = vmatprep.subr.mxu0 %v135_v32  ;;  %469 = vmatprep.subr.mxu1 %v137_v33  ;;  %v102_v50 = vld [vmem:[#allocation5 + $0xc0] sm:$0xff]  ;;  %v104_v51 = vld [vmem:[#allocation5 + $0xd0] sm:$0xff]  ;;  %v95_v52 = vld [vmem:[#allocation5 + $0x88] sm:$0xff] }
  0x46   :  { %393 = vmatpush1.msra.mxu0 %v134_v34  ;;  %470 = vmatpush1.msra.mxu1 %v136_v35  ;;  %v97_v53 = vld [vmem:[#allocation5 + $0x98] sm:$0xff]  ;;  %v94_v54 = vld [vmem:[#allocation5 + $0x80] sm:$0xff]  ;;  %v96_v55 = vld [vmem:[#allocation5 + $0x90] sm:$0xff] }
  0x47   :  { %394 = vmatprep.subr.mxu0 %v127_v36  ;;  %471 = vmatprep.subr.mxu1 %v129_v37  ;;  %v87_v56 = vld [vmem:[#allocation5 + $0x48] sm:$0xff]  ;;  %v89_v57 = vld [vmem:[#allocation5 + $0x58] sm:$0xff]  ;;  %v86_v58 = vld [vmem:[#allocation5 + $0x40] sm:$0xff] }
  0x48   :  { %395 = vmatpush1.msra.mxu0 %v126_v38  ;;  %472 = vmatpush1.msra.mxu1 %v128_v39  ;;  %v88_v59 = vld [vmem:[#allocation5 + $0x50] sm:$0xff]  ;;  %v79_v60 = vld [vmem:[#allocation5 + $0x8] sm:$0xff]  ;;  %v81_v61 = vld [vmem:[#allocation5 + $0x18] sm:$0xff] }
  0x49   :  { %396 = vmatprep.subr.mxu0 %v119_v40  ;;  %473 = vmatprep.subr.mxu1 %v121_v41  ;;  %v78_v62 = vld [vmem:[#allocation5] sm:$0xff]  ;;  %v80_v63 = vld [vmem:[#allocation5 + $0x10] sm:$0xff]  ;;  %v327_v0 = vld [vmem:[#allocation5 + $0x7c8] sm:$0xff] }
  0x4a   :  { %397 = vmatpush1.msra.mxu0 %v118_v42  ;;  %474 = vmatpush1.msra.mxu1 %v120_v43  ;;  %v329_v1 = vld [vmem:[#allocation5 + $0x7d8] sm:$0xff]  ;;  %v326_v2 = vld [vmem:[#allocation5 + $0x7c0] sm:$0xff]  ;;  %v328_v3 = vld [vmem:[#allocation5 + $0x7d0] sm:$0xff] }
  0x4b   :  { %398 = vmatprep.subr.mxu0 %v111_v44  ;;  %475 = vmatprep.subr.mxu1 %v113_v45  ;;  %v319_v4 = vld [vmem:[#allocation5 + $0x788] sm:$0xff]  ;;  %v321_v5 = vld [vmem:[#allocation5 + $0x798] sm:$0xff]  ;;  %v318_v6 = vld [vmem:[#allocation5 + $0x780] sm:$0xff] }
  0x4c   :  { %399 = vmatpush1.msra.mxu0 %v110_v46  ;;  %476 = vmatpush1.msra.mxu1 %v112_v47  ;;  %v320_v7 = vld [vmem:[#allocation5 + $0x790] sm:$0xff]  ;;  %v311_v8 = vld [vmem:[#allocation5 + $0x748] sm:$0xff]  ;;  %v313_v9 = vld [vmem:[#allocation5 + $0x758] sm:$0xff] }
  0x4d   :  { %400 = vmatprep.subr.mxu0 %v103_v48  ;;  %477 = vmatprep.subr.mxu1 %v105_v49  ;;  %v310_v10 = vld [vmem:[#allocation5 + $0x740] sm:$0xff]  ;;  %v312_v11 = vld [vmem:[#allocation5 + $0x750] sm:$0xff]  ;;  %v303_v12 = vld [vmem:[#allocation5 + $0x708] sm:$0xff] }
  0x4e   :  { %401 = vmatpush1.msra.mxu0 %v102_v50  ;;  %478 = vmatpush1.msra.mxu1 %v104_v51  ;;  %v305_v13 = vld [vmem:[#allocation5 + $0x718] sm:$0xff]  ;;  %v302_v14 = vld [vmem:[#allocation5 + $0x700] sm:$0xff]  ;;  %v304_v15 = vld [vmem:[#allocation5 + $0x710] sm:$0xff] }
  0x4f   :  { %402 = vmatprep.subr.mxu0 %v95_v52  ;;  %479 = vmatprep.subr.mxu1 %v97_v53  ;;  %v295_v16 = vld [vmem:[#allocation5 + $0x6c8] sm:$0xff]  ;;  %v297_v17 = vld [vmem:[#allocation5 + $0x6d8] sm:$0xff]  ;;  %v294_v18 = vld [vmem:[#allocation5 + $0x6c0] sm:$0xff] }
  0x50   :  { %403 = vmatpush1.msra.mxu0 %v94_v54  ;;  %480 = vmatpush1.msra.mxu1 %v96_v55  ;;  %v296_v19 = vld [vmem:[#allocation5 + $0x6d0] sm:$0xff]  ;;  %v287_v20 = vld [vmem:[#allocation5 + $0x688] sm:$0xff]  ;;  %v289_v21 = vld [vmem:[#allocation5 + $0x698] sm:$0xff] }
  0x51   :  { %404 = vmatprep.subr.mxu0 %v87_v56  ;;  %481 = vmatprep.subr.mxu1 %v89_v57  ;;  %v286_v22 = vld [vmem:[#allocation5 + $0x680] sm:$0xff]  ;;  %v288_v23 = vld [vmem:[#allocation5 + $0x690] sm:$0xff]  ;;  %v279_v24 = vld [vmem:[#allocation5 + $0x648] sm:$0xff] }
  0x52   :  { %405 = vmatpush1.msra.mxu0 %v86_v58  ;;  %482 = vmatpush1.msra.mxu1 %v88_v59  ;;  %v281_v25 = vld [vmem:[#allocation5 + $0x658] sm:$0xff]  ;;  %v278_v26 = vld [vmem:[#allocation5 + $0x640] sm:$0xff]  ;;  %v280_v27 = vld [vmem:[#allocation5 + $0x650] sm:$0xff] }
  0x53   :  { %406 = vmatprep.subr.mxu0 %v79_v60  ;;  %483 = vmatprep.subr.mxu1 %v81_v61  ;;  %v271_v28 = vld [vmem:[#allocation5 + $0x608] sm:$0xff]  ;;  %v273_v29 = vld [vmem:[#allocation5 + $0x618] sm:$0xff]  ;;  %v270_v30 = vld [vmem:[#allocation5 + $0x600] sm:$0xff] }
  0x54   :  { %407 = vmatpush1.msra.mxu0 %v78_v62  ;;  %484 = vmatpush1.msra.mxu1 %v80_v63  ;;  %v272_v31 = vld [vmem:[#allocation5 + $0x610] sm:$0xff]  ;;  %v263_v32 = vld [vmem:[#allocation5 + $0x5c8] sm:$0xff]  ;;  %v265_v33 = vld [vmem:[#allocation5 + $0x5d8] sm:$0xff] }
  0x55   :  { %408 = vmatprep.subr.mxu0 %v327_v0  ;;  %485 = vmatprep.subr.mxu1 %v329_v1  ;;  %v262_v34 = vld [vmem:[#allocation5 + $0x5c0] sm:$0xff]  ;;  %v264_v35 = vld [vmem:[#allocation5 + $0x5d0] sm:$0xff]  ;;  %v255_v36 = vld [vmem:[#allocation5 + $0x588] sm:$0xff] }
  0x56   :  { %409 = vmatpush2.msra.mxu0 %v326_v2  ;;  %486 = vmatpush2.msra.mxu1 %v328_v3  ;;  %v257_v37 = vld [vmem:[#allocation5 + $0x598] sm:$0xff]  ;;  %v254_v38 = vld [vmem:[#allocation5 + $0x580] sm:$0xff]  ;;  %v256_v39 = vld [vmem:[#allocation5 + $0x590] sm:$0xff] }
  0x57   :  { %410 = vmatprep.subr.mxu0 %v319_v4  ;;  %487 = vmatprep.subr.mxu1 %v321_v5  ;;  %v247_v40 = vld [vmem:[#allocation5 + $0x548] sm:$0xff]  ;;  %v249_v41 = vld [vmem:[#allocation5 + $0x558] sm:$0xff]  ;;  %v246_v42 = vld [vmem:[#allocation5 + $0x540] sm:$0xff] }
  0x58   :  { %411 = vmatpush2.msra.mxu0 %v318_v6  ;;  %488 = vmatpush2.msra.mxu1 %v320_v7  ;;  %v248_v43 = vld [vmem:[#allocation5 + $0x550] sm:$0xff]  ;;  %v239_v44 = vld [vmem:[#allocation5 + $0x508] sm:$0xff]  ;;  %v241_v45 = vld [vmem:[#allocation5 + $0x518] sm:$0xff] }
  0x59   :  { %412 = vmatprep.subr.mxu0 %v311_v8  ;;  %489 = vmatprep.subr.mxu1 %v313_v9  ;;  %v238_v46 = vld [vmem:[#allocation5 + $0x500] sm:$0xff]  ;;  %v240_v47 = vld [vmem:[#allocation5 + $0x510] sm:$0xff]  ;;  %v231_v48 = vld [vmem:[#allocation5 + $0x4c8] sm:$0xff] }
  0x5a   :  { %413 = vmatpush2.msra.mxu0 %v310_v10  ;;  %490 = vmatpush2.msra.mxu1 %v312_v11  ;;  %v233_v49 = vld [vmem:[#allocation5 + $0x4d8] sm:$0xff]  ;;  %v230_v50 = vld [vmem:[#allocation5 + $0x4c0] sm:$0xff]  ;;  %v232_v51 = vld [vmem:[#allocation5 + $0x4d0] sm:$0xff] }
  0x5b   :  { %414 = vmatprep.subr.mxu0 %v303_v12  ;;  %491 = vmatprep.subr.mxu1 %v305_v13  ;;  %v223_v52 = vld [vmem:[#allocation5 + $0x488] sm:$0xff]  ;;  %v225_v53 = vld [vmem:[#allocation5 + $0x498] sm:$0xff]  ;;  %v222_v54 = vld [vmem:[#allocation5 + $0x480] sm:$0xff] }
  0x5c   :  { %415 = vmatpush2.msra.mxu0 %v302_v14  ;;  %492 = vmatpush2.msra.mxu1 %v304_v15  ;;  %v224_v55 = vld [vmem:[#allocation5 + $0x490] sm:$0xff]  ;;  %v215_v56 = vld [vmem:[#allocation5 + $0x448] sm:$0xff]  ;;  %v217_v57 = vld [vmem:[#allocation5 + $0x458] sm:$0xff] }
  0x5d   :  { %416 = vmatprep.subr.mxu0 %v295_v16  ;;  %493 = vmatprep.subr.mxu1 %v297_v17  ;;  %v214_v58 = vld [vmem:[#allocation5 + $0x440] sm:$0xff]  ;;  %v216_v59 = vld [vmem:[#allocation5 + $0x450] sm:$0xff]  ;;  %v207_v60 = vld [vmem:[#allocation5 + $0x408] sm:$0xff] }
  0x5e   :  { %417 = vmatpush2.msra.mxu0 %v294_v18  ;;  %494 = vmatpush2.msra.mxu1 %v296_v19  ;;  %v209_v61 = vld [vmem:[#allocation5 + $0x418] sm:$0xff]  ;;  %v206_v62 = vld [vmem:[#allocation5 + $0x400] sm:$0xff]  ;;  %v1569_v63 = vld [vmem:[#allocation2 + $0x8] sm:$0xff] }
  0x5f   :  { %418 = vmatprep.subr.mxu0 %v287_v20  ;;  %495 = vmatprep.subr.mxu1 %v289_v21  ;;  %v208_v0 = vld [vmem:[#allocation5 + $0x410] sm:$0xff]  ;;  %v1571_v1 = vld [vmem:[#allocation2] sm:$0xff]  ;;  %v203_v2 = vld [vmem:[#allocation5 + $0x3e8] sm:$0xff] }
  0x60   :  { %419 = vmatpush2.msra.mxu0 %v286_v22  ;;  %496 = vmatpush2.msra.mxu1 %v288_v23  ;;  %v205_v3 = vld [vmem:[#allocation5 + $0x3f8] sm:$0xff]  ;;  %v202_v4 = vld [vmem:[#allocation5 + $0x3e0] sm:$0xff]  ;;  %v204_v5 = vld [vmem:[#allocation5 + $0x3f0] sm:$0xff] }
  0x61   :  { %420 = vmatprep.subr.mxu0 %v279_v24  ;;  %497 = vmatprep.subr.mxu1 %v281_v25  ;;  %v195_v6 = vld [vmem:[#allocation5 + $0x3a8] sm:$0xff]  ;;  %v197_v7 = vld [vmem:[#allocation5 + $0x3b8] sm:$0xff]  ;;  %v194_v8 = vld [vmem:[#allocation5 + $0x3a0] sm:$0xff] }
  0x62   :  { %421 = vmatpush2.msra.mxu0 %v278_v26  ;;  %498 = vmatpush2.msra.mxu1 %v280_v27  ;;  %v196_v9 = vld [vmem:[#allocation5 + $0x3b0] sm:$0xff]  ;;  %v187_v10 = vld [vmem:[#allocation5 + $0x368] sm:$0xff]  ;;  %v189_v11 = vld [vmem:[#allocation5 + $0x378] sm:$0xff] }
  0x63   :  { %422 = vmatprep.subr.mxu0 %v271_v28  ;;  %499 = vmatprep.subr.mxu1 %v273_v29  ;;  %v186_v12 = vld [vmem:[#allocation5 + $0x360] sm:$0xff]  ;;  %v188_v13 = vld [vmem:[#allocation5 + $0x370] sm:$0xff]  ;;  %v179_v14 = vld [vmem:[#allocation5 + $0x328] sm:$0xff] }
  0x64   :  { %423 = vmatpush2.msra.mxu0 %v270_v30  ;;  %500 = vmatpush2.msra.mxu1 %v272_v31  ;;  %v181_v15 = vld [vmem:[#allocation5 + $0x338] sm:$0xff]  ;;  %v178_v16 = vld [vmem:[#allocation5 + $0x320] sm:$0xff]  ;;  %v180_v17 = vld [vmem:[#allocation5 + $0x330] sm:$0xff] }
  0x65   :  { %424 = vmatprep.subr.mxu0 %v263_v32  ;;  %501 = vmatprep.subr.mxu1 %v265_v33  ;;  %v171_v18 = vld [vmem:[#allocation5 + $0x2e8] sm:$0xff]  ;;  %v173_v19 = vld [vmem:[#allocation5 + $0x2f8] sm:$0xff]  ;;  %v170_v20 = vld [vmem:[#allocation5 + $0x2e0] sm:$0xff] }
  0x66   :  { %425 = vmatpush2.msra.mxu0 %v262_v34  ;;  %502 = vmatpush2.msra.mxu1 %v264_v35  ;;  %v172_v21 = vld [vmem:[#allocation5 + $0x2f0] sm:$0xff]  ;;  %v163_v22 = vld [vmem:[#allocation5 + $0x2a8] sm:$0xff]  ;;  %v165_v23 = vld [vmem:[#allocation5 + $0x2b8] sm:$0xff] }
  0x67   :  { %426 = vmatprep.subr.mxu0 %v255_v36  ;;  %503 = vmatprep.subr.mxu1 %v257_v37  ;;  %v162_v24 = vld [vmem:[#allocation5 + $0x2a0] sm:$0xff]  ;;  %v164_v25 = vld [vmem:[#allocation5 + $0x2b0] sm:$0xff]  ;;  %v155_v26 = vld [vmem:[#allocation5 + $0x268] sm:$0xff] }
  0x68   :  { %427 = vmatpush2.msra.mxu0 %v254_v38  ;;  %504 = vmatpush2.msra.mxu1 %v256_v39  ;;  %v157_v27 = vld [vmem:[#allocation5 + $0x278] sm:$0xff]  ;;  %v154_v28 = vld [vmem:[#allocation5 + $0x260] sm:$0xff]  ;;  %v156_v29 = vld [vmem:[#allocation5 + $0x270] sm:$0xff] }
  0x69   :  { %428 = vmatprep.subr.mxu0 %v247_v40  ;;  %505 = vmatprep.subr.mxu1 %v249_v41  ;;  %v147_v30 = vld [vmem:[#allocation5 + $0x228] sm:$0xff]  ;;  %v149_v31 = vld [vmem:[#allocation5 + $0x238] sm:$0xff]  ;;  %v146_v32 = vld [vmem:[#allocation5 + $0x220] sm:$0xff] }
  0x6a   :  { %429 = vmatpush2.msra.mxu0 %v246_v42  ;;  %506 = vmatpush2.msra.mxu1 %v248_v43  ;;  %v148_v33 = vld [vmem:[#allocation5 + $0x230] sm:$0xff]  ;;  %v139_v34 = vld [vmem:[#allocation5 + $0x1e8] sm:$0xff]  ;;  %v141_v35 = vld [vmem:[#allocation5 + $0x1f8] sm:$0xff] }
  0x6b   :  { %430 = vmatprep.subr.mxu0 %v239_v44  ;;  %507 = vmatprep.subr.mxu1 %v241_v45  ;;  %v138_v36 = vld [vmem:[#allocation5 + $0x1e0] sm:$0xff]  ;;  %v140_v37 = vld [vmem:[#allocation5 + $0x1f0] sm:$0xff]  ;;  %v131_v38 = vld [vmem:[#allocation5 + $0x1a8] sm:$0xff] }
  0x6c   :  { %431 = vmatpush2.msra.mxu0 %v238_v46  ;;  %508 = vmatpush2.msra.mxu1 %v240_v47  ;;  %v133_v39 = vld [vmem:[#allocation5 + $0x1b8] sm:$0xff]  ;;  %v130_v40 = vld [vmem:[#allocation5 + $0x1a0] sm:$0xff]  ;;  %v132_v41 = vld [vmem:[#allocation5 + $0x1b0] sm:$0xff] }
  0x6d   :  { %432 = vmatprep.subr.mxu0 %v231_v48  ;;  %509 = vmatprep.subr.mxu1 %v233_v49  ;;  %v123_v42 = vld [vmem:[#allocation5 + $0x168] sm:$0xff]  ;;  %v125_v43 = vld [vmem:[#allocation5 + $0x178] sm:$0xff]  ;;  %v122_v44 = vld [vmem:[#allocation5 + $0x160] sm:$0xff] }
  0x6e   :  { %433 = vmatpush2.msra.mxu0 %v230_v50  ;;  %510 = vmatpush2.msra.mxu1 %v232_v51  ;;  %v124_v45 = vld [vmem:[#allocation5 + $0x170] sm:$0xff]  ;;  %v115_v46 = vld [vmem:[#allocation5 + $0x128] sm:$0xff]  ;;  %v117_v47 = vld [vmem:[#allocation5 + $0x138] sm:$0xff] }
  0x6f   :  { %434 = vmatprep.subr.mxu0 %v223_v52  ;;  %511 = vmatprep.subr.mxu1 %v225_v53  ;;  %v114_v48 = vld [vmem:[#allocation5 + $0x120] sm:$0xff]  ;;  %v116_v49 = vld [vmem:[#allocation5 + $0x130] sm:$0xff]  ;;  %v107_v50 = vld [vmem:[#allocation5 + $0xe8] sm:$0xff] }
  0x70   :  { %435 = vmatpush2.msra.mxu0 %v222_v54  ;;  %512 = vmatpush2.msra.mxu1 %v224_v55  ;;  %v109_v51 = vld [vmem:[#allocation5 + $0xf8] sm:$0xff]  ;;  %v106_v52 = vld [vmem:[#allocation5 + $0xe0] sm:$0xff]  ;;  %v108_v53 = vld [vmem:[#allocation5 + $0xf0] sm:$0xff] }
  0x71   :  { %436 = vmatprep.subr.mxu0 %v215_v56  ;;  %513 = vmatprep.subr.mxu1 %v217_v57  ;;  %v99_v54 = vld [vmem:[#allocation5 + $0xa8] sm:$0xff]  ;;  %v101_v55 = vld [vmem:[#allocation5 + $0xb8] sm:$0xff]  ;;  %v98_v56 = vld [vmem:[#allocation5 + $0xa0] sm:$0xff] }
  0x72   :  { %437 = vmatpush2.msra.mxu0 %v214_v58  ;;  %514 = vmatpush2.msra.mxu1 %v216_v59  ;;  %v100_v57 = vld [vmem:[#allocation5 + $0xb0] sm:$0xff]  ;;  %v91_v58 = vld [vmem:[#allocation5 + $0x68] sm:$0xff]  ;;  %v93_v59 = vld [vmem:[#allocation5 + $0x78] sm:$0xff] }
  0x73   :  { %438 = vmatprep.subr.mxu0 %v207_v60  ;;  %515 = vmatprep.subr.mxu1 %v209_v61  ;;  %v90_v60 = vld [vmem:[#allocation5 + $0x60] sm:$0xff]  ;;  %v92_v61 = vld [vmem:[#allocation5 + $0x70] sm:$0xff] }
  0x74   :  { %439 = vmatpush2.msra.mxu0 %v206_v62  ;;  %440 = vmatprep.mubr.f32.mxu0 %v1569_v63  ;;  %v83_v62 = vld [vmem:[#allocation5 + $0x28] sm:$0xff] }
  0x75   :  { %516 = vmatpush2.msra.mxu1 %v208_v0  ;;  %517 = vmatprep.mubr.f32.mxu1 %v1569_v63  ;;  %v85_v0 = vld [vmem:[#allocation5 + $0x38] sm:$0xff] }
  0x76   :  { %441 = vmatmul.mubr.f32.vlgmr.msra.gmra.mxu0 %v1571_v1  ;;  %518 = vmatmul.mubr.f32.vlgmr.msra.gmra.mxu1 %v1571_v1 }
  0x77   :  { %530 = vmatprep.subr.mxu0 %v203_v2  ;;  %607 = vmatprep.subr.mxu1 %v205_v3  ;;  %v82_v2 = vld [vmem:[#allocation5 + $0x20] sm:$0xff]  ;;  %v84_v3 = vld [vmem:[#allocation5 + $0x30] sm:$0xff] }
  0x78   :  { %531 = vmatpush1.msra.mxu0 %v202_v4  ;;  %608 = vmatpush1.msra.mxu1 %v204_v5  ;;  %v331_v4 = vld [vmem:[#allocation5 + $0x7e8] sm:$0xff]  ;;  %v333_v5 = vld [vmem:[#allocation5 + $0x7f8] sm:$0xff] }
  0x79   :  { %532 = vmatprep.subr.mxu0 %v195_v6  ;;  %609 = vmatprep.subr.mxu1 %v197_v7  ;;  %v330_v6 = vld [vmem:[#allocation5 + $0x7e0] sm:$0xff]  ;;  %v332_v7 = vld [vmem:[#allocation5 + $0x7f0] sm:$0xff] }
  0x7a   :  { %533 = vmatpush1.msra.mxu0 %v194_v8  ;;  %610 = vmatpush1.msra.mxu1 %v196_v9  ;;  %v323_v8 = vld [vmem:[#allocation5 + $0x7a8] sm:$0xff]  ;;  %v325_v9 = vld [vmem:[#allocation5 + $0x7b8] sm:$0xff] }
  0x7b   :  { %534 = vmatprep.subr.mxu0 %v187_v10  ;;  %611 = vmatprep.subr.mxu1 %v189_v11  ;;  %v322_v10 = vld [vmem:[#allocation5 + $0x7a0] sm:$0xff]  ;;  %v324_v11 = vld [vmem:[#allocation5 + $0x7b0] sm:$0xff] }
  0x7c   :  { %535 = vmatpush1.msra.mxu0 %v186_v12  ;;  %612 = vmatpush1.msra.mxu1 %v188_v13  ;;  %v315_v12 = vld [vmem:[#allocation5 + $0x768] sm:$0xff]  ;;  %v317_v13 = vld [vmem:[#allocation5 + $0x778] sm:$0xff] }
  0x7d   :  { %536 = vmatprep.subr.mxu0 %v179_v14  ;;  %613 = vmatprep.subr.mxu1 %v181_v15  ;;  %v314_v14 = vld [vmem:[#allocation5 + $0x760] sm:$0xff]  ;;  %v316_v15 = vld [vmem:[#allocation5 + $0x770] sm:$0xff] }
  0x7e   :  { %537 = vmatpush1.msra.mxu0 %v178_v16  ;;  %614 = vmatpush1.msra.mxu1 %v180_v17  ;;  %v1577_v16 = vld [vmem:[#allocation2 + $0x18] sm:$0xff]  ;;  %v307_v17 = vld [vmem:[#allocation5 + $0x728] sm:$0xff] }
  0x7f   :  { %538 = vmatprep.subr.mxu0 %v171_v18  ;;  %615 = vmatprep.subr.mxu1 %v173_v19  ;;  %v309_v18 = vld [vmem:[#allocation5 + $0x738] sm:$0xff]  ;;  %v1579_v19 = vld [vmem:[#allocation2 + $0x10] sm:$0xff] }
  0x80   :  { %539 = vmatpush1.msra.mxu0 %v170_v20  ;;  %616 = vmatpush1.msra.mxu1 %v172_v21  ;;  %v306_v20 = vld [vmem:[#allocation5 + $0x720] sm:$0xff]  ;;  %v308_v21 = vld [vmem:[#allocation5 + $0x730] sm:$0xff] }
  0x81   :  { %540 = vmatprep.subr.mxu0 %v163_v22  ;;  %617 = vmatprep.subr.mxu1 %v165_v23  ;;  %v299_v22 = vld [vmem:[#allocation5 + $0x6e8] sm:$0xff]  ;;  %v301_v23 = vld [vmem:[#allocation5 + $0x6f8] sm:$0xff] }
  0x82   :  { %541 = vmatpush1.msra.mxu0 %v162_v24  ;;  %618 = vmatpush1.msra.mxu1 %v164_v25  ;;  %v298_v24 = vld [vmem:[#allocation5 + $0x6e0] sm:$0xff]  ;;  %v300_v25 = vld [vmem:[#allocation5 + $0x6f0] sm:$0xff] }
  0x83   :  { %542 = vmatprep.subr.mxu0 %v155_v26  ;;  %619 = vmatprep.subr.mxu1 %v157_v27  ;;  %v291_v26 = vld [vmem:[#allocation5 + $0x6a8] sm:$0xff]  ;;  %v293_v27 = vld [vmem:[#allocation5 + $0x6b8] sm:$0xff] }
  0x84   :  { %543 = vmatpush1.msra.mxu0 %v154_v28  ;;  %620 = vmatpush1.msra.mxu1 %v156_v29  ;;  %v290_v28 = vld [vmem:[#allocation5 + $0x6a0] sm:$0xff]  ;;  %v292_v29 = vld [vmem:[#allocation5 + $0x6b0] sm:$0xff] }
  0x85   :  { %544 = vmatprep.subr.mxu0 %v147_v30  ;;  %621 = vmatprep.subr.mxu1 %v149_v31  ;;  %v283_v30 = vld [vmem:[#allocation5 + $0x668] sm:$0xff]  ;;  %v285_v31 = vld [vmem:[#allocation5 + $0x678] sm:$0xff] }
  0x86   :  { %545 = vmatpush1.msra.mxu0 %v146_v32  ;;  %622 = vmatpush1.msra.mxu1 %v148_v33  ;;  %v282_v32 = vld [vmem:[#allocation5 + $0x660] sm:$0xff]  ;;  %v284_v33 = vld [vmem:[#allocation5 + $0x670] sm:$0xff] }
  0x87   :  { %546 = vmatprep.subr.mxu0 %v139_v34  ;;  %623 = vmatprep.subr.mxu1 %v141_v35  ;;  %v275_v34 = vld [vmem:[#allocation5 + $0x628] sm:$0xff]  ;;  %v277_v35 = vld [vmem:[#allocation5 + $0x638] sm:$0xff] }
  0x88   :  { %547 = vmatpush1.msra.mxu0 %v138_v36  ;;  %624 = vmatpush1.msra.mxu1 %v140_v37  ;;  %v274_v36 = vld [vmem:[#allocation5 + $0x620] sm:$0xff]  ;;  %v276_v37 = vld [vmem:[#allocation5 + $0x630] sm:$0xff] }
  0x89   :  { %548 = vmatprep.subr.mxu0 %v131_v38  ;;  %625 = vmatprep.subr.mxu1 %v133_v39  ;;  %v267_v38 = vld [vmem:[#allocation5 + $0x5e8] sm:$0xff]  ;;  %v269_v39 = vld [vmem:[#allocation5 + $0x5f8] sm:$0xff] }
  0x8a   :  { %549 = vmatpush1.msra.mxu0 %v130_v40  ;;  %626 = vmatpush1.msra.mxu1 %v132_v41  ;;  %v266_v40 = vld [vmem:[#allocation5 + $0x5e0] sm:$0xff]  ;;  %v268_v41 = vld [vmem:[#allocation5 + $0x5f0] sm:$0xff] }
  0x8b   :  { %550 = vmatprep.subr.mxu0 %v123_v42  ;;  %627 = vmatprep.subr.mxu1 %v125_v43  ;;  %v259_v42 = vld [vmem:[#allocation5 + $0x5a8] sm:$0xff]  ;;  %v261_v43 = vld [vmem:[#allocation5 + $0x5b8] sm:$0xff] }
  0x8c   :  { %551 = vmatpush1.msra.mxu0 %v122_v44  ;;  %628 = vmatpush1.msra.mxu1 %v124_v45  ;;  %v258_v44 = vld [vmem:[#allocation5 + $0x5a0] sm:$0xff]  ;;  %v260_v45 = vld [vmem:[#allocation5 + $0x5b0] sm:$0xff] }
  0x8d   :  { %552 = vmatprep.subr.mxu0 %v115_v46  ;;  %629 = vmatprep.subr.mxu1 %v117_v47  ;;  %v251_v46 = vld [vmem:[#allocation5 + $0x568] sm:$0xff]  ;;  %v253_v47 = vld [vmem:[#allocation5 + $0x578] sm:$0xff] }
  0x8e   :  { %553 = vmatpush1.msra.mxu0 %v114_v48  ;;  %630 = vmatpush1.msra.mxu1 %v116_v49  ;;  %v250_v48 = vld [vmem:[#allocation5 + $0x560] sm:$0xff]  ;;  %v252_v49 = vld [vmem:[#allocation5 + $0x570] sm:$0xff] }
  0x8f   :  { %554 = vmatprep.subr.mxu0 %v107_v50  ;;  %631 = vmatprep.subr.mxu1 %v109_v51  ;;  %v243_v50 = vld [vmem:[#allocation5 + $0x528] sm:$0xff]  ;;  %v245_v51 = vld [vmem:[#allocation5 + $0x538] sm:$0xff] }
  0x90   :  { %555 = vmatpush1.msra.mxu0 %v106_v52  ;;  %632 = vmatpush1.msra.mxu1 %v108_v53  ;;  %v242_v52 = vld [vmem:[#allocation5 + $0x520] sm:$0xff]  ;;  %v244_v53 = vld [vmem:[#allocation5 + $0x530] sm:$0xff] }
  0x91   :  { %556 = vmatprep.subr.mxu0 %v99_v54  ;;  %633 = vmatprep.subr.mxu1 %v101_v55  ;;  %v235_v54 = vld [vmem:[#allocation5 + $0x4e8] sm:$0xff]  ;;  %v237_v55 = vld [vmem:[#allocation5 + $0x4f8] sm:$0xff] }
  0x92   :  { %557 = vmatpush1.msra.mxu0 %v98_v56  ;;  %634 = vmatpush1.msra.mxu1 %v100_v57  ;;  %v234_v56 = vld [vmem:[#allocation5 + $0x4e0] sm:$0xff]  ;;  %v236_v57 = vld [vmem:[#allocation5 + $0x4f0] sm:$0xff] }
  0x93   :  { %558 = vmatprep.subr.mxu0 %v91_v58  ;;  %635 = vmatprep.subr.mxu1 %v93_v59  ;;  %v227_v58 = vld [vmem:[#allocation5 + $0x4a8] sm:$0xff]  ;;  %v229_v59 = vld [vmem:[#allocation5 + $0x4b8] sm:$0xff] }
  0x94   :  { %559 = vmatpush1.msra.mxu0 %v90_v60  ;;  %636 = vmatpush1.msra.mxu1 %v92_v61  ;;  %v226_v60 = vld [vmem:[#allocation5 + $0x4a0] sm:$0xff]  ;;  %v228_v61 = vld [vmem:[#allocation5 + $0x4b0] sm:$0xff] }
  0x95   :  { %560 = vmatprep.subr.mxu0 %v83_v62  ;;  %637 = vmatprep.subr.mxu1 %v85_v0  ;;  %v219_v62 = vld [vmem:[#allocation5 + $0x468] sm:$0xff]  ;;  %v221_v0 = vld [vmem:[#allocation5 + $0x478] sm:$0xff] }
  0x96   :  { %561 = vmatpush1.msra.mxu0 %v82_v2  ;;  %638 = vmatpush1.msra.mxu1 %v84_v3  ;;  %v218_v2 = vld [vmem:[#allocation5 + $0x460] sm:$0xff]  ;;  %v220_v3 = vld [vmem:[#allocation5 + $0x470] sm:$0xff] }
  0x97   :  { %562 = vmatprep.subr.mxu0 %v331_v4  ;;  %639 = vmatprep.subr.mxu1 %v333_v5  ;;  %v211_v4 = vld [vmem:[#allocation5 + $0x428] sm:$0xff]  ;;  %v213_v5 = vld [vmem:[#allocation5 + $0x438] sm:$0xff] }
  0x98   :  { %563 = vmatpush2.msra.mxu0 %v330_v6  ;;  %640 = vmatpush2.msra.mxu1 %v332_v7  ;;  %v210_v6 = vld [vmem:[#allocation5 + $0x420] sm:$0xff]  ;;  %v212_v7 = vld [vmem:[#allocation5 + $0x430] sm:$0xff] }
  0x99   :  { %564 = vmatprep.subr.mxu0 %v323_v8  ;;  %641 = vmatprep.subr.mxu1 %v325_v9  ;;  %v795_v8 = vld [vmem:[#allocation8 + $0xf8] sm:$0xff] }
  0x9a   :  { %565 = vmatpush2.msra.mxu0 %v322_v10  ;;  %642 = vmatpush2.msra.mxu1 %v324_v11  ;;  %v859_v9 = vld [vmem:[#allocation8 + $0x2f8] sm:$0xff]  ;;  %v794_v10 = vld [vmem:[#allocation8 + $0xf0] sm:$0xff] }
  0x9b   :  { %566 = vmatprep.subr.mxu0 %v315_v12  ;;  %643 = vmatprep.subr.mxu1 %v317_v13  ;;  %v858_v11 = vld [vmem:[#allocation8 + $0x2f0] sm:$0xff]  ;;  %v793_v12 = vld [vmem:[#allocation8 + $0xe8] sm:$0xff] }
  0x9c   :  { %567 = vmatpush2.msra.mxu0 %v314_v14  ;;  %644 = vmatpush2.msra.mxu1 %v316_v15  ;;  %v857_v13 = vld [vmem:[#allocation8 + $0x2e8] sm:$0xff]  ;;  %v792_v14 = vld [vmem:[#allocation8 + $0xe0] sm:$0xff]  ;;  %v791_v15 = vld [vmem:[#allocation8 + $0xd8] sm:$0xff] }
  0x9d   :  { %446 = vmatprep.mubr.f32.mxu0 %v1577_v16  ;;  %568 = vmatprep.subr.mxu0 %v307_v17  ;;  %v790_v17 = vld [vmem:[#allocation8 + $0xd0] sm:$0xff] }
  0x9e   :  { %645 = vmatprep.subr.mxu1 %v309_v18  ;;  %447 = vmatmul.mubr.f32.gmra.mxu0 %v1579_v19  ;;  %v854_v18 = vld [vmem:[#allocation8 + $0x2d0] sm:$0xff] }
  0x9f   :  { %569 = vmatpush2.msra.mxu0 %v306_v20  ;;  %646 = vmatpush2.msra.mxu1 %v308_v21  ;;  %v853_v20 = vld [vmem:[#allocation8 + $0x2c8] sm:$0xff]  ;;  %v788_v21 = vld [vmem:[#allocation8 + $0xc0] sm:$0xff] }
  0xa0   :  { %523 = vmatprep.mubr.f32.mxu1 %v1577_v16  ;;  %570 = vmatprep.subr.mxu0 %v299_v22  ;;  %v852_v22 = vld [vmem:[#allocation8 + $0x2c0] sm:$0xff] }
  0xa1   :  { %647 = vmatprep.subr.mxu1 %v301_v23  ;;  %524 = vmatmul.mubr.f32.gmra.mxu1 %v1579_v19  ;;  %v787_v23 = vld [vmem:[#allocation8 + $0xb8] sm:$0xff] }
  0xa2   :  { %571 = vmatpush2.msra.mxu0 %v298_v24  ;;  %648 = vmatpush2.msra.mxu1 %v300_v25  ;;  %v851_v24 = vld [vmem:[#allocation8 + $0x2b8] sm:$0xff]  ;;  %v850_v25 = vld [vmem:[#allocation8 + $0x2b0] sm:$0xff] }
  0xa3   :  { %572 = vmatprep.subr.mxu0 %v291_v26  ;;  %649 = vmatprep.subr.mxu1 %v293_v27  ;;  %v785_v26 = vld [vmem:[#allocation8 + $0xa8] sm:$0xff] }
  0xa4   :  { %573 = vmatpush2.msra.mxu0 %v290_v28  ;;  %650 = vmatpush2.msra.mxu1 %v292_v29  ;;  %v849_v27 = vld [vmem:[#allocation8 + $0x2a8] sm:$0xff]  ;;  %v784_v28 = vld [vmem:[#allocation8 + $0xa0] sm:$0xff] }
  0xa5   :  { %574 = vmatprep.subr.mxu0 %v283_v30  ;;  %651 = vmatprep.subr.mxu1 %v285_v31  ;;  %v848_v29 = vld [vmem:[#allocation8 + $0x2a0] sm:$0xff]  ;;  %v783_v30 = vld [vmem:[#allocation8 + $0x98] sm:$0xff] }
  0xa6   :  { %575 = vmatpush2.msra.mxu0 %v282_v32  ;;  %652 = vmatpush2.msra.mxu1 %v284_v33  ;;  %v847_v31 = vld [vmem:[#allocation8 + $0x298] sm:$0xff]  ;;  %v782_v32 = vld [vmem:[#allocation8 + $0x90] sm:$0xff] }
  0xa7   :  { %576 = vmatprep.subr.mxu0 %v275_v34  ;;  %653 = vmatprep.subr.mxu1 %v277_v35  ;;  %v846_v33 = vld [vmem:[#allocation8 + $0x290] sm:$0xff]  ;;  %v781_v34 = vld [vmem:[#allocation8 + $0x88] sm:$0xff] }
  0xa8   :  { %577 = vmatpush2.msra.mxu0 %v274_v36  ;;  %654 = vmatpush2.msra.mxu1 %v276_v37  ;;  %v845_v35 = vld [vmem:[#allocation8 + $0x288] sm:$0xff]  ;;  %v780_v36 = vld [vmem:[#allocation8 + $0x80] sm:$0xff] }
  0xa9   :  { %578 = vmatprep.subr.mxu0 %v267_v38  ;;  %655 = vmatprep.subr.mxu1 %v269_v39  ;;  %v844_v37 = vld [vmem:[#allocation8 + $0x280] sm:$0xff]  ;;  %v779_v38 = vld [vmem:[#allocation8 + $0x78] sm:$0xff] }
  0xaa   :  { %579 = vmatpush2.msra.mxu0 %v266_v40  ;;  %656 = vmatpush2.msra.mxu1 %v268_v41  ;;  %v843_v39 = vld [vmem:[#allocation8 + $0x278] sm:$0xff]  ;;  %v778_v40 = vld [vmem:[#allocation8 + $0x70] sm:$0xff] }
  0xab   :  { %580 = vmatprep.subr.mxu0 %v259_v42  ;;  %657 = vmatprep.subr.mxu1 %v261_v43  ;;  %v842_v41 = vld [vmem:[#allocation8 + $0x270] sm:$0xff]  ;;  %v777_v42 = vld [vmem:[#allocation8 + $0x68] sm:$0xff] }
  0xac   :  { %581 = vmatpush2.msra.mxu0 %v258_v44  ;;  %658 = vmatpush2.msra.mxu1 %v260_v45  ;;  %v841_v43 = vld [vmem:[#allocation8 + $0x268] sm:$0xff]  ;;  %v776_v44 = vld [vmem:[#allocation8 + $0x60] sm:$0xff] }
  0xad   :  { %582 = vmatprep.subr.mxu0 %v251_v46  ;;  %659 = vmatprep.subr.mxu1 %v253_v47  ;;  %v840_v45 = vld [vmem:[#allocation8 + $0x260] sm:$0xff]  ;;  %v775_v46 = vld [vmem:[#allocation8 + $0x58] sm:$0xff] }
  0xae   :  { %583 = vmatpush2.msra.mxu0 %v250_v48  ;;  %660 = vmatpush2.msra.mxu1 %v252_v49  ;;  %v839_v47 = vld [vmem:[#allocation8 + $0x258] sm:$0xff]  ;;  %v774_v48 = vld [vmem:[#allocation8 + $0x50] sm:$0xff] }
  0xaf   :  { %584 = vmatprep.subr.mxu0 %v243_v50  ;;  %661 = vmatprep.subr.mxu1 %v245_v51  ;;  %v838_v49 = vld [vmem:[#allocation8 + $0x250] sm:$0xff]  ;;  %v773_v50 = vld [vmem:[#allocation8 + $0x48] sm:$0xff] }
  0xb0   :  { %585 = vmatpush2.msra.mxu0 %v242_v52  ;;  %662 = vmatpush2.msra.mxu1 %v244_v53  ;;  %v837_v51 = vld [vmem:[#allocation8 + $0x248] sm:$0xff]  ;;  %v772_v52 = vld [vmem:[#allocation8 + $0x40] sm:$0xff] }
  0xb1   :  { %586 = vmatprep.subr.mxu0 %v235_v54  ;;  %663 = vmatprep.subr.mxu1 %v237_v55  ;;  %v836_v53 = vld [vmem:[#allocation8 + $0x240] sm:$0xff]  ;;  %v771_v54 = vld [vmem:[#allocation8 + $0x38] sm:$0xff] }
  0xb2   :  { %587 = vmatpush2.msra.mxu0 %v234_v56  ;;  %664 = vmatpush2.msra.mxu1 %v236_v57  ;;  %v835_v55 = vld [vmem:[#allocation8 + $0x238] sm:$0xff]  ;;  %v770_v56 = vld [vmem:[#allocation8 + $0x30] sm:$0xff] }
  0xb3   :  { %588 = vmatprep.subr.mxu0 %v227_v58  ;;  %665 = vmatprep.subr.mxu1 %v229_v59  ;;  %v834_v57 = vld [vmem:[#allocation8 + $0x230] sm:$0xff]  ;;  %v769_v58 = vld [vmem:[#allocation8 + $0x28] sm:$0xff] }
  0xb4   :  { %589 = vmatpush2.msra.mxu0 %v226_v60  ;;  %666 = vmatpush2.msra.mxu1 %v228_v61  ;;  %v833_v59 = vld [vmem:[#allocation8 + $0x228] sm:$0xff]  ;;  %v768_v60 = vld [vmem:[#allocation8 + $0x20] sm:$0xff] }
  0xb5   :  { %590 = vmatprep.subr.mxu0 %v219_v62  ;;  %667 = vmatprep.subr.mxu1 %v221_v0  ;;  %v832_v61 = vld [vmem:[#allocation8 + $0x220] sm:$0xff]  ;;  %v767_v62 = vld [vmem:[#allocation8 + $0x18] sm:$0xff] }
  0xb6   :  { %591 = vmatpush2.msra.mxu0 %v218_v2  ;;  %668 = vmatpush2.msra.mxu1 %v220_v3  ;;  %v831_v0 = vld [vmem:[#allocation8 + $0x218] sm:$0xff]  ;;  %v766_v2 = vld [vmem:[#allocation8 + $0x10] sm:$0xff] }
  0xb7   :  { %592 = vmatprep.subr.mxu0 %v211_v4  ;;  %669 = vmatprep.subr.mxu1 %v213_v5  ;;  %v830_v3 = vld [vmem:[#allocation8 + $0x210] sm:$0xff]  ;;  %v765_v4 = vld [vmem:[#allocation8 + $0x8] sm:$0xff] }
  0xb8   :  { %593 = vmatpush2.msra.mxu0 %v210_v6  ;;  %594 = vmatprep.mubr.f32.mxu0 %v1569_v63  ;;  %v829_v5 = vld [vmem:[#allocation8 + $0x208] sm:$0xff]  ;;  %v764_v6 = vld [vmem:[#allocation8] sm:$0xff] }
  0xb9   :  { %670 = vmatpush2.msra.mxu1 %v212_v7  ;;  %671 = vmatprep.mubr.f32.mxu1 %v1569_v63  ;;  %v856_v63 = vld [vmem:[#allocation8 + $0x2e0] sm:$0xff] }
  0xba   :  { %595 = vmatmul.mubr.f32.vlgmr.msra.gmra.mxu0 %v1571_v1  ;;  %672 = vmatmul.mubr.f32.vlgmr.msra.gmra.mxu1 %v1571_v1  ;;  %v855_v1 = vld [vmem:[#allocation8 + $0x2d8] sm:$0xff]  ;;  %v828_v7 = vld [vmem:[#allocation8 + $0x200] sm:$0xff] }
  0xbb   :  { %600 = vmatprep.mubr.f32.mxu0 %v1577_v16  ;;  %677 = vmatprep.mubr.f32.mxu1 %v1577_v16  ;;  %v789_v16 = vld [vmem:[#allocation8 + $0xc8] sm:$0xff] }
  0xbc   :  { %1032 = vmatprep.subr.mxu0 %v795_v8  ;;  %1109 = vmatprep.subr.mxu1 %v859_v9  ;;  %v827_v8 = vld [vmem:[#allocation8 + $0x1f8] sm:$0xff] }
  0xbd   :  { %1033 = vmatpush1.msra.mxu0 %v794_v10  ;;  %1110 = vmatpush1.msra.mxu1 %v858_v11  ;;  %v891_v9 = vld [vmem:[#allocation8 + $0x3f8] sm:$0xff]  ;;  %v826_v10 = vld [vmem:[#allocation8 + $0x1f0] sm:$0xff] }
  0xbe   :  { %601 = vmatmul.mubr.f32.gmra.mxu0 %v1579_v19  ;;  %678 = vmatmul.mubr.f32.gmra.mxu1 %v1579_v19  ;;  %v786_v19 = vld [vmem:[#allocation8 + $0xb0] sm:$0xff] }
  0xbf   :  { %1034 = vmatprep.subr.mxu0 %v793_v12  ;;  %1111 = vmatprep.subr.mxu1 %v857_v13  ;;  %v890_v11 = vld [vmem:[#allocation8 + $0x3f0] sm:$0xff]  ;;  %v825_v12 = vld [vmem:[#allocation8 + $0x1e8] sm:$0xff] }
  0xc0   :  { %1035 = vmatpush1.msra.mxu0 %v792_v14  ;;  %1112 = vmatpush1.msra.mxu1 %v856_v63  ;;  %v889_v13 = vld [vmem:[#allocation8 + $0x3e8] sm:$0xff]  ;;  %v824_v14 = vld [vmem:[#allocation8 + $0x1e0] sm:$0xff] }
  0xc1   :  { %1036 = vmatprep.subr.mxu0 %v791_v15  ;;  %1113 = vmatprep.subr.mxu1 %v855_v1  ;;  %v888_v63 = vld [vmem:[#allocation8 + $0x3e0] sm:$0xff]  ;;  %v823_v15 = vld [vmem:[#allocation8 + $0x1d8] sm:$0xff] }
  0xc2   :  { %1037 = vmatpush1.msra.mxu0 %v790_v17  ;;  %1114 = vmatpush1.msra.mxu1 %v854_v18  ;;  %v887_v1 = vld [vmem:[#allocation8 + $0x3d8] sm:$0xff]  ;;  %v822_v17 = vld [vmem:[#allocation8 + $0x1d0] sm:$0xff] }
  0xc3   :  { %1038 = vmatprep.subr.mxu0 %v789_v16  ;;  %1115 = vmatprep.subr.mxu1 %v853_v20  ;;  %v886_v18 = vld [vmem:[#allocation8 + $0x3d0] sm:$0xff]  ;;  %v821_v16 = vld [vmem:[#allocation8 + $0x1c8] sm:$0xff] }
  0xc4   :  { %1039 = vmatpush1.msra.mxu0 %v788_v21  ;;  %1116 = vmatpush1.msra.mxu1 %v852_v22  ;;  %v885_v20 = vld [vmem:[#allocation8 + $0x3c8] sm:$0xff]  ;;  %v820_v21 = vld [vmem:[#allocation8 + $0x1c0] sm:$0xff] }
  0xc5   :  { %1040 = vmatprep.subr.mxu0 %v787_v23  ;;  %1117 = vmatprep.subr.mxu1 %v851_v24  ;;  %v884_v22 = vld [vmem:[#allocation8 + $0x3c0] sm:$0xff]  ;;  %v819_v23 = vld [vmem:[#allocation8 + $0x1b8] sm:$0xff] }
  0xc6   :  { %1041 = vmatpush1.msra.mxu0 %v786_v19  ;;  %1118 = vmatpush1.msra.mxu1 %v850_v25  ;;  %v883_v24 = vld [vmem:[#allocation8 + $0x3b8] sm:$0xff]  ;;  %v818_v19 = vld [vmem:[#allocation8 + $0x1b0] sm:$0xff] }
  0xc7   :  { %1042 = vmatprep.subr.mxu0 %v785_v26  ;;  %1119 = vmatprep.subr.mxu1 %v849_v27  ;;  %v882_v25 = vld [vmem:[#allocation8 + $0x3b0] sm:$0xff]  ;;  %v817_v26 = vld [vmem:[#allocation8 + $0x1a8] sm:$0xff] }
  0xc8   :  { %1043 = vmatpush1.msra.mxu0 %v784_v28  ;;  %1120 = vmatpush1.msra.mxu1 %v848_v29  ;;  %v881_v27 = vld [vmem:[#allocation8 + $0x3a8] sm:$0xff]  ;;  %v816_v28 = vld [vmem:[#allocation8 + $0x1a0] sm:$0xff] }
  0xc9   :  { %1044 = vmatprep.subr.mxu0 %v783_v30  ;;  %1121 = vmatprep.subr.mxu1 %v847_v31  ;;  %v880_v29 = vld [vmem:[#allocation8 + $0x3a0] sm:$0xff]  ;;  %v815_v30 = vld [vmem:[#allocation8 + $0x198] sm:$0xff] }
  0xca   :  { %1045 = vmatpush1.msra.mxu0 %v782_v32  ;;  %1122 = vmatpush1.msra.mxu1 %v846_v33  ;;  %v879_v31 = vld [vmem:[#allocation8 + $0x398] sm:$0xff]  ;;  %v814_v32 = vld [vmem:[#allocation8 + $0x190] sm:$0xff] }
  0xcb   :  { %1046 = vmatprep.subr.mxu0 %v781_v34  ;;  %1123 = vmatprep.subr.mxu1 %v845_v35  ;;  %v878_v33 = vld [vmem:[#allocation8 + $0x390] sm:$0xff]  ;;  %v813_v34 = vld [vmem:[#allocation8 + $0x188] sm:$0xff] }
  0xcc   :  { %1047 = vmatpush1.msra.mxu0 %v780_v36  ;;  %1124 = vmatpush1.msra.mxu1 %v844_v37  ;;  %v877_v35 = vld [vmem:[#allocation8 + $0x388] sm:$0xff]  ;;  %v812_v36 = vld [vmem:[#allocation8 + $0x180] sm:$0xff] }
  0xcd   :  { %1048 = vmatprep.subr.mxu0 %v779_v38  ;;  %1125 = vmatprep.subr.mxu1 %v843_v39  ;;  %v876_v37 = vld [vmem:[#allocation8 + $0x380] sm:$0xff]  ;;  %v811_v38 = vld [vmem:[#allocation8 + $0x178] sm:$0xff] }
  0xce   :  { %1049 = vmatpush1.msra.mxu0 %v778_v40  ;;  %1126 = vmatpush1.msra.mxu1 %v842_v41  ;;  %v875_v39 = vld [vmem:[#allocation8 + $0x378] sm:$0xff]  ;;  %v810_v40 = vld [vmem:[#allocation8 + $0x170] sm:$0xff] }
  0xcf   :  { %1050 = vmatprep.subr.mxu0 %v777_v42  ;;  %1127 = vmatprep.subr.mxu1 %v841_v43  ;;  %v874_v41 = vld [vmem:[#allocation8 + $0x370] sm:$0xff]  ;;  %v809_v42 = vld [vmem:[#allocation8 + $0x168] sm:$0xff] }
  0xd0   :  { %1051 = vmatpush1.msra.mxu0 %v776_v44  ;;  %1128 = vmatpush1.msra.mxu1 %v840_v45  ;;  %v873_v43 = vld [vmem:[#allocation8 + $0x368] sm:$0xff]  ;;  %v808_v44 = vld [vmem:[#allocation8 + $0x160] sm:$0xff] }
  0xd1   :  { %1052 = vmatprep.subr.mxu0 %v775_v46  ;;  %1129 = vmatprep.subr.mxu1 %v839_v47  ;;  %v872_v45 = vld [vmem:[#allocation8 + $0x360] sm:$0xff]  ;;  %v807_v46 = vld [vmem:[#allocation8 + $0x158] sm:$0xff] }
  0xd2   :  { %1053 = vmatpush1.msra.mxu0 %v774_v48  ;;  %1130 = vmatpush1.msra.mxu1 %v838_v49  ;;  %v871_v47 = vld [vmem:[#allocation8 + $0x358] sm:$0xff]  ;;  %v806_v48 = vld [vmem:[#allocation8 + $0x150] sm:$0xff] }
  0xd3   :  { %1054 = vmatprep.subr.mxu0 %v773_v50  ;;  %1131 = vmatprep.subr.mxu1 %v837_v51  ;;  %v870_v49 = vld [vmem:[#allocation8 + $0x350] sm:$0xff]  ;;  %v805_v50 = vld [vmem:[#allocation8 + $0x148] sm:$0xff] }
  0xd4   :  { %1055 = vmatpush1.msra.mxu0 %v772_v52  ;;  %1132 = vmatpush1.msra.mxu1 %v836_v53  ;;  %v869_v51 = vld [vmem:[#allocation8 + $0x348] sm:$0xff]  ;;  %v804_v52 = vld [vmem:[#allocation8 + $0x140] sm:$0xff] }
  0xd5   :  { %1056 = vmatprep.subr.mxu0 %v771_v54  ;;  %1133 = vmatprep.subr.mxu1 %v835_v55  ;;  %v868_v53 = vld [vmem:[#allocation8 + $0x340] sm:$0xff]  ;;  %v803_v54 = vld [vmem:[#allocation8 + $0x138] sm:$0xff] }
  0xd6   :  { %1057 = vmatpush1.msra.mxu0 %v770_v56  ;;  %1134 = vmatpush1.msra.mxu1 %v834_v57  ;;  %v867_v55 = vld [vmem:[#allocation8 + $0x338] sm:$0xff]  ;;  %v802_v56 = vld [vmem:[#allocation8 + $0x130] sm:$0xff] }
  0xd7   :  { %1058 = vmatprep.subr.mxu0 %v769_v58  ;;  %1135 = vmatprep.subr.mxu1 %v833_v59  ;;  %v866_v57 = vld [vmem:[#allocation8 + $0x330] sm:$0xff]  ;;  %v801_v58 = vld [vmem:[#allocation8 + $0x128] sm:$0xff] }
  0xd8   :  { %1059 = vmatpush1.msra.mxu0 %v768_v60  ;;  %1136 = vmatpush1.msra.mxu1 %v832_v61  ;;  %v865_v59 = vld [vmem:[#allocation8 + $0x328] sm:$0xff]  ;;  %v800_v60 = vld [vmem:[#allocation8 + $0x120] sm:$0xff] }
  0xd9   :  { %1060 = vmatprep.subr.mxu0 %v767_v62  ;;  %1137 = vmatprep.subr.mxu1 %v831_v0  ;;  %v864_v61 = vld [vmem:[#allocation8 + $0x320] sm:$0xff]  ;;  %v799_v62 = vld [vmem:[#allocation8 + $0x118] sm:$0xff] }
  0xda   :  { %1061 = vmatpush1.msra.mxu0 %v766_v2  ;;  %1138 = vmatpush1.msra.mxu1 %v830_v3  ;;  %v863_v0 = vld [vmem:[#allocation8 + $0x318] sm:$0xff]  ;;  %v798_v2 = vld [vmem:[#allocation8 + $0x110] sm:$0xff] }
  0xdb   :  { %1062 = vmatprep.subr.mxu0 %v765_v4  ;;  %1139 = vmatprep.subr.mxu1 %v829_v5  ;;  %v862_v3 = vld [vmem:[#allocation8 + $0x310] sm:$0xff]  ;;  %v797_v4 = vld [vmem:[#allocation8 + $0x108] sm:$0xff] }
  0xdc   :  { %1063 = vmatpush1.msra.mxu0 %v764_v6  ;;  %1140 = vmatpush1.msra.mxu1 %v828_v7  ;;  %v861_v5 = vld [vmem:[#allocation8 + $0x308] sm:$0xff]  ;;  %v796_v6 = vld [vmem:[#allocation8 + $0x100] sm:$0xff] }
  0xdd   :  { %1064 = vmatprep.subr.mxu0 %v827_v8  ;;  %1141 = vmatprep.subr.mxu1 %v891_v9  ;;  %v860_v7 = vld [vmem:[#allocation8 + $0x300] sm:$0xff]  ;;  %v923_v8 = vld [vmem:[#allocation8 + $0x4f8] sm:$0xff] }
  0xde   :  { %1065 = vmatpush2.msra.mxu0 %v826_v10  ;;  %1142 = vmatpush2.msra.mxu1 %v890_v11  ;;  %v987_v9 = vld [vmem:[#allocation8 + $0x6f8] sm:$0xff]  ;;  %v336_v10 = vlaneseq }
  0xdf   :  { %1066 = vmatprep.subr.mxu0 %v825_v12  ;;  %1143 = vmatprep.subr.mxu1 %v889_v13 }
  0xe0   :  { %1067 = vmatpush2.msra.mxu0 %v824_v14  ;;  %1144 = vmatpush2.msra.mxu1 %v888_v63  ;;  %v1593_v11 = vshrl.u32 %v336_v10, 7  ;;  %v1597_v14 = vld [vmem:[#allocation7] sm:$0xff]  ;;  %v974_v10 = vld [vmem:[#allocation8 + $0x690] sm:$0xff] }
  0xe1   :  { %1068 = vmatprep.subr.mxu0 %v823_v15  ;;  %1145 = vmatprep.subr.mxu1 %v887_v1 }
  0xe2   :  { %1069 = vmatpush2.msra.mxu0 %v822_v17  ;;  %1146 = vmatpush2.msra.mxu1 %v886_v18  ;;  %v338_v12 = vsub.s32 0, %v1593_v11  ;;  %v346_v13 = vsub.s32 2, %v1593_v11  ;;  %v342_v63 = vsub.s32 1, %v1593_v11  ;;  %v350_v15 = vsub.s32 3, %v1593_v11 }
  0xe3   :  { %1070 = vmatprep.subr.mxu0 %v821_v16  ;;  %1147 = vmatprep.subr.mxu1 %v885_v20 }
  0xe4   :  { %1071 = vmatpush2.msra.mxu0 %v820_v21  ;;  %1148 = vmatpush2.msra.mxu1 %v884_v22  ;;  %v1604_v1 = vrot.slane %v1597_v14, %v338_v12  ;;  %v1607_v17 = vrot.slane %v1597_v14, %v346_v13  ;;  %v1612_v20 = vrot.slane %v1597_v14, %v342_v63  ;;  %v909_v13 = vld [vmem:[#allocation8 + $0x488] sm:$0xff] }
  0xe5   :  { %1072 = vmatprep.subr.mxu0 %v819_v23  ;;  %1149 = vmatprep.subr.mxu1 %v883_v24  ;;  %v1615_v21 = vrot.slane %v1597_v14, %v350_v15  ;;  %v973_v15 = vld [vmem:[#allocation8 + $0x688] sm:$0xff] }
  0xe6   :  { %1073 = vmatpush2.msra.mxu0 %v818_v19  ;;  %1150 = vmatpush2.msra.mxu1 %v882_v25 }
  0xe7   :  { %1074 = vmatprep.subr.mxu0 %v817_v26  ;;  %1151 = vmatprep.subr.mxu1 %v881_v27 }
  0xe8   :  { %1075 = vmatpush2.msra.mxu0 %v816_v28  ;;  %1152 = vmatpush2.msra.mxu1 %v880_v29 }
  0xe9   :  { %1076 = vmatprep.subr.mxu0 %v815_v30  ;;  %1153 = vmatprep.subr.mxu1 %v879_v31 }
  0xea   :  { %1077 = vmatpush2.msra.mxu0 %v814_v32  ;;  %1154 = vmatpush2.msra.mxu1 %v878_v33 }
  0xeb   :  { %1078 = vmatprep.subr.mxu0 %v813_v34  ;;  %1155 = vmatprep.subr.mxu1 %v877_v35 }
  0xec   :  { %1079 = vmatpush2.msra.mxu0 %v812_v36  ;;  %1156 = vmatpush2.msra.mxu1 %v876_v37 }
  0xed   :  { %1080 = vmatprep.subr.mxu0 %v811_v38  ;;  %1157 = vmatprep.subr.mxu1 %v875_v39 }
  0xee   :  { %1081 = vmatpush2.msra.mxu0 %v810_v40  ;;  %1158 = vmatpush2.msra.mxu1 %v874_v41 }
  0xef   :  { %1082 = vmatprep.subr.mxu0 %v809_v42  ;;  %1159 = vmatprep.subr.mxu1 %v873_v43 }
  0xf0   :  { %1083 = vmatpush2.msra.mxu0 %v808_v44  ;;  %1160 = vmatpush2.msra.mxu1 %v872_v45 }
  0xf1   :  { %1084 = vmatprep.subr.mxu0 %v807_v46  ;;  %1161 = vmatprep.subr.mxu1 %v871_v47  ;;  %v922_v46 = vld [vmem:[#allocation8 + $0x4f0] sm:$0xff] }
  0xf2   :  { %1085 = vmatpush2.msra.mxu0 %v806_v48  ;;  %1162 = vmatpush2.msra.mxu1 %v870_v49  ;;  %v986_v48 = vld [vmem:[#allocation8 + $0x6f0] sm:$0xff]  ;;  %v921_v49 = vld [vmem:[#allocation8 + $0x4e8] sm:$0xff] }
  0xf3   :  { %1086 = vmatprep.subr.mxu0 %v805_v50  ;;  %1163 = vmatprep.subr.mxu1 %v869_v51  ;;  %v985_v50 = vld [vmem:[#allocation8 + $0x6e8] sm:$0xff]  ;;  %v920_v51 = vld [vmem:[#allocation8 + $0x4e0] sm:$0xff] }
  0xf4   :  { %1087 = vmatpush2.msra.mxu0 %v804_v52  ;;  %1164 = vmatpush2.msra.mxu1 %v868_v53  ;;  %v984_v52 = vld [vmem:[#allocation8 + $0x6e0] sm:$0xff]  ;;  %v919_v53 = vld [vmem:[#allocation8 + $0x4d8] sm:$0xff] }
  0xf5   :  { %1088 = vmatprep.subr.mxu0 %v803_v54  ;;  %1165 = vmatprep.subr.mxu1 %v867_v55  ;;  %v983_v54 = vld [vmem:[#allocation8 + $0x6d8] sm:$0xff]  ;;  %v918_v55 = vld [vmem:[#allocation8 + $0x4d0] sm:$0xff] }
  0xf6   :  { %1089 = vmatpush2.msra.mxu0 %v802_v56  ;;  %1166 = vmatpush2.msra.mxu1 %v866_v57  ;;  %v982_v56 = vld [vmem:[#allocation8 + $0x6d0] sm:$0xff]  ;;  %v917_v57 = vld [vmem:[#allocation8 + $0x4c8] sm:$0xff] }
  0xf7   :  { %1090 = vmatprep.subr.mxu0 %v801_v58  ;;  %1167 = vmatprep.subr.mxu1 %v865_v59  ;;  %v981_v58 = vld [vmem:[#allocation8 + $0x6c8] sm:$0xff]  ;;  %v916_v59 = vld [vmem:[#allocation8 + $0x4c0] sm:$0xff] }
  0xf8   :  { %1091 = vmatpush2.msra.mxu0 %v800_v60  ;;  %1168 = vmatpush2.msra.mxu1 %v864_v61  ;;  %v980_v60 = vld [vmem:[#allocation8 + $0x6c0] sm:$0xff]  ;;  %v915_v61 = vld [vmem:[#allocation8 + $0x4b8] sm:$0xff] }
  0xf9   :  { %1092 = vmatprep.subr.mxu0 %v799_v62  ;;  %1169 = vmatprep.subr.mxu1 %v863_v0  ;;  %v979_v62 = vld [vmem:[#allocation8 + $0x6b8] sm:$0xff]  ;;  %v914_v0 = vld [vmem:[#allocation8 + $0x4b0] sm:$0xff] }
  0xfa   :  { %1093 = vmatpush2.msra.mxu0 %v798_v2  ;;  %1170 = vmatpush2.msra.mxu1 %v862_v3  ;;  %v978_v2 = vld [vmem:[#allocation8 + $0x6b0] sm:$0xff]  ;;  %v913_v3 = vld [vmem:[#allocation8 + $0x4a8] sm:$0xff] }
  0xfb   :  { %1094 = vmatprep.subr.mxu0 %v797_v4  ;;  %1171 = vmatprep.subr.mxu1 %v861_v5  ;;  %v977_v4 = vld [vmem:[#allocation8 + $0x6a8] sm:$0xff]  ;;  %v912_v5 = vld [vmem:[#allocation8 + $0x4a0] sm:$0xff] }
  0xfc   :  { %1095 = vmatpush2.msra.mxu0 %v796_v6  ;;  %1172 = vmatpush2.msra.mxu1 %v860_v7  ;;  %v976_v6 = vld [vmem:[#allocation8 + $0x6a0] sm:$0xff]  ;;  %v911_v7 = vld [vmem:[#allocation8 + $0x498] sm:$0xff] }
  0xfd   :  { %1186 = vmatprep.subr.mxu0 %v923_v8  ;;  %1263 = vmatprep.subr.mxu1 %v987_v9  ;;  %v975_v8 = vld [vmem:[#allocation8 + $0x698] sm:$0xff]  ;;  %v910_v9 = vld [vmem:[#allocation8 + $0x490] sm:$0xff] }
 0x136   :  { %v442_v18 = vpop.f32.mrf.mxu0  ;;  %v519_v16 = vpop.f32.mrf.mxu1 }
 0x137   :  { %v443_v22 = vadd.f32 %v442_v18, %v1604_v1  ;;  %v520_v23 = vadd.f32 %v519_v16, %v1607_v17  ;;  %v908_v18 = vld [vmem:[#allocation8 + $0x480] sm:$0xff] }
 0x138   :  { %v444_v24 = vpop.f32.mrf.mxu0  ;;  %v521_v19 = vpop.f32.mrf.mxu1 }
 0x139   :  { %v700_v25 = vmul.f32 0.70710677, %v443_v22  ;;  %v702_v26 = vmul.f32 0.70710677, %v520_v23  ;;  %v445_v27 = vadd.f32 %v444_v24, %v1612_v20  ;;  %v522_v28 = vadd.f32 %v521_v19, %v1615_v21  ;;  %v971_v19 = vld [vmem:[#allocation8 + $0x678] sm:$0xff] }
 0x13a   :  { %v684_v39 = vmul.f32 0.5, %v443_v22  ;;  %v686_v42 = vmul.f32 0.5, %v520_v23  ;;  %v972_v22 = vld [vmem:[#allocation8 + $0x680] sm:$0xff]  ;;  %v907_v23 = vld [vmem:[#allocation8 + $0x478] sm:$0xff] }
 0x13b   :  { %1372 = verf.f32 %v700_v25  ;;  %v701_v29 = vmul.f32 0.70710677, %v445_v27  ;;  %v703_v30 = vmul.f32 0.70710677, %v522_v28  ;;  %v685_v37 = vmul.f32 0.5, %v445_v27  ;;  %v906_v25 = vld [vmem:[#allocation8 + $0x470] sm:$0xff] }
 0x13c   :  { %1374 = verf.f32 %v702_v26  ;;  %v687_v40 = vmul.f32 0.5, %v522_v28  ;;  %v970_v27 = vld [vmem:[#allocation8 + $0x670] sm:$0xff]  ;;  %v905_v28 = vld [vmem:[#allocation8 + $0x468] sm:$0xff] }
 0x13d   :  { %1376 = verf.f32 %v701_v29 }
 0x13e   :  { %1378 = verf.f32 %v703_v30 }
 0x148   :  { %v1373_v31 = vpop.eup %1372 }
 0x149   :  { %v1375_v32 = vpop.eup %1374  ;;  %v732_v34 = vadd.f32 1.0, %v1373_v31 }
 0x14a   :  { %v1377_v33 = vpop.eup %1376  ;;  %v734_v36 = vadd.f32 1.0, %v1375_v32  ;;  %v969_v32 = vld [vmem:[#allocation8 + $0x668] sm:$0xff] }
 0x14b   :  { %v1379_v35 = vpop.eup %1378  ;;  %v733_v38 = vadd.f32 1.0, %v1377_v33  ;;  %v748_v44 = vmul.f32 %v732_v34, %v684_v39  ;;  %v968_v34 = vld [vmem:[#allocation8 + $0x660] sm:$0xff] }
 0x14c   :  { %v735_v41 = vadd.f32 1.0, %v1379_v35  ;;  %v750_v47 = vmul.f32 %v734_v36, %v686_v42  ;;  %v903_v35 = vld [vmem:[#allocation8 + $0x458] sm:$0xff]  ;;  %v965_v42 = vld [vmem:[#allocation8 + $0x648] sm:$0xff] }
 0x14d   :  { %v749_v43 = vmul.f32 %v733_v38, %v685_v37  ;;  %v902_v38 = vld [vmem:[#allocation8 + $0x450] sm:$0xff] }
 0x14e   :  { %v751_v45 = vmul.f32 %v735_v41, %v687_v40  ;;  %v901_v41 = vld [vmem:[#allocation8 + $0x448] sm:$0xff] }
 0x14f   :  { %1096 = vmatprep.mubr.f32.mxu0 %v749_v43  ;;  %v900_v43 = vld [vmem:[#allocation8 + $0x440] sm:$0xff] }
 0x150   :  { %1173 = vmatprep.mubr.f32.mxu1 %v751_v45  ;;  %1097 = vmatmul.mubr.f32.vlgmr.msra.gmra.mxu0 %v748_v44  ;;  %v964_v45 = vld [vmem:[#allocation8 + $0x640] sm:$0xff] }
 0x151   :  { %1174 = vmatmul.mubr.f32.vlgmr.msra.gmra.mxu1 %v750_v47  ;;  %1187 = vmatpush1.msra.mxu0 %v922_v46  ;;  %v899_v46 = vld [vmem:[#allocation8 + $0x438] sm:$0xff]  ;;  %v898_v47 = vld [vmem:[#allocation8 + $0x430] sm:$0xff] }
 0x152   :  { %1264 = vmatpush1.msra.mxu1 %v986_v48  ;;  %1188 = vmatprep.subr.mxu0 %v921_v49  ;;  %v962_v48 = vld [vmem:[#allocation8 + $0x630] sm:$0xff]  ;;  %v897_v49 = vld [vmem:[#allocation8 + $0x428] sm:$0xff] }
 0x153   :  { %1265 = vmatprep.subr.mxu1 %v985_v50  ;;  %1189 = vmatpush1.msra.mxu0 %v920_v51  ;;  %v961_v50 = vld [vmem:[#allocation8 + $0x628] sm:$0xff]  ;;  %v896_v51 = vld [vmem:[#allocation8 + $0x420] sm:$0xff] }
 0x154   :  { %1266 = vmatpush1.msra.mxu1 %v984_v52  ;;  %1190 = vmatprep.subr.mxu0 %v919_v53  ;;  %v960_v52 = vld [vmem:[#allocation8 + $0x620] sm:$0xff]  ;;  %v895_v53 = vld [vmem:[#allocation8 + $0x418] sm:$0xff] }
 0x155   :  { %1267 = vmatprep.subr.mxu1 %v983_v54  ;;  %1191 = vmatpush1.msra.mxu0 %v918_v55  ;;  %v959_v54 = vld [vmem:[#allocation8 + $0x618] sm:$0xff]  ;;  %v894_v55 = vld [vmem:[#allocation8 + $0x410] sm:$0xff] }
 0x156   :  { %1268 = vmatpush1.msra.mxu1 %v982_v56  ;;  %1192 = vmatprep.subr.mxu0 %v917_v57  ;;  %v958_v56 = vld [vmem:[#allocation8 + $0x610] sm:$0xff]  ;;  %v893_v57 = vld [vmem:[#allocation8 + $0x408] sm:$0xff] }
 0x157   :  { %1269 = vmatprep.subr.mxu1 %v981_v58  ;;  %1193 = vmatpush1.msra.mxu0 %v916_v59  ;;  %v957_v58 = vld [vmem:[#allocation8 + $0x608] sm:$0xff]  ;;  %v892_v59 = vld [vmem:[#allocation8 + $0x400] sm:$0xff] }
 0x158   :  { %1270 = vmatpush1.msra.mxu1 %v980_v60  ;;  %1194 = vmatprep.subr.mxu0 %v915_v61  ;;  %v956_v60 = vld [vmem:[#allocation8 + $0x600] sm:$0xff]  ;;  %v955_v61 = vld [vmem:[#allocation8 + $0x5f8] sm:$0xff] }
 0x159   :  { %1271 = vmatprep.subr.mxu1 %v979_v62  ;;  %1195 = vmatpush1.msra.mxu0 %v914_v0  ;;  %v1019_v62 = vld [vmem:[#allocation8 + $0x7f8] sm:$0xff]  ;;  %v954_v0 = vld [vmem:[#allocation8 + $0x5f0] sm:$0xff] }
 0x15a   :  { %1272 = vmatpush1.msra.mxu1 %v978_v2  ;;  %1196 = vmatprep.subr.mxu0 %v913_v3  ;;  %v1018_v3 = vld [vmem:[#allocation8 + $0x7f0] sm:$0xff] }
 0x15b   :  { %1273 = vmatprep.subr.mxu1 %v977_v4  ;;  %1197 = vmatpush1.msra.mxu0 %v912_v5  ;;  %v953_v4 = vld [vmem:[#allocation8 + $0x5e8] sm:$0xff] }
 0x15c   :  { %1274 = vmatpush1.msra.mxu1 %v976_v6  ;;  %1198 = vmatprep.subr.mxu0 %v911_v7  ;;  %v1017_v7 = vld [vmem:[#allocation8 + $0x7e8] sm:$0xff] }
 0x15d   :  { %1275 = vmatprep.subr.mxu1 %v975_v8  ;;  %1199 = vmatpush1.msra.mxu0 %v910_v9  ;;  %v952_v8 = vld [vmem:[#allocation8 + $0x5e0] sm:$0xff] }
 0x15e   :  { %v448_v16 = vpop.f32.mrf.mxu0  ;;  %1276 = vmatpush1.msra.mxu1 %v974_v10  ;;  %1200 = vmatprep.subr.mxu0 %v909_v13  ;;  %v1016_v13 = vld [vmem:[#allocation8 + $0x7e0] sm:$0xff] }
 0x15f   :  { %v1622_v24 = vadd.f32 %v448_v16, %v1604_v1  ;;  %1277 = vmatprep.subr.mxu1 %v973_v15  ;;  %1201 = vmatpush1.msra.mxu0 %v908_v18  ;;  %v904_v1 = vld [vmem:[#allocation8 + $0x460] sm:$0xff]  ;;  %v951_v15 = vld [vmem:[#allocation8 + $0x5d8] sm:$0xff] }
 0x160   :  { %v450_v26 = vpop.f32.mrf.mxu0  ;;  %1278 = vmatpush1.msra.mxu1 %v972_v22  ;;  %1202 = vmatprep.subr.mxu0 %v907_v23  ;;  %v1015_v16 = vld [vmem:[#allocation8 + $0x7d8] sm:$0xff]  ;;  %v950_v22 = vld [vmem:[#allocation8 + $0x5d0] sm:$0xff]  ;;  %v354_v23 = vsub.s32 4, %v1593_v11 }
 0x161   :  { %v708_v29 = vmul.f32 0.70710677, %v1622_v24  ;;  %v1626_v30 = vadd.f32 %v450_v26, %v1612_v20  ;;  %v525_v31 = vpop.f32.mrf.mxu1  ;;  %1279 = vmatprep.subr.mxu1 %v971_v19  ;;  %1203 = vmatpush1.msra.mxu0 %v906_v25  ;;  %v967_v20 = vld [vmem:[#allocation8 + $0x658] sm:$0xff]  ;;  %v692_v5 = vmul.f32 0.5, %v1622_v24  ;;  %v362_v24 = vsub.s32 6, %v1593_v11 }
 0x162   :  { %v1629_v33 = vadd.f32 %v525_v31, %v1607_v17  ;;  %1280 = vmatpush1.msra.mxu1 %v970_v27  ;;  %1204 = vmatprep.subr.mxu0 %v905_v28  ;;  %v966_v17 = vld [vmem:[#allocation8 + $0x650] sm:$0xff]  ;;  %v949_v31 = vld [vmem:[#allocation8 + $0x5c8] sm:$0xff] }
 0x163   :  { %1380 = verf.f32 %v708_v29  ;;  %v709_v36 = vmul.f32 0.70710677, %v1626_v30  ;;  %v527_v37 = vpop.f32.mrf.mxu1  ;;  %1281 = vmatprep.subr.mxu1 %v969_v32  ;;  %1205 = vmatpush1.msra.mxu0 %v904_v1  ;;  %v693_v6 = vmul.f32 0.5, %v1626_v30  ;;  %v1014_v27 = vld [vmem:[#allocation8 + $0x7d0] sm:$0xff]  ;;  %v1013_v32 = vld [vmem:[#allocation8 + $0x7c8] sm:$0xff] }
 0x164   :  { %v710_v39 = vmul.f32 0.70710677, %v1629_v33  ;;  %v1634_v40 = vadd.f32 %v527_v37, %v1615_v21  ;;  %1282 = vmatpush1.msra.mxu1 %v968_v34  ;;  %1206 = vmatprep.subr.mxu0 %v903_v35  ;;  %v963_v21 = vld [vmem:[#allocation8 + $0x638] sm:$0xff]  ;;  %v694_v25 = vmul.f32 0.5, %v1629_v33  ;;  %v1012_v34 = vld [vmem:[#allocation8 + $0x7c0] sm:$0xff]  ;;  %v358_v35 = vsub.s32 5, %v1593_v11 }
 0x165   :  { %1382 = verf.f32 %v709_v36  ;;  %1283 = vmatprep.subr.mxu1 %v967_v20  ;;  %1207 = vmatpush1.msra.mxu0 %v902_v38  ;;  %v366_v33 = vsub.s32 7, %v1593_v11  ;;  %v355_v37 = vrot.slane %v1597_v14, %v354_v23  ;;  %v363_v20 = vrot.slane %v1597_v14, %v362_v24  ;;  %v948_v38 = vld [vmem:[#allocation8 + $0x5c0] sm:$0xff] }
 0x166   :  { %1384 = verf.f32 %v710_v39  ;;  %v711_v44 = vmul.f32 0.70710677, %v1634_v40  ;;  %1284 = vmatpush1.msra.mxu1 %v966_v17  ;;  %1208 = vmatprep.subr.mxu0 %v901_v41  ;;  %v695_v26 = vmul.f32 0.5, %v1634_v40  ;;  %v947_v40 = vld [vmem:[#allocation8 + $0x5b8] sm:$0xff] }
 0x167   :  { %1285 = vmatprep.subr.mxu1 %v965_v42  ;;  %1209 = vmatpush1.msra.mxu0 %v900_v43  ;;  %v1011_v17 = vld [vmem:[#allocation8 + $0x7b8] sm:$0xff]  ;;  %v946_v42 = vld [vmem:[#allocation8 + $0x5b0] sm:$0xff] }
 0x168   :  { %1386 = verf.f32 %v711_v44  ;;  %1286 = vmatpush1.msra.mxu1 %v964_v45  ;;  %1210 = vmatprep.subr.mxu0 %v899_v46  ;;  %v359_v45 = vrot.slane %v1597_v14, %v358_v35  ;;  %v367_v46 = vrot.slane %v1597_v14, %v366_v33  ;;  %v998_v35 = vld [vmem:[#allocation8 + $0x750] sm:$0xff]  ;;  %v933_v33 = vld [vmem:[#allocation8 + $0x548] sm:$0xff] }
 0x169   :  { %1287 = vmatprep.subr.mxu1 %v963_v21  ;;  %1211 = vmatpush1.msra.mxu0 %v898_v47  ;;  %v1010_v21 = vld [vmem:[#allocation8 + $0x7b0] sm:$0xff]  ;;  %v945_v47 = vld [vmem:[#allocation8 + $0x5a8] sm:$0xff] }
 0x16a   :  { %1288 = vmatpush1.msra.mxu1 %v962_v48  ;;  %1212 = vmatprep.subr.mxu0 %v897_v49 }
 0x16b   :  { %1289 = vmatprep.subr.mxu1 %v961_v50  ;;  %1213 = vmatpush1.msra.mxu0 %v896_v51  ;;  %v1009_v50 = vld [vmem:[#allocation8 + $0x7a8] sm:$0xff]  ;;  %v944_v51 = vld [vmem:[#allocation8 + $0x5a0] sm:$0xff] }
 0x16c   :  { %1290 = vmatpush1.msra.mxu1 %v960_v52  ;;  %1214 = vmatprep.subr.mxu0 %v895_v53 }
 0x16d   :  { %1291 = vmatprep.subr.mxu1 %v959_v54  ;;  %1215 = vmatpush1.msra.mxu0 %v894_v55  ;;  %v1008_v54 = vld [vmem:[#allocation8 + $0x7a0] sm:$0xff]  ;;  %v943_v55 = vld [vmem:[#allocation8 + $0x598] sm:$0xff] }
 0x16e   :  { %1292 = vmatpush1.msra.mxu1 %v958_v56  ;;  %1216 = vmatprep.subr.mxu0 %v893_v57  ;;  %v1007_v57 = vld [vmem:[#allocation8 + $0x798] sm:$0xff] }
 0x16f   :  { %1293 = vmatprep.subr.mxu1 %v957_v58  ;;  %1217 = vmatpush1.msra.mxu0 %v892_v59  ;;  %v942_v58 = vld [vmem:[#allocation8 + $0x590] sm:$0xff] }
 0x170   :  { %v1381_v2 = vpop.eup %1380  ;;  %1294 = vmatpush1.msra.mxu1 %v956_v60  ;;  %1218 = vmatprep.subr.mxu0 %v955_v61 }
 0x171   :  { %v740_v9 = vadd.f32 1.0, %v1381_v2  ;;  %1295 = vmatprep.subr.mxu1 %v1019_v62  ;;  %1219 = vmatpush2.msra.mxu0 %v954_v0  ;;  %v1006_v0 = vld [vmem:[#allocation8 + $0x790] sm:$0xff]  ;;  %v941_v2 = vld [vmem:[#allocation8 + $0x588] sm:$0xff] }
 0x172   :  { %v1383_v10 = vpop.eup %1382  ;;  %1296 = vmatpush2.msra.mxu1 %v1018_v3  ;;  %1220 = vmatprep.subr.mxu0 %v953_v4 }
 0x173   :  { %v1385_v18 = vpop.eup %1384  ;;  %v741_v19 = vadd.f32 1.0, %v1383_v10  ;;  %1297 = vmatprep.subr.mxu1 %v1017_v7  ;;  %1221 = vmatpush2.msra.mxu0 %v952_v8  ;;  %v756_v1 = vmul.f32 %v740_v9, %v692_v5  ;;  %v1005_v5 = vld [vmem:[#allocation8 + $0x788] sm:$0xff]  ;;  %v1004_v10 = vld [vmem:[#allocation8 + $0x780] sm:$0xff] }
 0x174   :  { %v742_v28 = vadd.f32 1.0, %v1385_v18  ;;  %1298 = vmatpush2.msra.mxu1 %v1016_v13  ;;  %1222 = vmatprep.subr.mxu0 %v951_v15  ;;  %v939_v13 = vld [vmem:[#allocation8 + $0x578] sm:$0xff] }
 0x175   :  { %v1387_v29 = vpop.eup %1386  ;;  %v757_v30 = vmul.f32 %v741_v19, %v693_v6  ;;  %1299 = vmatprep.subr.mxu1 %v1015_v16  ;;  %1223 = vmatpush2.msra.mxu0 %v950_v22  ;;  %v940_v6 = vld [vmem:[#allocation8 + $0x580] sm:$0xff]  ;;  %v1003_v16 = vld [vmem:[#allocation8 + $0x778] sm:$0xff]  ;;  %v938_v22 = vld [vmem:[#allocation8 + $0x570] sm:$0xff] }
 0x176   :  { %v743_v36 = vadd.f32 1.0, %v1387_v29  ;;  %1300 = vmatpush2.msra.mxu1 %v1014_v27  ;;  %1224 = vmatprep.subr.mxu0 %v949_v31  ;;  %v758_v41 = vmul.f32 %v742_v28, %v694_v25  ;;  %v1002_v25 = vld [vmem:[#allocation8 + $0x770] sm:$0xff]  ;;  %v1001_v27 = vld [vmem:[#allocation8 + $0x768] sm:$0xff]  ;;  %v936_v28 = vld [vmem:[#allocation8 + $0x560] sm:$0xff] }
 0x177   :  { %1102 = vmatprep.mubr.f32.mxu0 %v757_v30  ;;  %1301 = vmatprep.subr.mxu1 %v1013_v32  ;;  %v1000_v30 = vld [vmem:[#allocation8 + $0x760] sm:$0xff]  ;;  %v935_v31 = vld [vmem:[#allocation8 + $0x558] sm:$0xff] }
 0x178   :  { %v759_v39 = vmul.f32 %v743_v36, %v695_v26  ;;  %1103 = vmatmul.mubr.f32.gmra.mxu0 %v756_v1  ;;  %1302 = vmatpush2.msra.mxu1 %v1012_v34  ;;  %v937_v26 = vld [vmem:[#allocation8 + $0x568] sm:$0xff]  ;;  %v999_v1 = vld [vmem:[#allocation8 + $0x758] sm:$0xff]  ;;  %v934_v34 = vld [vmem:[#allocation8 + $0x550] sm:$0xff] }
 0x179   :  { %1225 = vmatpush2.msra.mxu0 %v948_v38  ;;  %1303 = vmatprep.subr.mxu1 %v1011_v17  ;;  %v997_v36 = vld [vmem:[#allocation8 + $0x748] sm:$0xff]  ;;  %v931_v38 = vld [vmem:[#allocation8 + $0x538] sm:$0xff]  ;;  %v994_v17 = vld [vmem:[#allocation8 + $0x730] sm:$0xff] }
 0x17a   :  { %v596_v43 = vpop.f32.mrf.mxu0  ;;  %v673_v44 = vpop.f32.mrf.mxu1  ;;  %1179 = vmatprep.mubr.f32.mxu1 %v759_v39  ;;  %1226 = vmatprep.subr.mxu0 %v947_v40  ;;  %v995_v39 = vld [vmem:[#allocation8 + $0x738] sm:$0xff]  ;;  %v930_v40 = vld [vmem:[#allocation8 + $0x530] sm:$0xff] }
 0x17b   :  { %v1649_v48 = vadd.f32 %v596_v43, %v355_v37  ;;  %v1651_v49 = vadd.f32 %v673_v44, %v363_v20  ;;  %1180 = vmatmul.mubr.f32.gmra.mxu1 %v758_v41  ;;  %1227 = vmatpush2.msra.mxu0 %v946_v42  ;;  %v929_v41 = vld [vmem:[#allocation8 + $0x528] sm:$0xff]  ;;  %v928_v43 = vld [vmem:[#allocation8 + $0x520] sm:$0xff] }
 0x17c   :  { %v598_v52 = vpop.f32.mrf.mxu0  ;;  %v675_v53 = vpop.f32.mrf.mxu1  ;;  %1304 = vmatpush2.msra.mxu1 %v1010_v21  ;;  %1228 = vmatprep.subr.mxu0 %v945_v47  ;;  %v993_v42 = vld [vmem:[#allocation8 + $0x728] sm:$0xff]  ;;  %v991_v47 = vld [vmem:[#allocation8 + $0x718] sm:$0xff] }
 0x17d   :  { %v704_v56 = vmul.f32 0.70710677, %v1649_v48  ;;  %v706_v14 = vmul.f32 0.70710677, %v1651_v49  ;;  %v1655_v59 = vadd.f32 %v598_v52, %v359_v45  ;;  %v1657_v60 = vadd.f32 %v675_v53, %v367_v46  ;;  %1305 = vmatprep.subr.mxu1 %v1009_v50  ;;  %1229 = vmatpush2.msra.mxu0 %v944_v51  ;;  %v926_v50 = vld [vmem:[#allocation8 + $0x510] sm:$0xff]  ;;  %v925_v52 = vld [vmem:[#allocation8 + $0x508] sm:$0xff] }
 0x17e   :  { %v602_v61 = vpop.f32.mrf.mxu0  ;;  %v679_v62 = vpop.f32.mrf.mxu1  ;;  %1306 = vmatpush2.msra.mxu1 %v1008_v54  ;;  %1230 = vmatprep.subr.mxu0 %v943_v55  ;;  %v990_v51 = vld [vmem:[#allocation8 + $0x710] sm:$0xff]  ;;  %v989_v55 = vld [vmem:[#allocation8 + $0x708] sm:$0xff] }
 0x17f   :  { %1388 = verf.f32 %v704_v56  ;;  %v1659_v3 = vadd.f32 %v602_v61, %v355_v37  ;;  %v1661_v4 = vadd.f32 %v679_v62, %v363_v20  ;;  %v705_v7 = vmul.f32 0.70710677, %v1655_v59  ;;  %1307 = vmatprep.subr.mxu1 %v1007_v57  ;;  %1231 = vmatpush2.msra.mxu0 %v942_v58  ;;  %v932_v37 = vld [vmem:[#allocation8 + $0x540] sm:$0xff] }
 0x180   :  { %1390 = verf.f32 %v706_v14  ;;  %v604_v8 = vpop.f32.mrf.mxu0  ;;  %v681_v9 = vpop.f32.mrf.mxu1  ;;  %v707_v15 = vmul.f32 0.70710677, %v1657_v60  ;;  %1308 = vmatpush2.msra.mxu1 %v1006_v0  ;;  %1232 = vmatprep.subr.mxu0 %v941_v2  ;;  %v996_v20 = vld [vmem:[#allocation8 + $0x740] sm:$0xff]  ;;  %v689_v58 = vmul.f32 0.5, %v1655_v59  ;;  %v688_v2 = vmul.f32 0.5, %v1649_v48 }
 0x181   :  { %v712_v18 = vmul.f32 0.70710677, %v1659_v3  ;;  %1392 = verf.f32 %v705_v7  ;;  %v714_v23 = vmul.f32 0.70710677, %v1661_v4  ;;  %v1667_v24 = vadd.f32 %v604_v8, %v359_v45  ;;  %1309 = vmatprep.subr.mxu1 %v1005_v5  ;;  %1233 = vmatpush2.msra.mxu0 %v940_v6  ;;  %v992_v45 = vld [vmem:[#allocation8 + $0x720] sm:$0xff] }
 0x182   :  { %v1669_v19 = vadd.f32 %v681_v9, %v367_v46  ;;  %1394 = verf.f32 %v707_v15  ;;  %1310 = vmatpush2.msra.mxu1 %v1004_v10  ;;  %1234 = vmatprep.subr.mxu0 %v939_v13  ;;  %v927_v46 = vld [vmem:[#allocation8 + $0x518] sm:$0xff]  ;;  %v924_v56 = vld [vmem:[#allocation8 + $0x500] sm:$0xff]  ;;  %v691_v5 = vmul.f32 0.5, %v1657_v60  ;;  %v690_v8 = vmul.f32 0.5, %v1651_v49 }
 0x183   :  { %1396 = verf.f32 %v712_v18  ;;  %v713_v29 = vmul.f32 0.70710677, %v1667_v24  ;;  %1311 = vmatprep.subr.mxu1 %v1003_v16  ;;  %1235 = vmatpush2.msra.mxu0 %v938_v22  ;;  %v988_v62 = vld [vmem:[#allocation8 + $0x700] sm:$0xff]  ;;  %v697_v48 = vmul.f32 0.5, %v1667_v24 }
 0x184   :  { %1398 = verf.f32 %v714_v23  ;;  %v715_v32 = vmul.f32 0.70710677, %v1669_v19  ;;  %1312 = vmatpush2.msra.mxu1 %v1002_v25  ;;  %1236 = vmatprep.subr.mxu0 %v937_v26  ;;  %v696_v23 = vmul.f32 0.5, %v1659_v3  ;;  %v699_v25 = vmul.f32 0.5, %v1669_v19  ;;  %v1020_v3 = vld [vmem:[%s1698_s4] sm:$0x3] }
 0x185   :  { %1400 = verf.f32 %v713_v29  ;;  %1313 = vmatprep.subr.mxu1 %v1001_v27  ;;  %1237 = vmatpush2.msra.mxu0 %v936_v28  ;;  %v698_v26 = vmul.f32 0.5, %v1661_v4  ;;  %v1029_v4 = vrot.slane %v1020_v3, %v342_v63  ;;  %s1520_s4 = smov [#allocation10]  }
 0x186   :  { %1402 = verf.f32 %v715_v32  ;;  %1314 = vmatpush2.msra.mxu1 %v1000_v30  ;;  %1238 = vmatprep.subr.mxu0 %v935_v31  ;;  %v1025_v31 = vrot.slane %v1020_v3, %v338_v12  ;;  %s1349_s15 = sshll.u32 %s1520_s4, 4  ;;  %s1350_s15 = int_to_ptr.vmem [resolvable:$true] %s1349_s15 }
 0x187   :  { %1315 = vmatprep.subr.mxu1 %v999_v1  ;;  %1239 = vmatpush2.msra.mxu0 %v934_v34  ;;  %s1484_s16 = scalar_lea.vmem %s1350_s15, 512  ;;  %p1489_p7 = scmp.lt.s32.totalorder %s1350_s15, %s1350_s15 }
 0x188   :  { %1316 = vmatpush2.msra.mxu1 %v998_v35  ;;  %1240 = vmatprep.subr.mxu0 %v933_v33  ;;  %p1485_p6 = scmp.ne.s32.totalorder %s1350_s15, %s1484_s16  ;;  %p1490_p8 = scmp.lt.s32.totalorder %s1484_s16, %s1484_s16 }
 0x189   :  { %1317 = vmatprep.subr.mxu1 %v997_v36  ;;  %1241 = vmatpush2.msra.mxu0 %v932_v37 }
 0x18a   :  { %1318 = vmatpush2.msra.mxu1 %v996_v20  ;;  %1242 = vmatprep.subr.mxu0 %v931_v38  ;;  %p1491_p9 = por %p1490_p8, %p1489_p7 }
 0x18b   :  { %1319 = vmatprep.subr.mxu1 %v995_v39  ;;  %1243 = vmatpush2.msra.mxu0 %v930_v40 }
 0x18c   :  { %v1389_v44 = vpop.eup %1388  ;;  %1320 = vmatpush2.msra.mxu1 %v994_v17  ;;  %1244 = vmatprep.subr.mxu0 %v929_v41  ;;  %p1492_p10 = pnand %p1491_p9, %p1485_p6 }
 0x18d   :  { %v1391_v21 = vpop.eup %1390  ;;  %1321 = vmatprep.subr.mxu1 %v993_v42  ;;  %1245 = vmatpush2.msra.mxu0 %v928_v43  ;;  %v736_v54 = vadd.f32 1.0, %v1389_v44 }
 0x18e   :  { %v1393_v53 = vpop.eup %1392  ;;  %1322 = vmatpush2.msra.mxu1 %v992_v45  ;;  %1246 = vmatprep.subr.mxu0 %v927_v46  ;;  %v738_v57 = vadd.f32 1.0, %v1391_v21 }
 0x18f   :  { %v1395_v14 = vpop.eup %1394  ;;  %1323 = vmatprep.subr.mxu1 %v991_v47  ;;  %1247 = vmatpush2.msra.mxu0 %v926_v50  ;;  %v737_v61 = vadd.f32 1.0, %v1393_v53  ;;  %v752_v59 = vmul.f32 %v736_v54, %v688_v2 }
 0x190   :  { %v1397_v0 = vpop.eup %1396  ;;  %1324 = vmatpush2.msra.mxu1 %v990_v51  ;;  %1248 = vmatprep.subr.mxu0 %v925_v52  ;;  %v739_v6 = vadd.f32 1.0, %v1395_v14  ;;  %v754_v16 = vmul.f32 %v738_v57, %v690_v8 }
 0x191   :  { %v1399_v7 = vpop.eup %1398  ;;  %1325 = vmatprep.subr.mxu1 %v989_v55  ;;  %1249 = vmatpush2.msra.mxu0 %v924_v56  ;;  %v753_v9 = vmul.f32 %v737_v61, %v689_v58  ;;  %v744_v15 = vadd.f32 1.0, %v1397_v0 }
 0x192   :  { %v1401_v10 = vpop.eup %1400  ;;  %1326 = vmatpush2.msra.mxu1 %v988_v62  ;;  %v755_v13 = vmul.f32 %v739_v6, %v691_v5  ;;  %v746_v22 = vadd.f32 1.0, %v1399_v7 }
 0x193   :  { %v1403_v18 = vpop.eup %1402  ;;  %1250 = vmatprep.mubr.f32.mxu0 %v753_v9  ;;  %v745_v60 = vadd.f32 1.0, %v1401_v10  ;;  %v760_v29 = vmul.f32 %v744_v15, %v696_v23 }
 0x194   :  { %1327 = vmatprep.mubr.f32.mxu1 %v755_v13  ;;  %1251 = vmatmul.mubr.f32.vlgmr.msra.gmra.mxu0 %v752_v59  ;;  %v747_v49 = vadd.f32 1.0, %v1403_v18  ;;  %v762_v30 = vmul.f32 %v746_v22, %v698_v26 }
 0x195   :  { %1328 = vmatmul.mubr.f32.vlgmr.msra.gmra.mxu1 %v754_v16  ;;  %v761_v27 = vmul.f32 %v745_v60, %v697_v48 }
 0x196   :  { %v763_v28 = vmul.f32 %v747_v49, %v699_v25 }
 0x197   :  { %1256 = vmatprep.mubr.f32.mxu0 %v761_v27 }
 0x198   :  { %1333 = vmatprep.mubr.f32.mxu1 %v763_v28  ;;  %1257 = vmatmul.mubr.f32.gmra.mxu0 %v760_v29 }
 0x199   :  { %1334 = vmatmul.mubr.f32.gmra.mxu1 %v762_v30 }
 0x210   :  { %v1098_v24 = vpop.f32.mrf.mxu0 }
 0x211   :  { %v1175_v19 = vpop.f32.mrf.mxu1  ;;  %v1099_v35 = vadd.f32 %v1098_v24, %v1025_v31 }
 0x212   :  { %v1100_v32 = vpop.f32.mrf.mxu0 }
 0x213   :  { %v1177_v1 = vpop.f32.mrf.mxu1  ;;  %v1101_v36 = vadd.f32 %v1100_v32, %v1029_v4  ;;  %v1176_v20 = vadd.f32 %v1175_v19, %v1099_v35 }
 0x215   :  { %v1178_v17 = vadd.f32 %v1177_v1, %v1101_v36 }
 0x238   :  { %v1104_v34 = vpop.f32.mrf.mxu0 }
 0x239   :  { %v1105_v38 = vadd.f32 %v1104_v34, %v1025_v31 }
 0x23a   :  { %v1106_v37 = vpop.f32.mrf.mxu0 }
 0x23b   :  { %v1181_v33 = vpop.f32.mrf.mxu1  ;;  %v1107_v41 = vadd.f32 %v1106_v37, %v1029_v4 }
 0x23c   :  { %v1182_v12 = vadd.f32 %v1181_v33, %v1105_v38 }
 0x23d   :  { %v1183_v39 = vpop.f32.mrf.mxu1 }
 0x23e   :  { %v1184_v21 = vadd.f32 %v1183_v39, %v1107_v41 }
 0x254   :  { %v1252_v40 = vpop.f32.mrf.mxu0 }
 0x255   :  { %v1253_v42 = vadd.f32 %v1252_v40, %v1176_v20  ;;  %v1329_v43 = vpop.f32.mrf.mxu1 }
 0x256   :  { %v1254_v44 = vpop.f32.mrf.mxu0 }
 0x257   :  { %v1330_v45 = vadd.f32 %v1329_v43, %v1253_v42  ;;  %v1255_v46 = vadd.f32 %v1254_v44, %v1178_v17  ;;  %v1331_v11 = vpop.f32.mrf.mxu1 }
 0x258   :  { %v1258_v63 = vpop.f32.mrf.mxu0 }
 0x259   :  { %1340 = vst [vmem:[#allocation10] sm:$0xff] %v1330_v45  ;;  %v1332_v47 = vadd.f32 %v1331_v11, %v1255_v46  ;;  %v1259_v50 = vadd.f32 %v1258_v63, %v1182_v12  ;;  %v1335_v51 = vpop.f32.mrf.mxu1 }
 0x25a   :  { %v1260_v52 = vpop.f32.mrf.mxu0 }
 0x25b   :  { %1341 = vst [vmem:[#allocation10 + $0x8] sm:$0xff] %v1332_v47  ;;  %v1336_v53 = vadd.f32 %v1335_v51, %v1259_v50  ;;  %v1261_v54 = vadd.f32 %v1260_v52, %v1184_v21  ;;  %v1337_v55 = vpop.f32.mrf.mxu1 }
 0x25d   :  { %1342 = vst [vmem:[#allocation10 + $0x10] sm:$0xff] %v1336_v53  ;;  %v1338_v56 = vadd.f32 %v1337_v55, %v1261_v54 }
 0x25f   :  { %1343 = vst [vmem:[#allocation10 + $0x18] sm:$0xff] %v1338_v56 }
 0x260   :  { %1495 = shalt.err (!%p1492_p10)
}
 0x261   :  { %1355 = dma.vmem_to_hbm [thread:$0]  %s1350_s15, 512, %s1699_s5, [#allocation4], %s1516_s28, %s1516_s28, %s1517_s29  }
 0x262   :  { %1510 = dma.done.wait [#allocation4], 512  }
 0x263   :  { %1511 = vsyncadd [#allocation4], 4294966784 }
 0x264   :  { %1359 = vsyncpa [#allocation3], 1 }
 0x265   :  { %1360 = vsyncpa [#allocation6], 1 }
 0x266   :  { %1361 = vsyncpa [#allocation9], 1 }
 0x267   :  { %1362 = vsyncpa [#allocation4], 1 }

// kernel: tpu_custom_call.1
= control target key start
LH: loop header
LB: loop body
LE: loop exit
PB: predicated region body
PF: predicated region fallthrough
CT: control target
= control target key end

     0   :  { %10 = vsyncpa [#allocation4], 0  ;;  %s1729_s0 = inlined_call_operand.hbm [shape: f32[16,256], index: 0, kind: input, shape index: {}]   ;;  %s1730_s1 = inlined_call_operand.hbm [shape: f32[256,1024], index: 1, kind: input, shape index: {}]   ;;  %s1731_s2 = inlined_call_operand.hbm [shape: f32[1,1024], index: 2, kind: input, shape index: {}]   ;;  %s1732_s3 = inlined_call_operand.hbm [shape: f32[1024,256], index: 3, kind: input, shape index: {}]   ;;  %s1733_s4 = inlined_call_operand.vmem [shape: f32[1,256], index: 4, kind: input, shape index: {}]   ;;  %s1734_s5 = inlined_call_operand.hbm [shape: f32[16,256], index: 5, kind: output, shape index: {}]  }
   0x1   :  { %11 = vsyncpa [#allocation7], 0 }
   0x2   :  { %12 = vsyncpa [#allocation10], 0 }
   0x3   :  { %13 = vsyncpa [#allocation5], 0  ;;  %s1547_s18 = smov [#allocation6]  }
   0x4   :  { %s31_s19 = sshll.u32 %s1547_s18, 4  ;;  %s32_s19 = int_to_ptr.vmem [resolvable:$true] %s31_s19 }
   0x5   :  { %s1447_s20 = scalar_lea.vmem %s32_s19, 32768  ;;  %p1452_p1 = scmp.lt.s32.totalorder %s32_s19, %s32_s19 }
   0x6   :  { %p1448_p0 = scmp.ne.s32.totalorder %s32_s19, %s1447_s20  ;;  %p1453_p2 = scmp.lt.s32.totalorder %s1447_s20, %s1447_s20 }
   0x8   :  { %p1454_p3 = por %p1453_p2, %p1452_p1 }
   0xa   :  { %p1455_p4 = pnand %p1454_p3, %p1448_p0 }
   0xc   :  { %1458 = shalt.err (!%p1455_p4)
}
   0xd   :  { %s1548_s21 = smov 1024   ;;  %s1549_s22 = smov 64  }
   0xe   :  { %37 = dma.hbm_to_vmem [thread:$0]  %s1730_s1, 32768, %s32_s19, [#allocation7], %s1548_s21, %s1548_s21, %s1549_s22  }
   0xf   :  { %s1550_s25 = smov [#allocation3]  }
  0x10   :  { %s19_s26 = sshll.u32 %s1550_s25, 4  ;;  %s20_s26 = int_to_ptr.vmem [resolvable:$true] %s19_s26 }
  0x11   :  { %s1467_s27 = scalar_lea.vmem %s20_s26, 512  ;;  %p1472_p6 = scmp.lt.s32.totalorder %s20_s26, %s20_s26 }
  0x12   :  { %p1468_p5 = scmp.ne.s32.totalorder %s20_s26, %s1467_s27  ;;  %p1473_p7 = scmp.lt.s32.totalorder %s1467_s27, %s1467_s27 }
  0x14   :  { %p1474_p8 = por %p1473_p7, %p1472_p6 }
  0x16   :  { %p1475_p9 = pnand %p1474_p8, %p1468_p5 }
  0x18   :  { %1478 = shalt.err (!%p1475_p9)
}
  0x19   :  { %s1551_s28 = smov 256   ;;  %s1552_s29 = smov 16  }
  0x1a   :  { %25 = dma.hbm_to_vmem [thread:$0]  %s1729_s0, 512, %s20_s26, [#allocation4], %s1551_s28, %s1551_s28, %s1552_s29  }
  0x1b   :  { %s1553_s1 = smov [#allocation8]   ;;  %s1554_s8 = smov [#allocation9]  }
  0x1c   :  { %s44_s7 = sshll.u32 %s1553_s1, 4  ;;  %s53_s9 = sshll.u32 %s1554_s8, 4  ;;  %s45_s7 = int_to_ptr.vmem [resolvable:$true] %s44_s7  ;;  %s54_s9 = int_to_ptr.vmem [resolvable:$true] %s53_s9 }
  0x1d   :  { %s1487_s10 = scalar_lea.vmem %s45_s7, 128  ;;  %p1492_p11 = scmp.lt.s32.totalorder %s45_s7, %s45_s7 }
  0x1e   :  { %p1488_p10 = scmp.ne.s32.totalorder %s45_s7, %s1487_s10  ;;  %p1493_p12 = scmp.lt.s32.totalorder %s1487_s10, %s1487_s10 }
  0x20   :  { %p1494_p13 = por %p1493_p12, %p1492_p11 }
  0x22   :  { %p1495_p0 = pnand %p1494_p13, %p1488_p10 }
  0x24   :  { %1498 = shalt.err (!%p1495_p0)
}
  0x25   :  { %47 = dma.hbm_to_vmem [thread:$0]  %s1731_s2, 128, %s45_s7, [#allocation7]  }
  0x26   :  { %s1507_s13 = scalar_lea.vmem %s54_s9, 32768  ;;  %p1512_p2 = scmp.lt.s32.totalorder %s54_s9, %s54_s9 }
  0x27   :  { %p1508_p1 = scmp.ne.s32.totalorder %s54_s9, %s1507_s13  ;;  %p1513_p3 = scmp.lt.s32.totalorder %s1507_s13, %s1507_s13 }
  0x29   :  { %p1514_p4 = por %p1513_p3, %p1512_p2 }
  0x2b   :  { %p1515_p5 = pnand %p1514_p4, %p1508_p1 }
  0x2d   :  { %1518 = shalt.err (!%p1515_p5)
}
  0x2e   :  { %59 = dma.hbm_to_vmem [thread:$0]  %s1732_s3, 32768, %s54_s9, [#allocation10], %s1551_s28, %s1551_s28, %s1552_s29  }
  0x2f   :  { %1539 = dma.done.wait [#allocation4], 512  }
  0x30   :  { %1540 = vsyncadd [#allocation4], 4294966784 }
  0x31   :  { %1541 = dma.done.wait [#allocation7], 32896  }
  0x32   :  { %1542 = vsyncadd [#allocation7], 4294934400 }
  0x33   :  { %1543 = dma.done.wait [#allocation10], 32768  }
  0x34   :  { %1544 = vsyncadd [#allocation10], 4294934528  ;;  %v199_v0 = vld [vmem:[#allocation6 + $0x3c8] sm:$0xff]  ;;  %v201_v1 = vld [vmem:[#allocation6 + $0x3d8] sm:$0xff] }
  0x35   :  { %v198_v2 = vld [vmem:[#allocation6 + $0x3c0] sm:$0xff]  ;;  %376 = vmatprep.subr.mxu0 %v199_v0  ;;  %453 = vmatprep.subr.mxu1 %v201_v1  ;;  %v200_v3 = vld [vmem:[#allocation6 + $0x3d0] sm:$0xff]  ;;  %v191_v4 = vld [vmem:[#allocation6 + $0x388] sm:$0xff] }
  0x36   :  { %v193_v5 = vld [vmem:[#allocation6 + $0x398] sm:$0xff]  ;;  %377 = vmatpush1.msra.mxu0 %v198_v2  ;;  %454 = vmatpush1.msra.mxu1 %v200_v3  ;;  %v190_v6 = vld [vmem:[#allocation6 + $0x380] sm:$0xff]  ;;  %v192_v7 = vld [vmem:[#allocation6 + $0x390] sm:$0xff] }
  0x37   :  { %v183_v8 = vld [vmem:[#allocation6 + $0x348] sm:$0xff]  ;;  %378 = vmatprep.subr.mxu0 %v191_v4  ;;  %455 = vmatprep.subr.mxu1 %v193_v5  ;;  %v185_v9 = vld [vmem:[#allocation6 + $0x358] sm:$0xff]  ;;  %v182_v10 = vld [vmem:[#allocation6 + $0x340] sm:$0xff] }
  0x38   :  { %v184_v11 = vld [vmem:[#allocation6 + $0x350] sm:$0xff]  ;;  %379 = vmatpush1.msra.mxu0 %v190_v6  ;;  %456 = vmatpush1.msra.mxu1 %v192_v7  ;;  %v175_v12 = vld [vmem:[#allocation6 + $0x308] sm:$0xff]  ;;  %v177_v13 = vld [vmem:[#allocation6 + $0x318] sm:$0xff] }
  0x39   :  { %380 = vmatprep.subr.mxu0 %v183_v8  ;;  %457 = vmatprep.subr.mxu1 %v185_v9  ;;  %v174_v14 = vld [vmem:[#allocation6 + $0x300] sm:$0xff]  ;;  %v176_v15 = vld [vmem:[#allocation6 + $0x310] sm:$0xff]  ;;  %v167_v16 = vld [vmem:[#allocation6 + $0x2c8] sm:$0xff] }
  0x3a   :  { %381 = vmatpush1.msra.mxu0 %v182_v10  ;;  %458 = vmatpush1.msra.mxu1 %v184_v11  ;;  %v169_v17 = vld [vmem:[#allocation6 + $0x2d8] sm:$0xff]  ;;  %v166_v18 = vld [vmem:[#allocation6 + $0x2c0] sm:$0xff]  ;;  %v168_v19 = vld [vmem:[#allocation6 + $0x2d0] sm:$0xff] }
  0x3b   :  { %382 = vmatprep.subr.mxu0 %v175_v12  ;;  %459 = vmatprep.subr.mxu1 %v177_v13  ;;  %v159_v20 = vld [vmem:[#allocation6 + $0x288] sm:$0xff]  ;;  %v161_v21 = vld [vmem:[#allocation6 + $0x298] sm:$0xff]  ;;  %v158_v22 = vld [vmem:[#allocation6 + $0x280] sm:$0xff] }
  0x3c   :  { %383 = vmatpush1.msra.mxu0 %v174_v14  ;;  %460 = vmatpush1.msra.mxu1 %v176_v15  ;;  %v160_v23 = vld [vmem:[#allocation6 + $0x290] sm:$0xff]  ;;  %v151_v24 = vld [vmem:[#allocation6 + $0x248] sm:$0xff]  ;;  %v153_v25 = vld [vmem:[#allocation6 + $0x258] sm:$0xff] }
  0x3d   :  { %384 = vmatprep.subr.mxu0 %v167_v16  ;;  %461 = vmatprep.subr.mxu1 %v169_v17  ;;  %v150_v26 = vld [vmem:[#allocation6 + $0x240] sm:$0xff]  ;;  %v152_v27 = vld [vmem:[#allocation6 + $0x250] sm:$0xff]  ;;  %v143_v28 = vld [vmem:[#allocation6 + $0x208] sm:$0xff] }
  0x3e   :  { %385 = vmatpush1.msra.mxu0 %v166_v18  ;;  %462 = vmatpush1.msra.mxu1 %v168_v19  ;;  %v145_v29 = vld [vmem:[#allocation6 + $0x218] sm:$0xff]  ;;  %v142_v30 = vld [vmem:[#allocation6 + $0x200] sm:$0xff]  ;;  %v144_v31 = vld [vmem:[#allocation6 + $0x210] sm:$0xff] }
  0x3f   :  { %386 = vmatprep.subr.mxu0 %v159_v20  ;;  %463 = vmatprep.subr.mxu1 %v161_v21  ;;  %v135_v32 = vld [vmem:[#allocation6 + $0x1c8] sm:$0xff]  ;;  %v137_v33 = vld [vmem:[#allocation6 + $0x1d8] sm:$0xff]  ;;  %v134_v34 = vld [vmem:[#allocation6 + $0x1c0] sm:$0xff] }
  0x40   :  { %387 = vmatpush1.msra.mxu0 %v158_v22  ;;  %464 = vmatpush1.msra.mxu1 %v160_v23  ;;  %v136_v35 = vld [vmem:[#allocation6 + $0x1d0] sm:$0xff]  ;;  %v127_v36 = vld [vmem:[#allocation6 + $0x188] sm:$0xff]  ;;  %v129_v37 = vld [vmem:[#allocation6 + $0x198] sm:$0xff] }
  0x41   :  { %388 = vmatprep.subr.mxu0 %v151_v24  ;;  %465 = vmatprep.subr.mxu1 %v153_v25  ;;  %v126_v38 = vld [vmem:[#allocation6 + $0x180] sm:$0xff]  ;;  %v128_v39 = vld [vmem:[#allocation6 + $0x190] sm:$0xff]  ;;  %v119_v40 = vld [vmem:[#allocation6 + $0x148] sm:$0xff] }
  0x42   :  { %389 = vmatpush1.msra.mxu0 %v150_v26  ;;  %466 = vmatpush1.msra.mxu1 %v152_v27  ;;  %v121_v41 = vld [vmem:[#allocation6 + $0x158] sm:$0xff]  ;;  %v118_v42 = vld [vmem:[#allocation6 + $0x140] sm:$0xff]  ;;  %v120_v43 = vld [vmem:[#allocation6 + $0x150] sm:$0xff] }
  0x43   :  { %390 = vmatprep.subr.mxu0 %v143_v28  ;;  %467 = vmatprep.subr.mxu1 %v145_v29  ;;  %v111_v44 = vld [vmem:[#allocation6 + $0x108] sm:$0xff]  ;;  %v113_v45 = vld [vmem:[#allocation6 + $0x118] sm:$0xff]  ;;  %v110_v46 = vld [vmem:[#allocation6 + $0x100] sm:$0xff] }
  0x44   :  { %391 = vmatpush1.msra.mxu0 %v142_v30  ;;  %468 = vmatpush1.msra.mxu1 %v144_v31  ;;  %v112_v47 = vld [vmem:[#allocation6 + $0x110] sm:$0xff]  ;;  %v103_v48 = vld [vmem:[#allocation6 + $0xc8] sm:$0xff]  ;;  %v105_v49 = vld [vmem:[#allocation6 + $0xd8] sm:$0xff] }
  0x45   :  { %392 = vmatprep.subr.mxu0 %v135_v32  ;;  %469 = vmatprep.subr.mxu1 %v137_v33  ;;  %v102_v50 = vld [vmem:[#allocation6 + $0xc0] sm:$0xff]  ;;  %v104_v51 = vld [vmem:[#allocation6 + $0xd0] sm:$0xff]  ;;  %v95_v52 = vld [vmem:[#allocation6 + $0x88] sm:$0xff] }
  0x46   :  { %393 = vmatpush1.msra.mxu0 %v134_v34  ;;  %470 = vmatpush1.msra.mxu1 %v136_v35  ;;  %v97_v53 = vld [vmem:[#allocation6 + $0x98] sm:$0xff]  ;;  %v94_v54 = vld [vmem:[#allocation6 + $0x80] sm:$0xff]  ;;  %v96_v55 = vld [vmem:[#allocation6 + $0x90] sm:$0xff] }
  0x47   :  { %394 = vmatprep.subr.mxu0 %v127_v36  ;;  %471 = vmatprep.subr.mxu1 %v129_v37  ;;  %v87_v56 = vld [vmem:[#allocation6 + $0x48] sm:$0xff]  ;;  %v89_v57 = vld [vmem:[#allocation6 + $0x58] sm:$0xff]  ;;  %v86_v58 = vld [vmem:[#allocation6 + $0x40] sm:$0xff] }
  0x48   :  { %395 = vmatpush1.msra.mxu0 %v126_v38  ;;  %472 = vmatpush1.msra.mxu1 %v128_v39  ;;  %v88_v59 = vld [vmem:[#allocation6 + $0x50] sm:$0xff]  ;;  %v79_v60 = vld [vmem:[#allocation6 + $0x8] sm:$0xff]  ;;  %v81_v61 = vld [vmem:[#allocation6 + $0x18] sm:$0xff] }
  0x49   :  { %396 = vmatprep.subr.mxu0 %v119_v40  ;;  %473 = vmatprep.subr.mxu1 %v121_v41  ;;  %v78_v62 = vld [vmem:[#allocation6] sm:$0xff]  ;;  %v80_v63 = vld [vmem:[#allocation6 + $0x10] sm:$0xff]  ;;  %v327_v0 = vld [vmem:[#allocation6 + $0x7c8] sm:$0xff] }
  0x4a   :  { %397 = vmatpush1.msra.mxu0 %v118_v42  ;;  %474 = vmatpush1.msra.mxu1 %v120_v43  ;;  %v329_v1 = vld [vmem:[#allocation6 + $0x7d8] sm:$0xff]  ;;  %v326_v2 = vld [vmem:[#allocation6 + $0x7c0] sm:$0xff]  ;;  %v328_v3 = vld [vmem:[#allocation6 + $0x7d0] sm:$0xff] }
  0x4b   :  { %398 = vmatprep.subr.mxu0 %v111_v44  ;;  %475 = vmatprep.subr.mxu1 %v113_v45  ;;  %v319_v4 = vld [vmem:[#allocation6 + $0x788] sm:$0xff]  ;;  %v321_v5 = vld [vmem:[#allocation6 + $0x798] sm:$0xff]  ;;  %v318_v6 = vld [vmem:[#allocation6 + $0x780] sm:$0xff] }
  0x4c   :  { %399 = vmatpush1.msra.mxu0 %v110_v46  ;;  %476 = vmatpush1.msra.mxu1 %v112_v47  ;;  %v320_v7 = vld [vmem:[#allocation6 + $0x790] sm:$0xff]  ;;  %v311_v8 = vld [vmem:[#allocation6 + $0x748] sm:$0xff]  ;;  %v313_v9 = vld [vmem:[#allocation6 + $0x758] sm:$0xff] }
  0x4d   :  { %400 = vmatprep.subr.mxu0 %v103_v48  ;;  %477 = vmatprep.subr.mxu1 %v105_v49  ;;  %v310_v10 = vld [vmem:[#allocation6 + $0x740] sm:$0xff]  ;;  %v312_v11 = vld [vmem:[#allocation6 + $0x750] sm:$0xff]  ;;  %v303_v12 = vld [vmem:[#allocation6 + $0x708] sm:$0xff] }
  0x4e   :  { %401 = vmatpush1.msra.mxu0 %v102_v50  ;;  %478 = vmatpush1.msra.mxu1 %v104_v51  ;;  %v305_v13 = vld [vmem:[#allocation6 + $0x718] sm:$0xff]  ;;  %v302_v14 = vld [vmem:[#allocation6 + $0x700] sm:$0xff]  ;;  %v304_v15 = vld [vmem:[#allocation6 + $0x710] sm:$0xff] }
  0x4f   :  { %402 = vmatprep.subr.mxu0 %v95_v52  ;;  %479 = vmatprep.subr.mxu1 %v97_v53  ;;  %v295_v16 = vld [vmem:[#allocation6 + $0x6c8] sm:$0xff]  ;;  %v297_v17 = vld [vmem:[#allocation6 + $0x6d8] sm:$0xff]  ;;  %v294_v18 = vld [vmem:[#allocation6 + $0x6c0] sm:$0xff] }
  0x50   :  { %403 = vmatpush1.msra.mxu0 %v94_v54  ;;  %480 = vmatpush1.msra.mxu1 %v96_v55  ;;  %v296_v19 = vld [vmem:[#allocation6 + $0x6d0] sm:$0xff]  ;;  %v287_v20 = vld [vmem:[#allocation6 + $0x688] sm:$0xff]  ;;  %v289_v21 = vld [vmem:[#allocation6 + $0x698] sm:$0xff] }
  0x51   :  { %404 = vmatprep.subr.mxu0 %v87_v56  ;;  %481 = vmatprep.subr.mxu1 %v89_v57  ;;  %v286_v22 = vld [vmem:[#allocation6 + $0x680] sm:$0xff]  ;;  %v288_v23 = vld [vmem:[#allocation6 + $0x690] sm:$0xff]  ;;  %v279_v24 = vld [vmem:[#allocation6 + $0x648] sm:$0xff] }
  0x52   :  { %405 = vmatpush1.msra.mxu0 %v86_v58  ;;  %482 = vmatpush1.msra.mxu1 %v88_v59  ;;  %v281_v25 = vld [vmem:[#allocation6 + $0x658] sm:$0xff]  ;;  %v278_v26 = vld [vmem:[#allocation6 + $0x640] sm:$0xff]  ;;  %v280_v27 = vld [vmem:[#allocation6 + $0x650] sm:$0xff] }
  0x53   :  { %406 = vmatprep.subr.mxu0 %v79_v60  ;;  %483 = vmatprep.subr.mxu1 %v81_v61  ;;  %v271_v28 = vld [vmem:[#allocation6 + $0x608] sm:$0xff]  ;;  %v273_v29 = vld [vmem:[#allocation6 + $0x618] sm:$0xff]  ;;  %v270_v30 = vld [vmem:[#allocation6 + $0x600] sm:$0xff] }
  0x54   :  { %407 = vmatpush1.msra.mxu0 %v78_v62  ;;  %484 = vmatpush1.msra.mxu1 %v80_v63  ;;  %v272_v31 = vld [vmem:[#allocation6 + $0x610] sm:$0xff]  ;;  %v263_v32 = vld [vmem:[#allocation6 + $0x5c8] sm:$0xff]  ;;  %v265_v33 = vld [vmem:[#allocation6 + $0x5d8] sm:$0xff] }
  0x55   :  { %408 = vmatprep.subr.mxu0 %v327_v0  ;;  %485 = vmatprep.subr.mxu1 %v329_v1  ;;  %v262_v34 = vld [vmem:[#allocation6 + $0x5c0] sm:$0xff]  ;;  %v264_v35 = vld [vmem:[#allocation6 + $0x5d0] sm:$0xff]  ;;  %v255_v36 = vld [vmem:[#allocation6 + $0x588] sm:$0xff] }
  0x56   :  { %409 = vmatpush2.msra.mxu0 %v326_v2  ;;  %486 = vmatpush2.msra.mxu1 %v328_v3  ;;  %v257_v37 = vld [vmem:[#allocation6 + $0x598] sm:$0xff]  ;;  %v254_v38 = vld [vmem:[#allocation6 + $0x580] sm:$0xff]  ;;  %v256_v39 = vld [vmem:[#allocation6 + $0x590] sm:$0xff] }
  0x57   :  { %410 = vmatprep.subr.mxu0 %v319_v4  ;;  %487 = vmatprep.subr.mxu1 %v321_v5  ;;  %v247_v40 = vld [vmem:[#allocation6 + $0x548] sm:$0xff]  ;;  %v249_v41 = vld [vmem:[#allocation6 + $0x558] sm:$0xff]  ;;  %v246_v42 = vld [vmem:[#allocation6 + $0x540] sm:$0xff] }
  0x58   :  { %411 = vmatpush2.msra.mxu0 %v318_v6  ;;  %488 = vmatpush2.msra.mxu1 %v320_v7  ;;  %v248_v43 = vld [vmem:[#allocation6 + $0x550] sm:$0xff]  ;;  %v239_v44 = vld [vmem:[#allocation6 + $0x508] sm:$0xff]  ;;  %v241_v45 = vld [vmem:[#allocation6 + $0x518] sm:$0xff] }
  0x59   :  { %412 = vmatprep.subr.mxu0 %v311_v8  ;;  %489 = vmatprep.subr.mxu1 %v313_v9  ;;  %v238_v46 = vld [vmem:[#allocation6 + $0x500] sm:$0xff]  ;;  %v240_v47 = vld [vmem:[#allocation6 + $0x510] sm:$0xff]  ;;  %v231_v48 = vld [vmem:[#allocation6 + $0x4c8] sm:$0xff] }
  0x5a   :  { %413 = vmatpush2.msra.mxu0 %v310_v10  ;;  %490 = vmatpush2.msra.mxu1 %v312_v11  ;;  %v233_v49 = vld [vmem:[#allocation6 + $0x4d8] sm:$0xff]  ;;  %v230_v50 = vld [vmem:[#allocation6 + $0x4c0] sm:$0xff]  ;;  %v232_v51 = vld [vmem:[#allocation6 + $0x4d0] sm:$0xff] }
  0x5b   :  { %414 = vmatprep.subr.mxu0 %v303_v12  ;;  %491 = vmatprep.subr.mxu1 %v305_v13  ;;  %v223_v52 = vld [vmem:[#allocation6 + $0x488] sm:$0xff]  ;;  %v225_v53 = vld [vmem:[#allocation6 + $0x498] sm:$0xff]  ;;  %v222_v54 = vld [vmem:[#allocation6 + $0x480] sm:$0xff] }
  0x5c   :  { %415 = vmatpush2.msra.mxu0 %v302_v14  ;;  %492 = vmatpush2.msra.mxu1 %v304_v15  ;;  %v224_v55 = vld [vmem:[#allocation6 + $0x490] sm:$0xff]  ;;  %v215_v56 = vld [vmem:[#allocation6 + $0x448] sm:$0xff]  ;;  %v217_v57 = vld [vmem:[#allocation6 + $0x458] sm:$0xff] }
  0x5d   :  { %416 = vmatprep.subr.mxu0 %v295_v16  ;;  %493 = vmatprep.subr.mxu1 %v297_v17  ;;  %v214_v58 = vld [vmem:[#allocation6 + $0x440] sm:$0xff]  ;;  %v216_v59 = vld [vmem:[#allocation6 + $0x450] sm:$0xff]  ;;  %v207_v60 = vld [vmem:[#allocation6 + $0x408] sm:$0xff] }
  0x5e   :  { %417 = vmatpush2.msra.mxu0 %v294_v18  ;;  %494 = vmatpush2.msra.mxu1 %v296_v19  ;;  %v209_v61 = vld [vmem:[#allocation6 + $0x418] sm:$0xff]  ;;  %v206_v62 = vld [vmem:[#allocation6 + $0x400] sm:$0xff]  ;;  %v1604_v63 = vld [vmem:[#allocation3 + $0x8] sm:$0xff] }
  0x5f   :  { %418 = vmatprep.subr.mxu0 %v287_v20  ;;  %495 = vmatprep.subr.mxu1 %v289_v21  ;;  %v208_v0 = vld [vmem:[#allocation6 + $0x410] sm:$0xff]  ;;  %v1606_v1 = vld [vmem:[#allocation3] sm:$0xff]  ;;  %v203_v2 = vld [vmem:[#allocation6 + $0x3e8] sm:$0xff] }
  0x60   :  { %419 = vmatpush2.msra.mxu0 %v286_v22  ;;  %496 = vmatpush2.msra.mxu1 %v288_v23  ;;  %v205_v3 = vld [vmem:[#allocation6 + $0x3f8] sm:$0xff]  ;;  %v202_v4 = vld [vmem:[#allocation6 + $0x3e0] sm:$0xff]  ;;  %v204_v5 = vld [vmem:[#allocation6 + $0x3f0] sm:$0xff] }
  0x61   :  { %420 = vmatprep.subr.mxu0 %v279_v24  ;;  %497 = vmatprep.subr.mxu1 %v281_v25  ;;  %v195_v6 = vld [vmem:[#allocation6 + $0x3a8] sm:$0xff]  ;;  %v197_v7 = vld [vmem:[#allocation6 + $0x3b8] sm:$0xff]  ;;  %v194_v8 = vld [vmem:[#allocation6 + $0x3a0] sm:$0xff] }
  0x62   :  { %421 = vmatpush2.msra.mxu0 %v278_v26  ;;  %498 = vmatpush2.msra.mxu1 %v280_v27  ;;  %v196_v9 = vld [vmem:[#allocation6 + $0x3b0] sm:$0xff]  ;;  %v187_v10 = vld [vmem:[#allocation6 + $0x368] sm:$0xff]  ;;  %v189_v11 = vld [vmem:[#allocation6 + $0x378] sm:$0xff] }
  0x63   :  { %422 = vmatprep.subr.mxu0 %v271_v28  ;;  %499 = vmatprep.subr.mxu1 %v273_v29  ;;  %v186_v12 = vld [vmem:[#allocation6 + $0x360] sm:$0xff]  ;;  %v188_v13 = vld [vmem:[#allocation6 + $0x370] sm:$0xff]  ;;  %v179_v14 = vld [vmem:[#allocation6 + $0x328] sm:$0xff] }
  0x64   :  { %423 = vmatpush2.msra.mxu0 %v270_v30  ;;  %500 = vmatpush2.msra.mxu1 %v272_v31  ;;  %v181_v15 = vld [vmem:[#allocation6 + $0x338] sm:$0xff]  ;;  %v178_v16 = vld [vmem:[#allocation6 + $0x320] sm:$0xff]  ;;  %v180_v17 = vld [vmem:[#allocation6 + $0x330] sm:$0xff] }
  0x65   :  { %424 = vmatprep.subr.mxu0 %v263_v32  ;;  %501 = vmatprep.subr.mxu1 %v265_v33  ;;  %v171_v18 = vld [vmem:[#allocation6 + $0x2e8] sm:$0xff]  ;;  %v173_v19 = vld [vmem:[#allocation6 + $0x2f8] sm:$0xff]  ;;  %v170_v20 = vld [vmem:[#allocation6 + $0x2e0] sm:$0xff] }
  0x66   :  { %425 = vmatpush2.msra.mxu0 %v262_v34  ;;  %502 = vmatpush2.msra.mxu1 %v264_v35  ;;  %v172_v21 = vld [vmem:[#allocation6 + $0x2f0] sm:$0xff]  ;;  %v163_v22 = vld [vmem:[#allocation6 + $0x2a8] sm:$0xff]  ;;  %v165_v23 = vld [vmem:[#allocation6 + $0x2b8] sm:$0xff] }
  0x67   :  { %426 = vmatprep.subr.mxu0 %v255_v36  ;;  %503 = vmatprep.subr.mxu1 %v257_v37  ;;  %v162_v24 = vld [vmem:[#allocation6 + $0x2a0] sm:$0xff]  ;;  %v164_v25 = vld [vmem:[#allocation6 + $0x2b0] sm:$0xff]  ;;  %v155_v26 = vld [vmem:[#allocation6 + $0x268] sm:$0xff] }
  0x68   :  { %427 = vmatpush2.msra.mxu0 %v254_v38  ;;  %504 = vmatpush2.msra.mxu1 %v256_v39  ;;  %v157_v27 = vld [vmem:[#allocation6 + $0x278] sm:$0xff]  ;;  %v154_v28 = vld [vmem:[#allocation6 + $0x260] sm:$0xff]  ;;  %v156_v29 = vld [vmem:[#allocation6 + $0x270] sm:$0xff] }
  0x69   :  { %428 = vmatprep.subr.mxu0 %v247_v40  ;;  %505 = vmatprep.subr.mxu1 %v249_v41  ;;  %v147_v30 = vld [vmem:[#allocation6 + $0x228] sm:$0xff]  ;;  %v149_v31 = vld [vmem:[#allocation6 + $0x238] sm:$0xff]  ;;  %v146_v32 = vld [vmem:[#allocation6 + $0x220] sm:$0xff] }
  0x6a   :  { %429 = vmatpush2.msra.mxu0 %v246_v42  ;;  %506 = vmatpush2.msra.mxu1 %v248_v43  ;;  %v148_v33 = vld [vmem:[#allocation6 + $0x230] sm:$0xff]  ;;  %v139_v34 = vld [vmem:[#allocation6 + $0x1e8] sm:$0xff]  ;;  %v141_v35 = vld [vmem:[#allocation6 + $0x1f8] sm:$0xff] }
  0x6b   :  { %430 = vmatprep.subr.mxu0 %v239_v44  ;;  %507 = vmatprep.subr.mxu1 %v241_v45  ;;  %v138_v36 = vld [vmem:[#allocation6 + $0x1e0] sm:$0xff]  ;;  %v140_v37 = vld [vmem:[#allocation6 + $0x1f0] sm:$0xff]  ;;  %v131_v38 = vld [vmem:[#allocation6 + $0x1a8] sm:$0xff] }
  0x6c   :  { %431 = vmatpush2.msra.mxu0 %v238_v46  ;;  %508 = vmatpush2.msra.mxu1 %v240_v47  ;;  %v133_v39 = vld [vmem:[#allocation6 + $0x1b8] sm:$0xff]  ;;  %v130_v40 = vld [vmem:[#allocation6 + $0x1a0] sm:$0xff]  ;;  %v132_v41 = vld [vmem:[#allocation6 + $0x1b0] sm:$0xff] }
  0x6d   :  { %432 = vmatprep.subr.mxu0 %v231_v48  ;;  %509 = vmatprep.subr.mxu1 %v233_v49  ;;  %v123_v42 = vld [vmem:[#allocation6 + $0x168] sm:$0xff]  ;;  %v125_v43 = vld [vmem:[#allocation6 + $0x178] sm:$0xff]  ;;  %v122_v44 = vld [vmem:[#allocation6 + $0x160] sm:$0xff] }
  0x6e   :  { %433 = vmatpush2.msra.mxu0 %v230_v50  ;;  %510 = vmatpush2.msra.mxu1 %v232_v51  ;;  %v124_v45 = vld [vmem:[#allocation6 + $0x170] sm:$0xff]  ;;  %v115_v46 = vld [vmem:[#allocation6 + $0x128] sm:$0xff]  ;;  %v117_v47 = vld [vmem:[#allocation6 + $0x138] sm:$0xff] }
  0x6f   :  { %434 = vmatprep.subr.mxu0 %v223_v52  ;;  %511 = vmatprep.subr.mxu1 %v225_v53  ;;  %v114_v48 = vld [vmem:[#allocation6 + $0x120] sm:$0xff]  ;;  %v116_v49 = vld [vmem:[#allocation6 + $0x130] sm:$0xff]  ;;  %v107_v50 = vld [vmem:[#allocation6 + $0xe8] sm:$0xff] }
  0x70   :  { %435 = vmatpush2.msra.mxu0 %v222_v54  ;;  %512 = vmatpush2.msra.mxu1 %v224_v55  ;;  %v109_v51 = vld [vmem:[#allocation6 + $0xf8] sm:$0xff]  ;;  %v106_v52 = vld [vmem:[#allocation6 + $0xe0] sm:$0xff]  ;;  %v108_v53 = vld [vmem:[#allocation6 + $0xf0] sm:$0xff] }
  0x71   :  { %436 = vmatprep.subr.mxu0 %v215_v56  ;;  %513 = vmatprep.subr.mxu1 %v217_v57  ;;  %v99_v54 = vld [vmem:[#allocation6 + $0xa8] sm:$0xff]  ;;  %v101_v55 = vld [vmem:[#allocation6 + $0xb8] sm:$0xff]  ;;  %v98_v56 = vld [vmem:[#allocation6 + $0xa0] sm:$0xff] }
  0x72   :  { %437 = vmatpush2.msra.mxu0 %v214_v58  ;;  %514 = vmatpush2.msra.mxu1 %v216_v59  ;;  %v100_v57 = vld [vmem:[#allocation6 + $0xb0] sm:$0xff]  ;;  %v91_v58 = vld [vmem:[#allocation6 + $0x68] sm:$0xff]  ;;  %v93_v59 = vld [vmem:[#allocation6 + $0x78] sm:$0xff] }
  0x73   :  { %438 = vmatprep.subr.mxu0 %v207_v60  ;;  %515 = vmatprep.subr.mxu1 %v209_v61  ;;  %v90_v60 = vld [vmem:[#allocation6 + $0x60] sm:$0xff]  ;;  %v92_v61 = vld [vmem:[#allocation6 + $0x70] sm:$0xff] }
  0x74   :  { %439 = vmatpush2.msra.mxu0 %v206_v62  ;;  %440 = vmatprep.mubr.f32.mxu0 %v1604_v63  ;;  %v83_v62 = vld [vmem:[#allocation6 + $0x28] sm:$0xff] }
  0x75   :  { %516 = vmatpush2.msra.mxu1 %v208_v0  ;;  %517 = vmatprep.mubr.f32.mxu1 %v1604_v63  ;;  %v85_v0 = vld [vmem:[#allocation6 + $0x38] sm:$0xff] }
  0x76   :  { %441 = vmatmul.mubr.f32.vlgmr.msra.gmra.mxu0 %v1606_v1  ;;  %518 = vmatmul.mubr.f32.vlgmr.msra.gmra.mxu1 %v1606_v1 }
  0x77   :  { %530 = vmatprep.subr.mxu0 %v203_v2  ;;  %607 = vmatprep.subr.mxu1 %v205_v3  ;;  %v82_v2 = vld [vmem:[#allocation6 + $0x20] sm:$0xff]  ;;  %v84_v3 = vld [vmem:[#allocation6 + $0x30] sm:$0xff] }
  0x78   :  { %531 = vmatpush1.msra.mxu0 %v202_v4  ;;  %608 = vmatpush1.msra.mxu1 %v204_v5  ;;  %v331_v4 = vld [vmem:[#allocation6 + $0x7e8] sm:$0xff]  ;;  %v333_v5 = vld [vmem:[#allocation6 + $0x7f8] sm:$0xff] }
  0x79   :  { %532 = vmatprep.subr.mxu0 %v195_v6  ;;  %609 = vmatprep.subr.mxu1 %v197_v7  ;;  %v330_v6 = vld [vmem:[#allocation6 + $0x7e0] sm:$0xff]  ;;  %v332_v7 = vld [vmem:[#allocation6 + $0x7f0] sm:$0xff] }
  0x7a   :  { %533 = vmatpush1.msra.mxu0 %v194_v8  ;;  %610 = vmatpush1.msra.mxu1 %v196_v9  ;;  %v323_v8 = vld [vmem:[#allocation6 + $0x7a8] sm:$0xff]  ;;  %v325_v9 = vld [vmem:[#allocation6 + $0x7b8] sm:$0xff] }
  0x7b   :  { %534 = vmatprep.subr.mxu0 %v187_v10  ;;  %611 = vmatprep.subr.mxu1 %v189_v11  ;;  %v322_v10 = vld [vmem:[#allocation6 + $0x7a0] sm:$0xff]  ;;  %v324_v11 = vld [vmem:[#allocation6 + $0x7b0] sm:$0xff] }
  0x7c   :  { %535 = vmatpush1.msra.mxu0 %v186_v12  ;;  %612 = vmatpush1.msra.mxu1 %v188_v13  ;;  %v315_v12 = vld [vmem:[#allocation6 + $0x768] sm:$0xff]  ;;  %v317_v13 = vld [vmem:[#allocation6 + $0x778] sm:$0xff] }
  0x7d   :  { %536 = vmatprep.subr.mxu0 %v179_v14  ;;  %613 = vmatprep.subr.mxu1 %v181_v15  ;;  %v314_v14 = vld [vmem:[#allocation6 + $0x760] sm:$0xff]  ;;  %v316_v15 = vld [vmem:[#allocation6 + $0x770] sm:$0xff] }
  0x7e   :  { %537 = vmatpush1.msra.mxu0 %v178_v16  ;;  %614 = vmatpush1.msra.mxu1 %v180_v17  ;;  %v1612_v16 = vld [vmem:[#allocation3 + $0x18] sm:$0xff]  ;;  %v307_v17 = vld [vmem:[#allocation6 + $0x728] sm:$0xff] }
  0x7f   :  { %538 = vmatprep.subr.mxu0 %v171_v18  ;;  %615 = vmatprep.subr.mxu1 %v173_v19  ;;  %v309_v18 = vld [vmem:[#allocation6 + $0x738] sm:$0xff]  ;;  %v1614_v19 = vld [vmem:[#allocation3 + $0x10] sm:$0xff] }
  0x80   :  { %539 = vmatpush1.msra.mxu0 %v170_v20  ;;  %616 = vmatpush1.msra.mxu1 %v172_v21  ;;  %v306_v20 = vld [vmem:[#allocation6 + $0x720] sm:$0xff]  ;;  %v308_v21 = vld [vmem:[#allocation6 + $0x730] sm:$0xff] }
  0x81   :  { %540 = vmatprep.subr.mxu0 %v163_v22  ;;  %617 = vmatprep.subr.mxu1 %v165_v23  ;;  %v299_v22 = vld [vmem:[#allocation6 + $0x6e8] sm:$0xff]  ;;  %v301_v23 = vld [vmem:[#allocation6 + $0x6f8] sm:$0xff] }
  0x82   :  { %541 = vmatpush1.msra.mxu0 %v162_v24  ;;  %618 = vmatpush1.msra.mxu1 %v164_v25  ;;  %v298_v24 = vld [vmem:[#allocation6 + $0x6e0] sm:$0xff]  ;;  %v300_v25 = vld [vmem:[#allocation6 + $0x6f0] sm:$0xff] }
  0x83   :  { %542 = vmatprep.subr.mxu0 %v155_v26  ;;  %619 = vmatprep.subr.mxu1 %v157_v27  ;;  %v291_v26 = vld [vmem:[#allocation6 + $0x6a8] sm:$0xff]  ;;  %v293_v27 = vld [vmem:[#allocation6 + $0x6b8] sm:$0xff] }
  0x84   :  { %543 = vmatpush1.msra.mxu0 %v154_v28  ;;  %620 = vmatpush1.msra.mxu1 %v156_v29  ;;  %v290_v28 = vld [vmem:[#allocation6 + $0x6a0] sm:$0xff]  ;;  %v292_v29 = vld [vmem:[#allocation6 + $0x6b0] sm:$0xff] }
  0x85   :  { %544 = vmatprep.subr.mxu0 %v147_v30  ;;  %621 = vmatprep.subr.mxu1 %v149_v31  ;;  %v283_v30 = vld [vmem:[#allocation6 + $0x668] sm:$0xff]  ;;  %v285_v31 = vld [vmem:[#allocation6 + $0x678] sm:$0xff] }
  0x86   :  { %545 = vmatpush1.msra.mxu0 %v146_v32  ;;  %622 = vmatpush1.msra.mxu1 %v148_v33  ;;  %v282_v32 = vld [vmem:[#allocation6 + $0x660] sm:$0xff]  ;;  %v284_v33 = vld [vmem:[#allocation6 + $0x670] sm:$0xff] }
  0x87   :  { %546 = vmatprep.subr.mxu0 %v139_v34  ;;  %623 = vmatprep.subr.mxu1 %v141_v35  ;;  %v275_v34 = vld [vmem:[#allocation6 + $0x628] sm:$0xff]  ;;  %v277_v35 = vld [vmem:[#allocation6 + $0x638] sm:$0xff] }
  0x88   :  { %547 = vmatpush1.msra.mxu0 %v138_v36  ;;  %624 = vmatpush1.msra.mxu1 %v140_v37  ;;  %v274_v36 = vld [vmem:[#allocation6 + $0x620] sm:$0xff]  ;;  %v276_v37 = vld [vmem:[#allocation6 + $0x630] sm:$0xff] }
  0x89   :  { %548 = vmatprep.subr.mxu0 %v131_v38  ;;  %625 = vmatprep.subr.mxu1 %v133_v39  ;;  %v267_v38 = vld [vmem:[#allocation6 + $0x5e8] sm:$0xff]  ;;  %v269_v39 = vld [vmem:[#allocation6 + $0x5f8] sm:$0xff] }
  0x8a   :  { %549 = vmatpush1.msra.mxu0 %v130_v40  ;;  %626 = vmatpush1.msra.mxu1 %v132_v41  ;;  %v266_v40 = vld [vmem:[#allocation6 + $0x5e0] sm:$0xff]  ;;  %v268_v41 = vld [vmem:[#allocation6 + $0x5f0] sm:$0xff] }
  0x8b   :  { %550 = vmatprep.subr.mxu0 %v123_v42  ;;  %627 = vmatprep.subr.mxu1 %v125_v43  ;;  %v259_v42 = vld [vmem:[#allocation6 + $0x5a8] sm:$0xff]  ;;  %v261_v43 = vld [vmem:[#allocation6 + $0x5b8] sm:$0xff] }
  0x8c   :  { %551 = vmatpush1.msra.mxu0 %v122_v44  ;;  %628 = vmatpush1.msra.mxu1 %v124_v45  ;;  %v258_v44 = vld [vmem:[#allocation6 + $0x5a0] sm:$0xff]  ;;  %v260_v45 = vld [vmem:[#allocation6 + $0x5b0] sm:$0xff] }
  0x8d   :  { %552 = vmatprep.subr.mxu0 %v115_v46  ;;  %629 = vmatprep.subr.mxu1 %v117_v47  ;;  %v251_v46 = vld [vmem:[#allocation6 + $0x568] sm:$0xff]  ;;  %v253_v47 = vld [vmem:[#allocation6 + $0x578] sm:$0xff] }
  0x8e   :  { %553 = vmatpush1.msra.mxu0 %v114_v48  ;;  %630 = vmatpush1.msra.mxu1 %v116_v49  ;;  %v250_v48 = vld [vmem:[#allocation6 + $0x560] sm:$0xff]  ;;  %v252_v49 = vld [vmem:[#allocation6 + $0x570] sm:$0xff] }
  0x8f   :  { %554 = vmatprep.subr.mxu0 %v107_v50  ;;  %631 = vmatprep.subr.mxu1 %v109_v51  ;;  %v243_v50 = vld [vmem:[#allocation6 + $0x528] sm:$0xff]  ;;  %v245_v51 = vld [vmem:[#allocation6 + $0x538] sm:$0xff] }
  0x90   :  { %555 = vmatpush1.msra.mxu0 %v106_v52  ;;  %632 = vmatpush1.msra.mxu1 %v108_v53  ;;  %v242_v52 = vld [vmem:[#allocation6 + $0x520] sm:$0xff]  ;;  %v244_v53 = vld [vmem:[#allocation6 + $0x530] sm:$0xff] }
  0x91   :  { %556 = vmatprep.subr.mxu0 %v99_v54  ;;  %633 = vmatprep.subr.mxu1 %v101_v55  ;;  %v235_v54 = vld [vmem:[#allocation6 + $0x4e8] sm:$0xff]  ;;  %v237_v55 = vld [vmem:[#allocation6 + $0x4f8] sm:$0xff] }
  0x92   :  { %557 = vmatpush1.msra.mxu0 %v98_v56  ;;  %634 = vmatpush1.msra.mxu1 %v100_v57  ;;  %v234_v56 = vld [vmem:[#allocation6 + $0x4e0] sm:$0xff]  ;;  %v236_v57 = vld [vmem:[#allocation6 + $0x4f0] sm:$0xff] }
  0x93   :  { %558 = vmatprep.subr.mxu0 %v91_v58  ;;  %635 = vmatprep.subr.mxu1 %v93_v59  ;;  %v227_v58 = vld [vmem:[#allocation6 + $0x4a8] sm:$0xff]  ;;  %v229_v59 = vld [vmem:[#allocation6 + $0x4b8] sm:$0xff] }
  0x94   :  { %559 = vmatpush1.msra.mxu0 %v90_v60  ;;  %636 = vmatpush1.msra.mxu1 %v92_v61  ;;  %v226_v60 = vld [vmem:[#allocation6 + $0x4a0] sm:$0xff]  ;;  %v228_v61 = vld [vmem:[#allocation6 + $0x4b0] sm:$0xff] }
  0x95   :  { %560 = vmatprep.subr.mxu0 %v83_v62  ;;  %637 = vmatprep.subr.mxu1 %v85_v0  ;;  %v219_v62 = vld [vmem:[#allocation6 + $0x468] sm:$0xff]  ;;  %v221_v0 = vld [vmem:[#allocation6 + $0x478] sm:$0xff] }
  0x96   :  { %561 = vmatpush1.msra.mxu0 %v82_v2  ;;  %638 = vmatpush1.msra.mxu1 %v84_v3  ;;  %v218_v2 = vld [vmem:[#allocation6 + $0x460] sm:$0xff]  ;;  %v220_v3 = vld [vmem:[#allocation6 + $0x470] sm:$0xff] }
  0x97   :  { %562 = vmatprep.subr.mxu0 %v331_v4  ;;  %639 = vmatprep.subr.mxu1 %v333_v5  ;;  %v211_v4 = vld [vmem:[#allocation6 + $0x428] sm:$0xff]  ;;  %v213_v5 = vld [vmem:[#allocation6 + $0x438] sm:$0xff] }
  0x98   :  { %563 = vmatpush2.msra.mxu0 %v330_v6  ;;  %640 = vmatpush2.msra.mxu1 %v332_v7  ;;  %v210_v6 = vld [vmem:[#allocation6 + $0x420] sm:$0xff]  ;;  %v212_v7 = vld [vmem:[#allocation6 + $0x430] sm:$0xff] }
  0x99   :  { %564 = vmatprep.subr.mxu0 %v323_v8  ;;  %641 = vmatprep.subr.mxu1 %v325_v9  ;;  %v795_v8 = vld [vmem:[#allocation9 + $0xf8] sm:$0xff] }
  0x9a   :  { %565 = vmatpush2.msra.mxu0 %v322_v10  ;;  %642 = vmatpush2.msra.mxu1 %v324_v11  ;;  %v859_v9 = vld [vmem:[#allocation9 + $0x2f8] sm:$0xff]  ;;  %v794_v10 = vld [vmem:[#allocation9 + $0xf0] sm:$0xff] }
  0x9b   :  { %566 = vmatprep.subr.mxu0 %v315_v12  ;;  %643 = vmatprep.subr.mxu1 %v317_v13  ;;  %v858_v11 = vld [vmem:[#allocation9 + $0x2f0] sm:$0xff]  ;;  %v793_v12 = vld [vmem:[#allocation9 + $0xe8] sm:$0xff] }
  0x9c   :  { %567 = vmatpush2.msra.mxu0 %v314_v14  ;;  %644 = vmatpush2.msra.mxu1 %v316_v15  ;;  %v857_v13 = vld [vmem:[#allocation9 + $0x2e8] sm:$0xff]  ;;  %v792_v14 = vld [vmem:[#allocation9 + $0xe0] sm:$0xff]  ;;  %v791_v15 = vld [vmem:[#allocation9 + $0xd8] sm:$0xff] }
  0x9d   :  { %446 = vmatprep.mubr.f32.mxu0 %v1612_v16  ;;  %523 = vmatprep.mubr.f32.mxu1 %v1612_v16 }
  0x9e   :  { %568 = vmatprep.subr.mxu0 %v307_v17  ;;  %645 = vmatprep.subr.mxu1 %v309_v18  ;;  %v790_v17 = vld [vmem:[#allocation9 + $0xd0] sm:$0xff] }
  0x9f   :  { %447 = vmatmul.mubr.f32.gmra.mxu0 %v1614_v19  ;;  %524 = vmatmul.mubr.f32.gmra.mxu1 %v1614_v19  ;;  %v854_v18 = vld [vmem:[#allocation9 + $0x2d0] sm:$0xff] }
  0xa0   :  { %569 = vmatpush2.msra.mxu0 %v306_v20  ;;  %646 = vmatpush2.msra.mxu1 %v308_v21  ;;  %v853_v20 = vld [vmem:[#allocation9 + $0x2c8] sm:$0xff]  ;;  %v788_v21 = vld [vmem:[#allocation9 + $0xc0] sm:$0xff] }
  0xa1   :  { %570 = vmatprep.subr.mxu0 %v299_v22  ;;  %647 = vmatprep.subr.mxu1 %v301_v23  ;;  %v852_v22 = vld [vmem:[#allocation9 + $0x2c0] sm:$0xff]  ;;  %v787_v23 = vld [vmem:[#allocation9 + $0xb8] sm:$0xff] }
  0xa2   :  { %571 = vmatpush2.msra.mxu0 %v298_v24  ;;  %648 = vmatpush2.msra.mxu1 %v300_v25  ;;  %v851_v24 = vld [vmem:[#allocation9 + $0x2b8] sm:$0xff]  ;;  %v850_v25 = vld [vmem:[#allocation9 + $0x2b0] sm:$0xff] }
  0xa3   :  { %572 = vmatprep.subr.mxu0 %v291_v26  ;;  %649 = vmatprep.subr.mxu1 %v293_v27  ;;  %v785_v26 = vld [vmem:[#allocation9 + $0xa8] sm:$0xff] }
  0xa4   :  { %573 = vmatpush2.msra.mxu0 %v290_v28  ;;  %650 = vmatpush2.msra.mxu1 %v292_v29  ;;  %v849_v27 = vld [vmem:[#allocation9 + $0x2a8] sm:$0xff]  ;;  %v784_v28 = vld [vmem:[#allocation9 + $0xa0] sm:$0xff] }
  0xa5   :  { %574 = vmatprep.subr.mxu0 %v283_v30  ;;  %651 = vmatprep.subr.mxu1 %v285_v31  ;;  %v848_v29 = vld [vmem:[#allocation9 + $0x2a0] sm:$0xff]  ;;  %v783_v30 = vld [vmem:[#allocation9 + $0x98] sm:$0xff] }
  0xa6   :  { %575 = vmatpush2.msra.mxu0 %v282_v32  ;;  %652 = vmatpush2.msra.mxu1 %v284_v33  ;;  %v847_v31 = vld [vmem:[#allocation9 + $0x298] sm:$0xff]  ;;  %v782_v32 = vld [vmem:[#allocation9 + $0x90] sm:$0xff] }
  0xa7   :  { %576 = vmatprep.subr.mxu0 %v275_v34  ;;  %653 = vmatprep.subr.mxu1 %v277_v35  ;;  %v846_v33 = vld [vmem:[#allocation9 + $0x290] sm:$0xff]  ;;  %v781_v34 = vld [vmem:[#allocation9 + $0x88] sm:$0xff] }
  0xa8   :  { %577 = vmatpush2.msra.mxu0 %v274_v36  ;;  %654 = vmatpush2.msra.mxu1 %v276_v37  ;;  %v845_v35 = vld [vmem:[#allocation9 + $0x288] sm:$0xff]  ;;  %v780_v36 = vld [vmem:[#allocation9 + $0x80] sm:$0xff] }
  0xa9   :  { %578 = vmatprep.subr.mxu0 %v267_v38  ;;  %655 = vmatprep.subr.mxu1 %v269_v39  ;;  %v844_v37 = vld [vmem:[#allocation9 + $0x280] sm:$0xff]  ;;  %v779_v38 = vld [vmem:[#allocation9 + $0x78] sm:$0xff] }
  0xaa   :  { %579 = vmatpush2.msra.mxu0 %v266_v40  ;;  %656 = vmatpush2.msra.mxu1 %v268_v41  ;;  %v843_v39 = vld [vmem:[#allocation9 + $0x278] sm:$0xff]  ;;  %v778_v40 = vld [vmem:[#allocation9 + $0x70] sm:$0xff] }
  0xab   :  { %580 = vmatprep.subr.mxu0 %v259_v42  ;;  %657 = vmatprep.subr.mxu1 %v261_v43  ;;  %v842_v41 = vld [vmem:[#allocation9 + $0x270] sm:$0xff]  ;;  %v777_v42 = vld [vmem:[#allocation9 + $0x68] sm:$0xff] }
  0xac   :  { %581 = vmatpush2.msra.mxu0 %v258_v44  ;;  %658 = vmatpush2.msra.mxu1 %v260_v45  ;;  %v841_v43 = vld [vmem:[#allocation9 + $0x268] sm:$0xff]  ;;  %v776_v44 = vld [vmem:[#allocation9 + $0x60] sm:$0xff] }
  0xad   :  { %582 = vmatprep.subr.mxu0 %v251_v46  ;;  %659 = vmatprep.subr.mxu1 %v253_v47  ;;  %v840_v45 = vld [vmem:[#allocation9 + $0x260] sm:$0xff]  ;;  %v775_v46 = vld [vmem:[#allocation9 + $0x58] sm:$0xff] }
  0xae   :  { %583 = vmatpush2.msra.mxu0 %v250_v48  ;;  %660 = vmatpush2.msra.mxu1 %v252_v49  ;;  %v839_v47 = vld [vmem:[#allocation9 + $0x258] sm:$0xff]  ;;  %v774_v48 = vld [vmem:[#allocation9 + $0x50] sm:$0xff] }
  0xaf   :  { %584 = vmatprep.subr.mxu0 %v243_v50  ;;  %661 = vmatprep.subr.mxu1 %v245_v51  ;;  %v838_v49 = vld [vmem:[#allocation9 + $0x250] sm:$0xff]  ;;  %v773_v50 = vld [vmem:[#allocation9 + $0x48] sm:$0xff] }
  0xb0   :  { %585 = vmatpush2.msra.mxu0 %v242_v52  ;;  %662 = vmatpush2.msra.mxu1 %v244_v53  ;;  %v837_v51 = vld [vmem:[#allocation9 + $0x248] sm:$0xff]  ;;  %v772_v52 = vld [vmem:[#allocation9 + $0x40] sm:$0xff] }
  0xb1   :  { %586 = vmatprep.subr.mxu0 %v235_v54  ;;  %663 = vmatprep.subr.mxu1 %v237_v55  ;;  %v836_v53 = vld [vmem:[#allocation9 + $0x240] sm:$0xff]  ;;  %v771_v54 = vld [vmem:[#allocation9 + $0x38] sm:$0xff] }
  0xb2   :  { %587 = vmatpush2.msra.mxu0 %v234_v56  ;;  %664 = vmatpush2.msra.mxu1 %v236_v57  ;;  %v835_v55 = vld [vmem:[#allocation9 + $0x238] sm:$0xff]  ;;  %v770_v56 = vld [vmem:[#allocation9 + $0x30] sm:$0xff] }
  0xb3   :  { %588 = vmatprep.subr.mxu0 %v227_v58  ;;  %665 = vmatprep.subr.mxu1 %v229_v59  ;;  %v834_v57 = vld [vmem:[#allocation9 + $0x230] sm:$0xff]  ;;  %v769_v58 = vld [vmem:[#allocation9 + $0x28] sm:$0xff] }
  0xb4   :  { %589 = vmatpush2.msra.mxu0 %v226_v60  ;;  %666 = vmatpush2.msra.mxu1 %v228_v61  ;;  %v833_v59 = vld [vmem:[#allocation9 + $0x228] sm:$0xff]  ;;  %v768_v60 = vld [vmem:[#allocation9 + $0x20] sm:$0xff] }
  0xb5   :  { %590 = vmatprep.subr.mxu0 %v219_v62  ;;  %667 = vmatprep.subr.mxu1 %v221_v0  ;;  %v832_v61 = vld [vmem:[#allocation9 + $0x220] sm:$0xff]  ;;  %v767_v62 = vld [vmem:[#allocation9 + $0x18] sm:$0xff] }
  0xb6   :  { %591 = vmatpush2.msra.mxu0 %v218_v2  ;;  %668 = vmatpush2.msra.mxu1 %v220_v3  ;;  %v831_v0 = vld [vmem:[#allocation9 + $0x218] sm:$0xff]  ;;  %v766_v2 = vld [vmem:[#allocation9 + $0x10] sm:$0xff] }
  0xb7   :  { %592 = vmatprep.subr.mxu0 %v211_v4  ;;  %669 = vmatprep.subr.mxu1 %v213_v5  ;;  %v830_v3 = vld [vmem:[#allocation9 + $0x210] sm:$0xff]  ;;  %v765_v4 = vld [vmem:[#allocation9 + $0x8] sm:$0xff] }
  0xb8   :  { %593 = vmatpush2.msra.mxu0 %v210_v6  ;;  %594 = vmatprep.mubr.f32.mxu0 %v1604_v63  ;;  %v829_v5 = vld [vmem:[#allocation9 + $0x208] sm:$0xff]  ;;  %v764_v6 = vld [vmem:[#allocation9] sm:$0xff] }
  0xb9   :  { %670 = vmatpush2.msra.mxu1 %v212_v7  ;;  %671 = vmatprep.mubr.f32.mxu1 %v1604_v63  ;;  %v856_v63 = vld [vmem:[#allocation9 + $0x2e0] sm:$0xff] }
  0xba   :  { %595 = vmatmul.mubr.f32.vlgmr.msra.gmra.mxu0 %v1606_v1  ;;  %672 = vmatmul.mubr.f32.vlgmr.msra.gmra.mxu1 %v1606_v1  ;;  %v855_v1 = vld [vmem:[#allocation9 + $0x2d8] sm:$0xff]  ;;  %v828_v7 = vld [vmem:[#allocation9 + $0x200] sm:$0xff] }
  0xbb   :  { %600 = vmatprep.mubr.f32.mxu0 %v1612_v16  ;;  %677 = vmatprep.mubr.f32.mxu1 %v1612_v16  ;;  %v789_v16 = vld [vmem:[#allocation9 + $0xc8] sm:$0xff] }
  0xbc   :  { %1020 = vmatprep.subr.mxu0 %v795_v8  ;;  %1097 = vmatprep.subr.mxu1 %v859_v9  ;;  %v827_v8 = vld [vmem:[#allocation9 + $0x1f8] sm:$0xff] }
  0xbd   :  { %1021 = vmatpush1.msra.mxu0 %v794_v10  ;;  %1098 = vmatpush1.msra.mxu1 %v858_v11  ;;  %v891_v9 = vld [vmem:[#allocation9 + $0x3f8] sm:$0xff]  ;;  %v826_v10 = vld [vmem:[#allocation9 + $0x1f0] sm:$0xff] }
  0xbe   :  { %601 = vmatmul.mubr.f32.gmra.mxu0 %v1614_v19  ;;  %678 = vmatmul.mubr.f32.gmra.mxu1 %v1614_v19  ;;  %v786_v19 = vld [vmem:[#allocation9 + $0xb0] sm:$0xff] }
  0xbf   :  { %1022 = vmatprep.subr.mxu0 %v793_v12  ;;  %1099 = vmatprep.subr.mxu1 %v857_v13  ;;  %v890_v11 = vld [vmem:[#allocation9 + $0x3f0] sm:$0xff]  ;;  %v825_v12 = vld [vmem:[#allocation9 + $0x1e8] sm:$0xff] }
  0xc0   :  { %1023 = vmatpush1.msra.mxu0 %v792_v14  ;;  %1100 = vmatpush1.msra.mxu1 %v856_v63  ;;  %v889_v13 = vld [vmem:[#allocation9 + $0x3e8] sm:$0xff]  ;;  %v824_v14 = vld [vmem:[#allocation9 + $0x1e0] sm:$0xff] }
  0xc1   :  { %1024 = vmatprep.subr.mxu0 %v791_v15  ;;  %1101 = vmatprep.subr.mxu1 %v855_v1  ;;  %v888_v63 = vld [vmem:[#allocation9 + $0x3e0] sm:$0xff]  ;;  %v823_v15 = vld [vmem:[#allocation9 + $0x1d8] sm:$0xff] }
  0xc2   :  { %1025 = vmatpush1.msra.mxu0 %v790_v17  ;;  %1102 = vmatpush1.msra.mxu1 %v854_v18  ;;  %v887_v1 = vld [vmem:[#allocation9 + $0x3d8] sm:$0xff]  ;;  %v822_v17 = vld [vmem:[#allocation9 + $0x1d0] sm:$0xff] }
  0xc3   :  { %1026 = vmatprep.subr.mxu0 %v789_v16  ;;  %1103 = vmatprep.subr.mxu1 %v853_v20  ;;  %v886_v18 = vld [vmem:[#allocation9 + $0x3d0] sm:$0xff]  ;;  %v821_v16 = vld [vmem:[#allocation9 + $0x1c8] sm:$0xff] }
  0xc4   :  { %1027 = vmatpush1.msra.mxu0 %v788_v21  ;;  %1104 = vmatpush1.msra.mxu1 %v852_v22  ;;  %v885_v20 = vld [vmem:[#allocation9 + $0x3c8] sm:$0xff]  ;;  %v820_v21 = vld [vmem:[#allocation9 + $0x1c0] sm:$0xff] }
  0xc5   :  { %1028 = vmatprep.subr.mxu0 %v787_v23  ;;  %1105 = vmatprep.subr.mxu1 %v851_v24  ;;  %v884_v22 = vld [vmem:[#allocation9 + $0x3c0] sm:$0xff]  ;;  %v819_v23 = vld [vmem:[#allocation9 + $0x1b8] sm:$0xff] }
  0xc6   :  { %1029 = vmatpush1.msra.mxu0 %v786_v19  ;;  %1106 = vmatpush1.msra.mxu1 %v850_v25  ;;  %v883_v24 = vld [vmem:[#allocation9 + $0x3b8] sm:$0xff]  ;;  %v818_v19 = vld [vmem:[#allocation9 + $0x1b0] sm:$0xff] }
  0xc7   :  { %1030 = vmatprep.subr.mxu0 %v785_v26  ;;  %1107 = vmatprep.subr.mxu1 %v849_v27  ;;  %v882_v25 = vld [vmem:[#allocation9 + $0x3b0] sm:$0xff]  ;;  %v817_v26 = vld [vmem:[#allocation9 + $0x1a8] sm:$0xff] }
  0xc8   :  { %1031 = vmatpush1.msra.mxu0 %v784_v28  ;;  %1108 = vmatpush1.msra.mxu1 %v848_v29  ;;  %v881_v27 = vld [vmem:[#allocation9 + $0x3a8] sm:$0xff]  ;;  %v816_v28 = vld [vmem:[#allocation9 + $0x1a0] sm:$0xff] }
  0xc9   :  { %1032 = vmatprep.subr.mxu0 %v783_v30  ;;  %1109 = vmatprep.subr.mxu1 %v847_v31  ;;  %v880_v29 = vld [vmem:[#allocation9 + $0x3a0] sm:$0xff]  ;;  %v815_v30 = vld [vmem:[#allocation9 + $0x198] sm:$0xff] }
  0xca   :  { %1033 = vmatpush1.msra.mxu0 %v782_v32  ;;  %1110 = vmatpush1.msra.mxu1 %v846_v33  ;;  %v879_v31 = vld [vmem:[#allocation9 + $0x398] sm:$0xff]  ;;  %v814_v32 = vld [vmem:[#allocation9 + $0x190] sm:$0xff] }
  0xcb   :  { %1034 = vmatprep.subr.mxu0 %v781_v34  ;;  %1111 = vmatprep.subr.mxu1 %v845_v35  ;;  %v878_v33 = vld [vmem:[#allocation9 + $0x390] sm:$0xff]  ;;  %v813_v34 = vld [vmem:[#allocation9 + $0x188] sm:$0xff] }
  0xcc   :  { %1035 = vmatpush1.msra.mxu0 %v780_v36  ;;  %1112 = vmatpush1.msra.mxu1 %v844_v37  ;;  %v877_v35 = vld [vmem:[#allocation9 + $0x388] sm:$0xff]  ;;  %v812_v36 = vld [vmem:[#allocation9 + $0x180] sm:$0xff] }
  0xcd   :  { %1036 = vmatprep.subr.mxu0 %v779_v38  ;;  %1113 = vmatprep.subr.mxu1 %v843_v39  ;;  %v876_v37 = vld [vmem:[#allocation9 + $0x380] sm:$0xff]  ;;  %v811_v38 = vld [vmem:[#allocation9 + $0x178] sm:$0xff] }
  0xce   :  { %1037 = vmatpush1.msra.mxu0 %v778_v40  ;;  %1114 = vmatpush1.msra.mxu1 %v842_v41  ;;  %v875_v39 = vld [vmem:[#allocation9 + $0x378] sm:$0xff]  ;;  %v810_v40 = vld [vmem:[#allocation9 + $0x170] sm:$0xff] }
  0xcf   :  { %1038 = vmatprep.subr.mxu0 %v777_v42  ;;  %1115 = vmatprep.subr.mxu1 %v841_v43  ;;  %v874_v41 = vld [vmem:[#allocation9 + $0x370] sm:$0xff]  ;;  %v809_v42 = vld [vmem:[#allocation9 + $0x168] sm:$0xff] }
  0xd0   :  { %1039 = vmatpush1.msra.mxu0 %v776_v44  ;;  %1116 = vmatpush1.msra.mxu1 %v840_v45  ;;  %v873_v43 = vld [vmem:[#allocation9 + $0x368] sm:$0xff]  ;;  %v808_v44 = vld [vmem:[#allocation9 + $0x160] sm:$0xff] }
  0xd1   :  { %1040 = vmatprep.subr.mxu0 %v775_v46  ;;  %1117 = vmatprep.subr.mxu1 %v839_v47  ;;  %v872_v45 = vld [vmem:[#allocation9 + $0x360] sm:$0xff]  ;;  %v807_v46 = vld [vmem:[#allocation9 + $0x158] sm:$0xff] }
  0xd2   :  { %1041 = vmatpush1.msra.mxu0 %v774_v48  ;;  %1118 = vmatpush1.msra.mxu1 %v838_v49  ;;  %v871_v47 = vld [vmem:[#allocation9 + $0x358] sm:$0xff]  ;;  %v806_v48 = vld [vmem:[#allocation9 + $0x150] sm:$0xff] }
  0xd3   :  { %1042 = vmatprep.subr.mxu0 %v773_v50  ;;  %1119 = vmatprep.subr.mxu1 %v837_v51  ;;  %v870_v49 = vld [vmem:[#allocation9 + $0x350] sm:$0xff]  ;;  %v805_v50 = vld [vmem:[#allocation9 + $0x148] sm:$0xff] }
  0xd4   :  { %1043 = vmatpush1.msra.mxu0 %v772_v52  ;;  %1120 = vmatpush1.msra.mxu1 %v836_v53  ;;  %v869_v51 = vld [vmem:[#allocation9 + $0x348] sm:$0xff]  ;;  %v804_v52 = vld [vmem:[#allocation9 + $0x140] sm:$0xff] }
  0xd5   :  { %1044 = vmatprep.subr.mxu0 %v771_v54  ;;  %1121 = vmatprep.subr.mxu1 %v835_v55  ;;  %v868_v53 = vld [vmem:[#allocation9 + $0x340] sm:$0xff]  ;;  %v803_v54 = vld [vmem:[#allocation9 + $0x138] sm:$0xff] }
  0xd6   :  { %1045 = vmatpush1.msra.mxu0 %v770_v56  ;;  %1122 = vmatpush1.msra.mxu1 %v834_v57  ;;  %v867_v55 = vld [vmem:[#allocation9 + $0x338] sm:$0xff]  ;;  %v802_v56 = vld [vmem:[#allocation9 + $0x130] sm:$0xff] }
  0xd7   :  { %1046 = vmatprep.subr.mxu0 %v769_v58  ;;  %1123 = vmatprep.subr.mxu1 %v833_v59  ;;  %v866_v57 = vld [vmem:[#allocation9 + $0x330] sm:$0xff]  ;;  %v801_v58 = vld [vmem:[#allocation9 + $0x128] sm:$0xff] }
  0xd8   :  { %1047 = vmatpush1.msra.mxu0 %v768_v60  ;;  %1124 = vmatpush1.msra.mxu1 %v832_v61  ;;  %v865_v59 = vld [vmem:[#allocation9 + $0x328] sm:$0xff]  ;;  %v800_v60 = vld [vmem:[#allocation9 + $0x120] sm:$0xff] }
  0xd9   :  { %1048 = vmatprep.subr.mxu0 %v767_v62  ;;  %1125 = vmatprep.subr.mxu1 %v831_v0  ;;  %v864_v61 = vld [vmem:[#allocation9 + $0x320] sm:$0xff]  ;;  %v799_v62 = vld [vmem:[#allocation9 + $0x118] sm:$0xff] }
  0xda   :  { %1049 = vmatpush1.msra.mxu0 %v766_v2  ;;  %1126 = vmatpush1.msra.mxu1 %v830_v3  ;;  %v863_v0 = vld [vmem:[#allocation9 + $0x318] sm:$0xff]  ;;  %v798_v2 = vld [vmem:[#allocation9 + $0x110] sm:$0xff] }
  0xdb   :  { %1050 = vmatprep.subr.mxu0 %v765_v4  ;;  %1127 = vmatprep.subr.mxu1 %v829_v5  ;;  %v862_v3 = vld [vmem:[#allocation9 + $0x310] sm:$0xff]  ;;  %v797_v4 = vld [vmem:[#allocation9 + $0x108] sm:$0xff] }
  0xdc   :  { %1051 = vmatpush1.msra.mxu0 %v764_v6  ;;  %1128 = vmatpush1.msra.mxu1 %v828_v7  ;;  %v861_v5 = vld [vmem:[#allocation9 + $0x308] sm:$0xff]  ;;  %v796_v6 = vld [vmem:[#allocation9 + $0x100] sm:$0xff] }
  0xdd   :  { %1052 = vmatprep.subr.mxu0 %v827_v8  ;;  %1129 = vmatprep.subr.mxu1 %v891_v9  ;;  %v860_v7 = vld [vmem:[#allocation9 + $0x300] sm:$0xff]  ;;  %v923_v8 = vld [vmem:[#allocation9 + $0x4f8] sm:$0xff] }
  0xde   :  { %1053 = vmatpush2.msra.mxu0 %v826_v10  ;;  %1130 = vmatpush2.msra.mxu1 %v890_v11  ;;  %v987_v9 = vld [vmem:[#allocation9 + $0x6f8] sm:$0xff]  ;;  %v336_v10 = vlaneseq }
  0xdf   :  { %1054 = vmatprep.subr.mxu0 %v825_v12  ;;  %1131 = vmatprep.subr.mxu1 %v889_v13 }
  0xe0   :  { %1055 = vmatpush2.msra.mxu0 %v824_v14  ;;  %1132 = vmatpush2.msra.mxu1 %v888_v63  ;;  %v1628_v11 = vshrl.u32 %v336_v10, 7  ;;  %v1632_v14 = vld [vmem:[#allocation8] sm:$0xff]  ;;  %v974_v10 = vld [vmem:[#allocation9 + $0x690] sm:$0xff] }
  0xe1   :  { %1056 = vmatprep.subr.mxu0 %v823_v15  ;;  %1133 = vmatprep.subr.mxu1 %v887_v1 }
  0xe2   :  { %1057 = vmatpush2.msra.mxu0 %v822_v17  ;;  %1134 = vmatpush2.msra.mxu1 %v886_v18  ;;  %v338_v12 = vsub.s32 0, %v1628_v11  ;;  %v346_v13 = vsub.s32 2, %v1628_v11  ;;  %v342_v63 = vsub.s32 1, %v1628_v11  ;;  %v350_v15 = vsub.s32 3, %v1628_v11 }
  0xe3   :  { %1058 = vmatprep.subr.mxu0 %v821_v16  ;;  %1135 = vmatprep.subr.mxu1 %v885_v20 }
  0xe4   :  { %1059 = vmatpush2.msra.mxu0 %v820_v21  ;;  %1136 = vmatpush2.msra.mxu1 %v884_v22  ;;  %v1639_v1 = vrot.slane %v1632_v14, %v338_v12  ;;  %v1642_v17 = vrot.slane %v1632_v14, %v346_v13  ;;  %v1647_v20 = vrot.slane %v1632_v14, %v342_v63  ;;  %v909_v13 = vld [vmem:[#allocation9 + $0x488] sm:$0xff] }
  0xe5   :  { %1060 = vmatprep.subr.mxu0 %v819_v23  ;;  %1137 = vmatprep.subr.mxu1 %v883_v24  ;;  %v1650_v21 = vrot.slane %v1632_v14, %v350_v15  ;;  %v973_v15 = vld [vmem:[#allocation9 + $0x688] sm:$0xff] }
  0xe6   :  { %1061 = vmatpush2.msra.mxu0 %v818_v19  ;;  %1138 = vmatpush2.msra.mxu1 %v882_v25 }
  0xe7   :  { %1062 = vmatprep.subr.mxu0 %v817_v26  ;;  %1139 = vmatprep.subr.mxu1 %v881_v27 }
  0xe8   :  { %1063 = vmatpush2.msra.mxu0 %v816_v28  ;;  %1140 = vmatpush2.msra.mxu1 %v880_v29 }
  0xe9   :  { %1064 = vmatprep.subr.mxu0 %v815_v30  ;;  %1141 = vmatprep.subr.mxu1 %v879_v31 }
  0xea   :  { %1065 = vmatpush2.msra.mxu0 %v814_v32  ;;  %1142 = vmatpush2.msra.mxu1 %v878_v33 }
  0xeb   :  { %1066 = vmatprep.subr.mxu0 %v813_v34  ;;  %1143 = vmatprep.subr.mxu1 %v877_v35 }
  0xec   :  { %1067 = vmatpush2.msra.mxu0 %v812_v36  ;;  %1144 = vmatpush2.msra.mxu1 %v876_v37 }
  0xed   :  { %1068 = vmatprep.subr.mxu0 %v811_v38  ;;  %1145 = vmatprep.subr.mxu1 %v875_v39 }
  0xee   :  { %1069 = vmatpush2.msra.mxu0 %v810_v40  ;;  %1146 = vmatpush2.msra.mxu1 %v874_v41 }
  0xef   :  { %1070 = vmatprep.subr.mxu0 %v809_v42  ;;  %1147 = vmatprep.subr.mxu1 %v873_v43 }
  0xf0   :  { %1071 = vmatpush2.msra.mxu0 %v808_v44  ;;  %1148 = vmatpush2.msra.mxu1 %v872_v45 }
  0xf1   :  { %1072 = vmatprep.subr.mxu0 %v807_v46  ;;  %1149 = vmatprep.subr.mxu1 %v871_v47  ;;  %v922_v46 = vld [vmem:[#allocation9 + $0x4f0] sm:$0xff] }
  0xf2   :  { %1073 = vmatpush2.msra.mxu0 %v806_v48  ;;  %1150 = vmatpush2.msra.mxu1 %v870_v49  ;;  %v986_v48 = vld [vmem:[#allocation9 + $0x6f0] sm:$0xff]  ;;  %v921_v49 = vld [vmem:[#allocation9 + $0x4e8] sm:$0xff] }
  0xf3   :  { %1074 = vmatprep.subr.mxu0 %v805_v50  ;;  %1151 = vmatprep.subr.mxu1 %v869_v51  ;;  %v985_v50 = vld [vmem:[#allocation9 + $0x6e8] sm:$0xff]  ;;  %v920_v51 = vld [vmem:[#allocation9 + $0x4e0] sm:$0xff] }
  0xf4   :  { %1075 = vmatpush2.msra.mxu0 %v804_v52  ;;  %1152 = vmatpush2.msra.mxu1 %v868_v53  ;;  %v984_v52 = vld [vmem:[#allocation9 + $0x6e0] sm:$0xff]  ;;  %v919_v53 = vld [vmem:[#allocation9 + $0x4d8] sm:$0xff] }
  0xf5   :  { %1076 = vmatprep.subr.mxu0 %v803_v54  ;;  %1153 = vmatprep.subr.mxu1 %v867_v55  ;;  %v983_v54 = vld [vmem:[#allocation9 + $0x6d8] sm:$0xff]  ;;  %v918_v55 = vld [vmem:[#allocation9 + $0x4d0] sm:$0xff] }
  0xf6   :  { %1077 = vmatpush2.msra.mxu0 %v802_v56  ;;  %1154 = vmatpush2.msra.mxu1 %v866_v57  ;;  %v982_v56 = vld [vmem:[#allocation9 + $0x6d0] sm:$0xff]  ;;  %v917_v57 = vld [vmem:[#allocation9 + $0x4c8] sm:$0xff] }
  0xf7   :  { %1078 = vmatprep.subr.mxu0 %v801_v58  ;;  %1155 = vmatprep.subr.mxu1 %v865_v59  ;;  %v981_v58 = vld [vmem:[#allocation9 + $0x6c8] sm:$0xff]  ;;  %v916_v59 = vld [vmem:[#allocation9 + $0x4c0] sm:$0xff] }
  0xf8   :  { %1079 = vmatpush2.msra.mxu0 %v800_v60  ;;  %1156 = vmatpush2.msra.mxu1 %v864_v61  ;;  %v980_v60 = vld [vmem:[#allocation9 + $0x6c0] sm:$0xff]  ;;  %v915_v61 = vld [vmem:[#allocation9 + $0x4b8] sm:$0xff] }
  0xf9   :  { %1080 = vmatprep.subr.mxu0 %v799_v62  ;;  %1157 = vmatprep.subr.mxu1 %v863_v0  ;;  %v979_v62 = vld [vmem:[#allocation9 + $0x6b8] sm:$0xff]  ;;  %v914_v0 = vld [vmem:[#allocation9 + $0x4b0] sm:$0xff] }
  0xfa   :  { %1081 = vmatpush2.msra.mxu0 %v798_v2  ;;  %1158 = vmatpush2.msra.mxu1 %v862_v3  ;;  %v978_v2 = vld [vmem:[#allocation9 + $0x6b0] sm:$0xff]  ;;  %v913_v3 = vld [vmem:[#allocation9 + $0x4a8] sm:$0xff] }
  0xfb   :  { %1082 = vmatprep.subr.mxu0 %v797_v4  ;;  %1159 = vmatprep.subr.mxu1 %v861_v5  ;;  %v977_v4 = vld [vmem:[#allocation9 + $0x6a8] sm:$0xff]  ;;  %v912_v5 = vld [vmem:[#allocation9 + $0x4a0] sm:$0xff] }
  0xfc   :  { %1083 = vmatpush2.msra.mxu0 %v796_v6  ;;  %1160 = vmatpush2.msra.mxu1 %v860_v7  ;;  %v976_v6 = vld [vmem:[#allocation9 + $0x6a0] sm:$0xff]  ;;  %v911_v7 = vld [vmem:[#allocation9 + $0x498] sm:$0xff] }
  0xfd   :  { %1174 = vmatprep.subr.mxu0 %v923_v8  ;;  %1251 = vmatprep.subr.mxu1 %v987_v9  ;;  %v975_v8 = vld [vmem:[#allocation9 + $0x698] sm:$0xff]  ;;  %v910_v9 = vld [vmem:[#allocation9 + $0x490] sm:$0xff] }
 0x136   :  { %v442_v18 = vpop.f32.mrf.mxu0  ;;  %v519_v16 = vpop.f32.mrf.mxu1 }
 0x137   :  { %v443_v22 = vadd.f32 %v442_v18, %v1639_v1  ;;  %v520_v23 = vadd.f32 %v519_v16, %v1642_v17  ;;  %v908_v18 = vld [vmem:[#allocation9 + $0x480] sm:$0xff] }
 0x138   :  { %v444_v24 = vpop.f32.mrf.mxu0  ;;  %v521_v19 = vpop.f32.mrf.mxu1  ;;  %v972_v16 = vld [vmem:[#allocation9 + $0x680] sm:$0xff] }
 0x139   :  { %v700_v25 = vmul.f32 0.70710677, %v443_v22  ;;  %v702_v26 = vmul.f32 0.70710677, %v520_v23  ;;  %v445_v27 = vadd.f32 %v444_v24, %v1647_v20  ;;  %v522_v28 = vadd.f32 %v521_v19, %v1650_v21  ;;  %v971_v19 = vld [vmem:[#allocation9 + $0x678] sm:$0xff] }
 0x13a   :  { %v684_v39 = vmul.f32 0.5, %v443_v22  ;;  %v686_v42 = vmul.f32 0.5, %v520_v23  ;;  %v907_v22 = vld [vmem:[#allocation9 + $0x478] sm:$0xff] }
 0x13b   :  { %1407 = verf.f32 %v700_v25  ;;  %v701_v29 = vmul.f32 0.70710677, %v445_v27  ;;  %v703_v30 = vmul.f32 0.70710677, %v522_v28  ;;  %v685_v37 = vmul.f32 0.5, %v445_v27  ;;  %v906_v25 = vld [vmem:[#allocation9 + $0x470] sm:$0xff] }
 0x13c   :  { %1409 = verf.f32 %v702_v26  ;;  %v687_v40 = vmul.f32 0.5, %v522_v28  ;;  %v970_v28 = vld [vmem:[#allocation9 + $0x670] sm:$0xff] }
 0x13d   :  { %1411 = verf.f32 %v701_v29  ;;  %v905_v29 = vld [vmem:[#allocation9 + $0x468] sm:$0xff] }
 0x13e   :  { %1413 = verf.f32 %v703_v30 }
 0x148   :  { %v1408_v31 = vpop.eup %1407 }
 0x149   :  { %v1410_v32 = vpop.eup %1409  ;;  %v732_v34 = vadd.f32 1.0, %v1408_v31 }
 0x14a   :  { %v1412_v33 = vpop.eup %1411  ;;  %v734_v36 = vadd.f32 1.0, %v1410_v32  ;;  %v969_v32 = vld [vmem:[#allocation9 + $0x668] sm:$0xff] }
 0x14b   :  { %v1414_v35 = vpop.eup %1413  ;;  %v733_v38 = vadd.f32 1.0, %v1412_v33  ;;  %v748_v44 = vmul.f32 %v732_v34, %v684_v39  ;;  %v904_v33 = vld [vmem:[#allocation9 + $0x460] sm:$0xff]  ;;  %v902_v39 = vld [vmem:[#allocation9 + $0x450] sm:$0xff] }
 0x14c   :  { %v735_v41 = vadd.f32 1.0, %v1414_v35  ;;  %v750_v47 = vmul.f32 %v734_v36, %v686_v42  ;;  %v903_v36 = vld [vmem:[#allocation9 + $0x458] sm:$0xff] }
 0x14d   :  { %v749_v43 = vmul.f32 %v733_v38, %v685_v37  ;;  %v967_v38 = vld [vmem:[#allocation9 + $0x658] sm:$0xff] }
 0x14e   :  { %v751_v45 = vmul.f32 %v735_v41, %v687_v40  ;;  %v966_v40 = vld [vmem:[#allocation9 + $0x650] sm:$0xff]  ;;  %v901_v41 = vld [vmem:[#allocation9 + $0x448] sm:$0xff] }
 0x14f   :  { %1084 = vmatprep.mubr.f32.mxu0 %v749_v43  ;;  %v965_v43 = vld [vmem:[#allocation9 + $0x648] sm:$0xff] }
 0x150   :  { %1161 = vmatprep.mubr.f32.mxu1 %v751_v45  ;;  %1085 = vmatmul.mubr.f32.vlgmr.msra.gmra.mxu0 %v748_v44  ;;  %v899_v45 = vld [vmem:[#allocation9 + $0x438] sm:$0xff] }
 0x151   :  { %1162 = vmatmul.mubr.f32.vlgmr.msra.gmra.mxu1 %v750_v47  ;;  %1175 = vmatpush1.msra.mxu0 %v922_v46  ;;  %v963_v46 = vld [vmem:[#allocation9 + $0x638] sm:$0xff]  ;;  %v898_v47 = vld [vmem:[#allocation9 + $0x430] sm:$0xff] }
 0x152   :  { %1252 = vmatpush1.msra.mxu1 %v986_v48  ;;  %1176 = vmatprep.subr.mxu0 %v921_v49  ;;  %v962_v48 = vld [vmem:[#allocation9 + $0x630] sm:$0xff]  ;;  %v897_v49 = vld [vmem:[#allocation9 + $0x428] sm:$0xff] }
 0x153   :  { %1253 = vmatprep.subr.mxu1 %v985_v50  ;;  %1177 = vmatpush1.msra.mxu0 %v920_v51  ;;  %v961_v50 = vld [vmem:[#allocation9 + $0x628] sm:$0xff]  ;;  %v896_v51 = vld [vmem:[#allocation9 + $0x420] sm:$0xff] }
 0x154   :  { %1254 = vmatpush1.msra.mxu1 %v984_v52  ;;  %1178 = vmatprep.subr.mxu0 %v919_v53  ;;  %v960_v52 = vld [vmem:[#allocation9 + $0x620] sm:$0xff]  ;;  %v895_v53 = vld [vmem:[#allocation9 + $0x418] sm:$0xff] }
 0x155   :  { %1255 = vmatprep.subr.mxu1 %v983_v54  ;;  %1179 = vmatpush1.msra.mxu0 %v918_v55  ;;  %v959_v54 = vld [vmem:[#allocation9 + $0x618] sm:$0xff]  ;;  %v894_v55 = vld [vmem:[#allocation9 + $0x410] sm:$0xff] }
 0x156   :  { %1256 = vmatpush1.msra.mxu1 %v982_v56  ;;  %1180 = vmatprep.subr.mxu0 %v917_v57  ;;  %v958_v56 = vld [vmem:[#allocation9 + $0x610] sm:$0xff]  ;;  %v893_v57 = vld [vmem:[#allocation9 + $0x408] sm:$0xff] }
 0x157   :  { %1257 = vmatprep.subr.mxu1 %v981_v58  ;;  %1181 = vmatpush1.msra.mxu0 %v916_v59  ;;  %v957_v58 = vld [vmem:[#allocation9 + $0x608] sm:$0xff]  ;;  %v892_v59 = vld [vmem:[#allocation9 + $0x400] sm:$0xff] }
 0x158   :  { %1258 = vmatpush1.msra.mxu1 %v980_v60  ;;  %1182 = vmatprep.subr.mxu0 %v915_v61  ;;  %v956_v60 = vld [vmem:[#allocation9 + $0x600] sm:$0xff]  ;;  %v955_v61 = vld [vmem:[#allocation9 + $0x5f8] sm:$0xff] }
 0x159   :  { %1259 = vmatprep.subr.mxu1 %v979_v62  ;;  %1183 = vmatpush1.msra.mxu0 %v914_v0  ;;  %v1019_v62 = vld [vmem:[#allocation9 + $0x7f8] sm:$0xff]  ;;  %v954_v0 = vld [vmem:[#allocation9 + $0x5f0] sm:$0xff] }
 0x15a   :  { %1260 = vmatpush1.msra.mxu1 %v978_v2  ;;  %1184 = vmatprep.subr.mxu0 %v913_v3  ;;  %v1018_v2 = vld [vmem:[#allocation9 + $0x7f0] sm:$0xff]  ;;  %v953_v3 = vld [vmem:[#allocation9 + $0x5e8] sm:$0xff] }
 0x15b   :  { %1261 = vmatprep.subr.mxu1 %v977_v4  ;;  %1185 = vmatpush1.msra.mxu0 %v912_v5  ;;  %v1017_v5 = vld [vmem:[#allocation9 + $0x7e8] sm:$0xff] }
 0x15c   :  { %1262 = vmatpush1.msra.mxu1 %v976_v6  ;;  %1186 = vmatprep.subr.mxu0 %v911_v7  ;;  %v952_v6 = vld [vmem:[#allocation9 + $0x5e0] sm:$0xff]  ;;  %v354_v7 = vsub.s32 4, %v1628_v11 }
 0x15d   :  { %1263 = vmatprep.subr.mxu1 %v975_v8  ;;  %1187 = vmatpush1.msra.mxu0 %v910_v9 }
 0x15e   :  { %1264 = vmatpush1.msra.mxu1 %v974_v10  ;;  %1188 = vmatprep.subr.mxu0 %v909_v13  ;;  %v1016_v10 = vld [vmem:[#allocation9 + $0x7e0] sm:$0xff]  ;;  %v951_v13 = vld [vmem:[#allocation9 + $0x5d8] sm:$0xff] }
 0x15f   :  { %v448_v23 = vpop.f32.mrf.mxu0  ;;  %v525_v24 = vpop.f32.mrf.mxu1  ;;  %1265 = vmatprep.subr.mxu1 %v973_v15  ;;  %1189 = vmatpush1.msra.mxu0 %v908_v18 }
 0x160   :  { %v1657_v26 = vadd.f32 %v448_v23, %v1639_v1  ;;  %v1660_v27 = vadd.f32 %v525_v24, %v1642_v17  ;;  %1266 = vmatpush1.msra.mxu1 %v972_v16  ;;  %1190 = vmatprep.subr.mxu0 %v907_v22  ;;  %v968_v1 = vld [vmem:[#allocation9 + $0x660] sm:$0xff]  ;;  %v1015_v22 = vld [vmem:[#allocation9 + $0x7d8] sm:$0xff]  ;;  %v950_v23 = vld [vmem:[#allocation9 + $0x5d0] sm:$0xff]  ;;  %v362_v24 = vsub.s32 6, %v1628_v11 }
 0x161   :  { %v450_v30 = vpop.f32.mrf.mxu0  ;;  %v527_v31 = vpop.f32.mrf.mxu1  ;;  %1267 = vmatprep.subr.mxu1 %v971_v19  ;;  %1191 = vmatpush1.msra.mxu0 %v906_v25 }
 0x162   :  { %v708_v34 = vmul.f32 0.70710677, %v1657_v26  ;;  %v710_v35 = vmul.f32 0.70710677, %v1660_v27  ;;  %v1665_v17 = vadd.f32 %v450_v30, %v1647_v20  ;;  %v1668_v37 = vadd.f32 %v527_v31, %v1650_v21  ;;  %1268 = vmatpush1.msra.mxu1 %v970_v28  ;;  %1192 = vmatprep.subr.mxu0 %v905_v29  ;;  %v900_v20 = vld [vmem:[#allocation9 + $0x440] sm:$0xff]  ;;  %v949_v29 = vld [vmem:[#allocation9 + $0x5c8] sm:$0xff] }
 0x163   :  { %1269 = vmatprep.subr.mxu1 %v969_v32  ;;  %1193 = vmatpush1.msra.mxu0 %v904_v33  ;;  %v964_v21 = vld [vmem:[#allocation9 + $0x640] sm:$0xff]  ;;  %v692_v9 = vmul.f32 0.5, %v1657_v26  ;;  %v694_v18 = vmul.f32 0.5, %v1660_v27  ;;  %v1014_v26 = vld [vmem:[#allocation9 + $0x7d0] sm:$0xff]  ;;  %v355_v27 = vrot.slane %v1632_v14, %v354_v7  ;;  %v1013_v32 = vld [vmem:[#allocation9 + $0x7c8] sm:$0xff] }
 0x164   :  { %1415 = verf.f32 %v708_v34  ;;  %v709_v42 = vmul.f32 0.70710677, %v1665_v17  ;;  %1270 = vmatpush1.msra.mxu1 %v968_v1  ;;  %1194 = vmatprep.subr.mxu0 %v903_v36  ;;  %v711_v44 = vmul.f32 0.70710677, %v1668_v37  ;;  %v693_v16 = vmul.f32 0.5, %v1665_v17  ;;  %v948_v33 = vld [vmem:[#allocation9 + $0x5c0] sm:$0xff] }
 0x165   :  { %1417 = verf.f32 %v710_v35  ;;  %1271 = vmatprep.subr.mxu1 %v967_v38  ;;  %1195 = vmatpush1.msra.mxu0 %v902_v39  ;;  %v695_v28 = vmul.f32 0.5, %v1668_v37  ;;  %v1012_v1 = vld [vmem:[#allocation9 + $0x7c0] sm:$0xff]  ;;  %v358_v36 = vsub.s32 5, %v1628_v11  ;;  %v366_v17 = vsub.s32 7, %v1628_v11 }
 0x166   :  { %1419 = verf.f32 %v709_v42  ;;  %1272 = vmatpush1.msra.mxu1 %v966_v40  ;;  %1196 = vmatprep.subr.mxu0 %v901_v41  ;;  %v363_v37 = vrot.slane %v1632_v14, %v362_v24  ;;  %v947_v41 = vld [vmem:[#allocation9 + $0x5b8] sm:$0xff] }
 0x167   :  { %1421 = verf.f32 %v711_v44  ;;  %1273 = vmatprep.subr.mxu1 %v965_v43  ;;  %1197 = vmatpush1.msra.mxu0 %v900_v20  ;;  %v1011_v42 = vld [vmem:[#allocation9 + $0x7b8] sm:$0xff]  ;;  %v946_v43 = vld [vmem:[#allocation9 + $0x5b0] sm:$0xff] }
 0x168   :  { %1274 = vmatpush1.msra.mxu1 %v964_v21  ;;  %1198 = vmatprep.subr.mxu0 %v899_v45  ;;  %v359_v21 = vrot.slane %v1632_v14, %v358_v36  ;;  %v367_v45 = vrot.slane %v1632_v14, %v366_v17  ;;  %v997_v36 = vld [vmem:[#allocation9 + $0x748] sm:$0xff]  ;;  %v932_v17 = vld [vmem:[#allocation9 + $0x540] sm:$0xff] }
 0x169   :  { %1275 = vmatprep.subr.mxu1 %v963_v46  ;;  %1199 = vmatpush1.msra.mxu0 %v898_v47  ;;  %v1010_v46 = vld [vmem:[#allocation9 + $0x7b0] sm:$0xff]  ;;  %v945_v47 = vld [vmem:[#allocation9 + $0x5a8] sm:$0xff] }
 0x16a   :  { %1276 = vmatpush1.msra.mxu1 %v962_v48  ;;  %1200 = vmatprep.subr.mxu0 %v897_v49 }
 0x16b   :  { %1277 = vmatprep.subr.mxu1 %v961_v50  ;;  %1201 = vmatpush1.msra.mxu0 %v896_v51  ;;  %v1009_v50 = vld [vmem:[#allocation9 + $0x7a8] sm:$0xff]  ;;  %v944_v51 = vld [vmem:[#allocation9 + $0x5a0] sm:$0xff] }
 0x16c   :  { %1278 = vmatpush1.msra.mxu1 %v960_v52  ;;  %1202 = vmatprep.subr.mxu0 %v895_v53 }
 0x16d   :  { %1279 = vmatprep.subr.mxu1 %v959_v54  ;;  %1203 = vmatpush1.msra.mxu0 %v894_v55  ;;  %v1008_v54 = vld [vmem:[#allocation9 + $0x7a0] sm:$0xff]  ;;  %v943_v55 = vld [vmem:[#allocation9 + $0x598] sm:$0xff] }
 0x16e   :  { %1280 = vmatpush1.msra.mxu1 %v958_v56  ;;  %1204 = vmatprep.subr.mxu0 %v893_v57  ;;  %v1007_v57 = vld [vmem:[#allocation9 + $0x798] sm:$0xff] }
 0x16f   :  { %1281 = vmatprep.subr.mxu1 %v957_v58  ;;  %1205 = vmatpush1.msra.mxu0 %v892_v59  ;;  %v942_v58 = vld [vmem:[#allocation9 + $0x590] sm:$0xff] }
 0x170   :  { %1282 = vmatpush1.msra.mxu1 %v956_v60  ;;  %1206 = vmatprep.subr.mxu0 %v955_v61 }
 0x171   :  { %v1416_v4 = vpop.eup %1415  ;;  %1283 = vmatprep.subr.mxu1 %v1019_v62  ;;  %1207 = vmatpush2.msra.mxu0 %v954_v0  ;;  %v1006_v0 = vld [vmem:[#allocation9 + $0x790] sm:$0xff] }
 0x172   :  { %v1418_v8 = vpop.eup %1417  ;;  %v740_v15 = vadd.f32 1.0, %v1416_v4  ;;  %1284 = vmatpush2.msra.mxu1 %v1018_v2  ;;  %1208 = vmatprep.subr.mxu0 %v953_v3  ;;  %v941_v2 = vld [vmem:[#allocation9 + $0x588] sm:$0xff] }
 0x173   :  { %v742_v19 = vadd.f32 1.0, %v1418_v8  ;;  %v1420_v25 = vpop.eup %1419  ;;  %1285 = vmatprep.subr.mxu1 %v1017_v5  ;;  %1209 = vmatpush2.msra.mxu0 %v952_v6  ;;  %v1005_v5 = vld [vmem:[#allocation9 + $0x788] sm:$0xff]  ;;  %v940_v6 = vld [vmem:[#allocation9 + $0x580] sm:$0xff] }
 0x174   :  { %v1422_v30 = vpop.eup %1421  ;;  %1286 = vmatpush2.msra.mxu1 %v1016_v10  ;;  %1210 = vmatprep.subr.mxu0 %v951_v13  ;;  %v741_v31 = vadd.f32 1.0, %v1420_v25  ;;  %v756_v35 = vmul.f32 %v740_v15, %v692_v9  ;;  %v1004_v10 = vld [vmem:[#allocation9 + $0x780] sm:$0xff]  ;;  %v939_v13 = vld [vmem:[#allocation9 + $0x578] sm:$0xff]  ;;  %v1002_v25 = vld [vmem:[#allocation9 + $0x770] sm:$0xff] }
 0x175   :  { %1287 = vmatprep.subr.mxu1 %v1015_v22  ;;  %1211 = vmatpush2.msra.mxu0 %v950_v23  ;;  %v743_v34 = vadd.f32 1.0, %v1422_v30  ;;  %v758_v39 = vmul.f32 %v742_v19, %v694_v18  ;;  %v938_v22 = vld [vmem:[#allocation9 + $0x570] sm:$0xff] }
 0x176   :  { %1288 = vmatpush2.msra.mxu1 %v1014_v26  ;;  %v757_v38 = vmul.f32 %v741_v31, %v693_v16  ;;  %1212 = vmatprep.subr.mxu0 %v949_v29  ;;  %v1003_v16 = vld [vmem:[#allocation9 + $0x778] sm:$0xff]  ;;  %v1001_v26 = vld [vmem:[#allocation9 + $0x768] sm:$0xff]  ;;  %v936_v29 = vld [vmem:[#allocation9 + $0x560] sm:$0xff] }
 0x177   :  { %v759_v40 = vmul.f32 %v743_v34, %v695_v28  ;;  %1289 = vmatprep.subr.mxu1 %v1013_v32  ;;  %1213 = vmatpush2.msra.mxu0 %v948_v33  ;;  %v937_v28 = vld [vmem:[#allocation9 + $0x568] sm:$0xff]  ;;  %v935_v31 = vld [vmem:[#allocation9 + $0x558] sm:$0xff]  ;;  %v934_v34 = vld [vmem:[#allocation9 + $0x550] sm:$0xff] }
 0x178   :  { %1090 = vmatprep.mubr.f32.mxu0 %v757_v38  ;;  %1290 = vmatpush2.msra.mxu1 %v1012_v1  ;;  %v999_v33 = vld [vmem:[#allocation9 + $0x758] sm:$0xff]  ;;  %v933_v1 = vld [vmem:[#allocation9 + $0x548] sm:$0xff] }
 0x179   :  { %1167 = vmatprep.mubr.f32.mxu1 %v759_v40  ;;  %1091 = vmatmul.mubr.f32.gmra.mxu0 %v756_v35  ;;  %v998_v35 = vld [vmem:[#allocation9 + $0x750] sm:$0xff]  ;;  %v931_v38 = vld [vmem:[#allocation9 + $0x538] sm:$0xff] }
 0x17a   :  { %v596_v20 = vpop.f32.mrf.mxu0  ;;  %v673_v44 = vpop.f32.mrf.mxu1  ;;  %1168 = vmatmul.mubr.f32.gmra.mxu1 %v758_v39  ;;  %1214 = vmatprep.subr.mxu0 %v947_v41  ;;  %v995_v39 = vld [vmem:[#allocation9 + $0x738] sm:$0xff]  ;;  %v930_v40 = vld [vmem:[#allocation9 + $0x530] sm:$0xff] }
 0x17b   :  { %v1684_v48 = vadd.f32 %v596_v20, %v355_v27  ;;  %v1686_v49 = vadd.f32 %v673_v44, %v363_v37  ;;  %1291 = vmatprep.subr.mxu1 %v1011_v42  ;;  %1215 = vmatpush2.msra.mxu0 %v946_v43  ;;  %v994_v41 = vld [vmem:[#allocation9 + $0x730] sm:$0xff]  ;;  %v929_v42 = vld [vmem:[#allocation9 + $0x528] sm:$0xff]  ;;  %v928_v20 = vld [vmem:[#allocation9 + $0x520] sm:$0xff] }
 0x17c   :  { %v598_v52 = vpop.f32.mrf.mxu0  ;;  %v675_v53 = vpop.f32.mrf.mxu1  ;;  %1292 = vmatpush2.msra.mxu1 %v1010_v46  ;;  %1216 = vmatprep.subr.mxu0 %v945_v47  ;;  %v993_v43 = vld [vmem:[#allocation9 + $0x728] sm:$0xff]  ;;  %v991_v47 = vld [vmem:[#allocation9 + $0x718] sm:$0xff] }
 0x17d   :  { %v704_v56 = vmul.f32 0.70710677, %v1684_v48  ;;  %v706_v14 = vmul.f32 0.70710677, %v1686_v49  ;;  %v1690_v59 = vadd.f32 %v598_v52, %v359_v21  ;;  %v1692_v60 = vadd.f32 %v675_v53, %v367_v45  ;;  %1293 = vmatprep.subr.mxu1 %v1009_v50  ;;  %1217 = vmatpush2.msra.mxu0 %v944_v51  ;;  %v926_v50 = vld [vmem:[#allocation9 + $0x510] sm:$0xff]  ;;  %v925_v52 = vld [vmem:[#allocation9 + $0x508] sm:$0xff] }
 0x17e   :  { %v602_v61 = vpop.f32.mrf.mxu0  ;;  %v679_v62 = vpop.f32.mrf.mxu1  ;;  %1294 = vmatpush2.msra.mxu1 %v1008_v54  ;;  %1218 = vmatprep.subr.mxu0 %v943_v55  ;;  %v990_v51 = vld [vmem:[#allocation9 + $0x710] sm:$0xff]  ;;  %v989_v55 = vld [vmem:[#allocation9 + $0x708] sm:$0xff] }
 0x17f   :  { %1423 = verf.f32 %v704_v56  ;;  %v1694_v3 = vadd.f32 %v602_v61, %v355_v27  ;;  %v1696_v4 = vadd.f32 %v679_v62, %v363_v37  ;;  %v705_v7 = vmul.f32 0.70710677, %v1690_v59  ;;  %1295 = vmatprep.subr.mxu1 %v1007_v57  ;;  %1219 = vmatpush2.msra.mxu0 %v942_v58  ;;  %v1000_v27 = vld [vmem:[#allocation9 + $0x760] sm:$0xff] }
 0x180   :  { %1425 = verf.f32 %v706_v14  ;;  %v604_v8 = vpop.f32.mrf.mxu0  ;;  %v681_v9 = vpop.f32.mrf.mxu1  ;;  %v707_v15 = vmul.f32 0.70710677, %v1692_v60  ;;  %1296 = vmatpush2.msra.mxu1 %v1006_v0  ;;  %1220 = vmatprep.subr.mxu0 %v941_v2  ;;  %v996_v37 = vld [vmem:[#allocation9 + $0x740] sm:$0xff]  ;;  %v689_v58 = vmul.f32 0.5, %v1690_v59  ;;  %v688_v2 = vmul.f32 0.5, %v1684_v48 }
 0x181   :  { %v712_v18 = vmul.f32 0.70710677, %v1694_v3  ;;  %1427 = verf.f32 %v705_v7  ;;  %v714_v23 = vmul.f32 0.70710677, %v1696_v4  ;;  %v1702_v24 = vadd.f32 %v604_v8, %v359_v21  ;;  %1297 = vmatprep.subr.mxu1 %v1005_v5  ;;  %1221 = vmatpush2.msra.mxu0 %v940_v6  ;;  %v992_v21 = vld [vmem:[#allocation9 + $0x720] sm:$0xff] }
 0x182   :  { %v1704_v19 = vadd.f32 %v681_v9, %v367_v45  ;;  %1429 = verf.f32 %v707_v15  ;;  %1298 = vmatpush2.msra.mxu1 %v1004_v10  ;;  %1222 = vmatprep.subr.mxu0 %v939_v13  ;;  %v927_v45 = vld [vmem:[#allocation9 + $0x518] sm:$0xff]  ;;  %v924_v56 = vld [vmem:[#allocation9 + $0x500] sm:$0xff]  ;;  %v691_v5 = vmul.f32 0.5, %v1692_v60  ;;  %v690_v8 = vmul.f32 0.5, %v1686_v49 }
 0x183   :  { %1431 = verf.f32 %v712_v18  ;;  %v713_v30 = vmul.f32 0.70710677, %v1702_v24  ;;  %1299 = vmatprep.subr.mxu1 %v1003_v16  ;;  %1223 = vmatpush2.msra.mxu0 %v938_v22  ;;  %v988_v62 = vld [vmem:[#allocation9 + $0x700] sm:$0xff]  ;;  %v697_v48 = vmul.f32 0.5, %v1702_v24 }
 0x184   :  { %1433 = verf.f32 %v714_v23  ;;  %v715_v32 = vmul.f32 0.70710677, %v1704_v19  ;;  %1300 = vmatpush2.msra.mxu1 %v1002_v25  ;;  %1224 = vmatprep.subr.mxu0 %v937_v28  ;;  %v696_v23 = vmul.f32 0.5, %v1694_v3  ;;  %v699_v25 = vmul.f32 0.5, %v1704_v19 }
 0x185   :  { %1435 = verf.f32 %v713_v30  ;;  %1301 = vmatprep.subr.mxu1 %v1001_v26  ;;  %1225 = vmatpush2.msra.mxu0 %v936_v29  ;;  %v698_v28 = vmul.f32 0.5, %v1696_v4  ;;  %v1332_v4 = vld [vmem:[%s1733_s4] sm:$0x3]  ;;  %s1555_s4 = smov [#allocation11]  }
 0x186   :  { %1437 = verf.f32 %v715_v32  ;;  %1302 = vmatpush2.msra.mxu1 %v1000_v27  ;;  %1226 = vmatprep.subr.mxu0 %v935_v31  ;;  %s1384_s15 = sshll.u32 %s1555_s4, 4  ;;  %s1385_s15 = int_to_ptr.vmem [resolvable:$true] %s1384_s15 }
 0x187   :  { %1303 = vmatprep.subr.mxu1 %v999_v33  ;;  %1227 = vmatpush2.msra.mxu0 %v934_v34  ;;  %s1519_s16 = scalar_lea.vmem %s1385_s15, 512  ;;  %p1524_p7 = scmp.lt.s32.totalorder %s1385_s15, %s1385_s15 }
 0x188   :  { %1304 = vmatpush2.msra.mxu1 %v998_v35  ;;  %1228 = vmatprep.subr.mxu0 %v933_v1  ;;  %p1520_p6 = scmp.ne.s32.totalorder %s1385_s15, %s1519_s16  ;;  %p1525_p8 = scmp.lt.s32.totalorder %s1519_s16, %s1519_s16 }
 0x189   :  { %1305 = vmatprep.subr.mxu1 %v997_v36  ;;  %1229 = vmatpush2.msra.mxu0 %v932_v17 }
 0x18a   :  { %1306 = vmatpush2.msra.mxu1 %v996_v37  ;;  %1230 = vmatprep.subr.mxu0 %v931_v38  ;;  %p1526_p9 = por %p1525_p8, %p1524_p7 }
 0x18b   :  { %1307 = vmatprep.subr.mxu1 %v995_v39  ;;  %1231 = vmatpush2.msra.mxu0 %v930_v40  ;;  %v1337_v39 = vrot.slane %v1332_v4, %v338_v12 }
 0x18c   :  { %v1424_v44 = vpop.eup %1423  ;;  %1308 = vmatpush2.msra.mxu1 %v994_v41  ;;  %1232 = vmatprep.subr.mxu0 %v929_v42  ;;  %p1527_p10 = pnand %p1526_p9, %p1520_p6 }
 0x18d   :  { %v1426_v46 = vpop.eup %1425  ;;  %1309 = vmatprep.subr.mxu1 %v993_v43  ;;  %1233 = vmatpush2.msra.mxu0 %v928_v20  ;;  %v736_v54 = vadd.f32 1.0, %v1424_v44  ;;  %v1341_v44 = vrot.slane %v1332_v4, %v342_v63 }
 0x18e   :  { %v1428_v53 = vpop.eup %1427  ;;  %1310 = vmatpush2.msra.mxu1 %v992_v21  ;;  %1234 = vmatprep.subr.mxu0 %v927_v45  ;;  %v738_v57 = vadd.f32 1.0, %v1426_v46 }
 0x18f   :  { %v1430_v14 = vpop.eup %1429  ;;  %1311 = vmatprep.subr.mxu1 %v991_v47  ;;  %1235 = vmatpush2.msra.mxu0 %v926_v50  ;;  %v737_v61 = vadd.f32 1.0, %v1428_v53  ;;  %v752_v59 = vmul.f32 %v736_v54, %v688_v2 }
 0x190   :  { %v1432_v0 = vpop.eup %1431  ;;  %1312 = vmatpush2.msra.mxu1 %v990_v51  ;;  %1236 = vmatprep.subr.mxu0 %v925_v52  ;;  %v739_v6 = vadd.f32 1.0, %v1430_v14  ;;  %v754_v16 = vmul.f32 %v738_v57, %v690_v8 }
 0x191   :  { %v1434_v7 = vpop.eup %1433  ;;  %1313 = vmatprep.subr.mxu1 %v989_v55  ;;  %1237 = vmatpush2.msra.mxu0 %v924_v56  ;;  %v753_v9 = vmul.f32 %v737_v61, %v689_v58  ;;  %v744_v15 = vadd.f32 1.0, %v1432_v0 }
 0x192   :  { %v1436_v10 = vpop.eup %1435  ;;  %1314 = vmatpush2.msra.mxu1 %v988_v62  ;;  %v755_v13 = vmul.f32 %v739_v6, %v691_v5  ;;  %v746_v22 = vadd.f32 1.0, %v1434_v7 }
 0x193   :  { %v1438_v18 = vpop.eup %1437  ;;  %1238 = vmatprep.mubr.f32.mxu0 %v753_v9  ;;  %v745_v60 = vadd.f32 1.0, %v1436_v10  ;;  %v760_v30 = vmul.f32 %v744_v15, %v696_v23 }
 0x194   :  { %1315 = vmatprep.mubr.f32.mxu1 %v755_v13  ;;  %1239 = vmatmul.mubr.f32.vlgmr.msra.gmra.mxu0 %v752_v59  ;;  %v747_v49 = vadd.f32 1.0, %v1438_v18  ;;  %v762_v27 = vmul.f32 %v746_v22, %v698_v28 }
 0x195   :  { %1316 = vmatmul.mubr.f32.vlgmr.msra.gmra.mxu1 %v754_v16  ;;  %v761_v26 = vmul.f32 %v745_v60, %v697_v48 }
 0x196   :  { %v763_v29 = vmul.f32 %v747_v49, %v699_v25 }
 0x197   :  { %1244 = vmatprep.mubr.f32.mxu0 %v761_v26 }
 0x198   :  { %1321 = vmatprep.mubr.f32.mxu1 %v763_v29  ;;  %1245 = vmatmul.mubr.f32.gmra.mxu0 %v760_v30 }
 0x199   :  { %1322 = vmatmul.mubr.f32.gmra.mxu1 %v762_v27 }
 0x210   :  { %v1086_v24 = vpop.f32.mrf.mxu0 }
 0x211   :  { %v1163_v31 = vpop.f32.mrf.mxu1 }
 0x212   :  { %v1088_v32 = vpop.f32.mrf.mxu0  ;;  %v1164_v35 = vadd.f32 %v1163_v31, %v1086_v24 }
 0x213   :  { %v1165_v3 = vpop.f32.mrf.mxu1 }
 0x214   :  { %v1166_v17 = vadd.f32 %v1165_v3, %v1088_v32 }
 0x239   :  { %v1092_v33 = vpop.f32.mrf.mxu0 }
 0x23a   :  { %v1169_v19 = vpop.f32.mrf.mxu1 }
 0x23b   :  { %v1094_v34 = vpop.f32.mrf.mxu0  ;;  %v1170_v41 = vadd.f32 %v1169_v19, %v1092_v33 }
 0x23c   :  { %v1171_v1 = vpop.f32.mrf.mxu1 }
 0x23d   :  { %v1172_v45 = vadd.f32 %v1171_v1, %v1094_v34 }
 0x254   :  { %v1240_v36 = vpop.f32.mrf.mxu0 }
 0x255   :  { %v1241_v37 = vadd.f32 %v1240_v36, %v1164_v35  ;;  %v1317_v38 = vpop.f32.mrf.mxu1 }
 0x256   :  { %v1242_v40 = vpop.f32.mrf.mxu0 }
 0x257   :  { %v1318_v42 = vadd.f32 %v1317_v38, %v1241_v37  ;;  %v1243_v43 = vadd.f32 %v1242_v40, %v1166_v17  ;;  %v1319_v20 = vpop.f32.mrf.mxu1 }
 0x258   :  { %v1246_v21 = vpop.f32.mrf.mxu0 }
 0x259   :  { %v1344_v46 = vadd.f32 %v1337_v39, %v1318_v42  ;;  %v1320_v47 = vadd.f32 %v1319_v20, %v1243_v43  ;;  %v1247_v50 = vadd.f32 %v1246_v21, %v1170_v41  ;;  %v1323_v51 = vpop.f32.mrf.mxu1 }
 0x25a   :  { %v1248_v52 = vpop.f32.mrf.mxu0 }
 0x25b   :  { %1375 = vst [vmem:[#allocation11] sm:$0xff] %v1344_v46  ;;  %v1345_v53 = vadd.f32 %v1341_v44, %v1320_v47  ;;  %v1324_v54 = vadd.f32 %v1323_v51, %v1247_v50  ;;  %v1249_v55 = vadd.f32 %v1248_v52, %v1172_v45  ;;  %v1325_v12 = vpop.f32.mrf.mxu1 }
 0x25d   :  { %1376 = vst [vmem:[#allocation11 + $0x8] sm:$0xff] %v1345_v53  ;;  %v1346_v56 = vadd.f32 %v1337_v39, %v1324_v54  ;;  %v1326_v14 = vadd.f32 %v1325_v12, %v1249_v55 }
 0x25f   :  { %1377 = vst [vmem:[#allocation11 + $0x10] sm:$0xff] %v1346_v56  ;;  %v1347_v11 = vadd.f32 %v1341_v44, %v1326_v14 }
 0x261   :  { %1378 = vst [vmem:[#allocation11 + $0x18] sm:$0xff] %v1347_v11 }
 0x262   :  { %1530 = shalt.err (!%p1527_p10)
}
 0x263   :  { %1390 = dma.vmem_to_hbm [thread:$0]  %s1385_s15, 512, %s1734_s5, [#allocation5], %s1551_s28, %s1551_s28, %s1552_s29  }
 0x264   :  { %1545 = dma.done.wait [#allocation5], 512  }
 0x265   :  { %1546 = vsyncadd [#allocation5], 4294966784 }
 0x266   :  { %1394 = vsyncpa [#allocation4], 1 }
 0x267   :  { %1395 = vsyncpa [#allocation7], 1 }
 0x268   :  { %1396 = vsyncpa [#allocation10], 1 }
 0x269   :  { %1397 = vsyncpa [#allocation5], 1 }

</bundles_post_ra>
